<compile_context>
chip_gen: v7x
topology: tpu7x:2x2x1
jax: 0.10.0
libtpu: 0.0.40
codegen_flags: <defaults>
</compile_context>

<pallas_src>
import jax
import jax.numpy as jnp
from jax.experimental import pallas as pl
from jax.experimental.pallas import tpu as pltpu

HIDDEN = 1000        # module's hidden size (nn.Linear(inp, 1000), ...)
HIDDEN_PAD = 1024    # zero-padded, (8,128)-aligned hidden size used on-chip


def _discrim_mlp_kernel(x_ref, w1_ref, b1_ref, w2_ref, b2_ref, w3_ref, b3_ref, o_ref):
    """Fused MLP tile: (matmul + bias + ReLU) x2, then a VPU/XLU final projection.

    Weights may be bf16 (default) or f32; both matmuls accumulate in f32 on the
    MXU and every VPU op (bias add, ReLU, final reduce) runs in f32.
    """
    w_dtype = w1_ref.dtype                      # bf16 (default) or f32
    x = x_ref[...].astype(w_dtype)

    # Layer 1: (tb, F) @ (F, Hp) -> f32 accumulate on the MXU.
    h1 = jnp.dot(x, w1_ref[...], preferred_element_type=jnp.float32) + b1_ref[...]
    h1 = jnp.maximum(h1, 0.0).astype(w_dtype)   # ReLU in f32, cast for next MXU pass

    # Layer 2: (tb, Hp) @ (Hp, Hp) -> f32 accumulate (dominant cost).
    h2 = jnp.dot(h1, w2_ref[...], preferred_element_type=jnp.float32) + b2_ref[...]
    h2 = jnp.maximum(h2, 0.0)

    # Layer 3 (Hp -> 1): VPU multiply + XLU lane reduction instead of an N=1
    # MXU matmul (an N=1 matmul costs as many MXU pushes as N=128).
    w3_row = w3_ref[...].astype(jnp.float32)                 # (1, Hp)
    y = jnp.sum(h2 * w3_row, axis=-1, keepdims=True)         # (tb, 1)
    o_ref[...] = (y + b3_ref[...]).astype(o_ref.dtype)


def _choose_batch_tile(B):
    """Batch tile: 256 rows matches the v6e/v7x 256-wide MXU, but keep at least
    two grid steps when B allows (so both v7x TensorCores get a tile via the
    "parallel" grid axis), and never pad tiny batches past the next multiple
    of 8."""
    if B >= 512:
        return 256
    if B > 8:
        return max(8, (((B + 1) // 2 + 7) // 8) * 8)
    return 8


def _build_call(F, Hp, tb, num_tiles, B_pad, single_buffer_weights):
    # W1/b1/W2/b2/W3/b3 have constant block indices -> Pallas never re-DMAs
    # them across grid steps.  When supported, also pin them to a single VMEM
    # buffer: double-buffering a constant block only wastes VMEM (W2 alone is
    # 2 MiB bf16 / 4 MiB f32 per buffer), which matters most on v7x (64 MiB).
    const_kw = dict(pipeline_mode=pl.Buffered(1)) if single_buffer_weights else {}
    in_specs = [
        pl.BlockSpec((tb, F), lambda i: (i, 0)),                 # x tile
        pl.BlockSpec((F, Hp), lambda i: (0, 0), **const_kw),     # W1
        pl.BlockSpec((1, Hp), lambda i: (0, 0), **const_kw),     # b1
        pl.BlockSpec((Hp, Hp), lambda i: (0, 0), **const_kw),    # W2
        pl.BlockSpec((1, Hp), lambda i: (0, 0), **const_kw),     # b2
        pl.BlockSpec((1, Hp), lambda i: (0, 0), **const_kw),     # W3 as a row
        pl.BlockSpec((1, 1), lambda i: (0, 0), **const_kw),      # b3
    ]
    return pl.pallas_call(
        _discrim_mlp_kernel,
        out_shape=jax.ShapeDtypeStruct((B_pad, 1), jnp.float32),
        grid_spec=pltpu.PrefetchScalarGridSpec(
            num_scalar_prefetch=0,
            grid=(num_tiles,),
            in_specs=in_specs,
            out_specs=pl.BlockSpec((tb, 1), lambda i: (i, 0)),
        ),
        compiler_params=pltpu.CompilerParams(
            dimension_semantics=("parallel",),                 # megacore / v7x 2-TC sharding
            vmem_limit_bytes=32 * 1024 * 1024,                 # well under use; headroom on all gens
        ),
    )


_SINGLE_BUFFER_WEIGHTS_OK = None  # lazily probed once


def discrim_forward(x, padded_params, *, tb=None):
    """x: (B, F, T) float32; padded_params from prepare_params(). Returns (B, 1) f32."""
    global _SINGLE_BUFFER_WEIGHTS_OK
    w1, b1, w2, b2, w3_row, b3 = padded_params
    B, F, _ = x.shape
    Hp = w1.shape[1]
    if tb is None:
        tb = _choose_batch_tile(B)

    # Take the t=0 slice (module semantics) and pad the batch up to the tile.
    x2d = x[:, :, 0]                                          # (B, F)
    num_tiles = pl.cdiv(B, tb)
    B_pad = num_tiles * tb
    if B_pad != B:
        x2d = jnp.pad(x2d, ((0, B_pad - B), (0, 0)))

    args = (x2d, w1, b1, w2, b2, w3_row, b3)
    if _SINGLE_BUFFER_WEIGHTS_OK is None:
        try:
            out = _build_call(F, Hp, tb, num_tiles, B_pad, True)(*args)
            out = jax.block_until_ready(out)
            _SINGLE_BUFFER_WEIGHTS_OK = True
        except Exception:
            # pl.Buffered(1) not accepted by this jax/libtpu -> plain double-buffered specs.
            _SINGLE_BUFFER_WEIGHTS_OK = False
            out = _build_call(F, Hp, tb, num_tiles, B_pad, False)(*args)
    else:
        out = _build_call(F, Hp, tb, num_tiles, B_pad, _SINGLE_BUFFER_WEIGHTS_OK)(*args)
    return out[:B]


def init_params(key, inp):
    """Module-faithful init: Linear(inp,1000), Linear(1000,1000), Linear(1000,1)."""
    k1, k2, k3, k4, k5, k6 = jax.random.split(key, 6)
    scale1 = 1.0 / jnp.sqrt(inp)
    scale2 = 1.0 / jnp.sqrt(HIDDEN)
    w1 = jax.random.uniform(k1, (inp, HIDDEN), jnp.float32, -scale1, scale1)
    b1 = jax.random.uniform(k2, (1, HIDDEN), jnp.float32, -scale1, scale1)
    w2 = jax.random.uniform(k3, (HIDDEN, HIDDEN), jnp.float32, -scale2, scale2)
    b2 = jax.random.uniform(k4, (1, HIDDEN), jnp.float32, -scale2, scale2)
    w3 = jax.random.uniform(k5, (HIDDEN, 1), jnp.float32, -scale2, scale2)
    b3 = jax.random.uniform(k6, (1, 1), jnp.float32, -scale2, scale2)
    return (w1, b1, w2, b2, w3, b3)


def prepare_params(params, dtype=jnp.bfloat16):
    """Zero-pad hidden dim 1000 -> 1024 and lay W3 out as a (1, Hp) row.

    Padding is numerically exact (zero W1 cols + zero b1 -> ReLU(0)=0 hidden
    units -> zero contribution through zero W2 rows / W3 rows).  Default dtype
    is bf16 (halves weight HBM/VMEM traffic, single-pass bf16 MXU on all
    gens); pass dtype=jnp.float32 for a bit-tighter numerical check.  Biases
    stay f32 so all VPU math is f32.
    """
    # TODO(synk): optional fp8 (v7x) / int8 (v5e/v6e) W2 with per-channel scales
    # folded into b2 could halve the W2 load again in the DMA-bound regime.
    w1, b1, w2, b2, w3, b3 = params
    pad = HIDDEN_PAD - HIDDEN
    w1p = jnp.pad(w1, ((0, 0), (0, pad))).astype(dtype)
    b1p = jnp.pad(b1, ((0, 0), (0, pad))).astype(jnp.float32)
    w2p = jnp.pad(w2, ((0, pad), (0, pad))).astype(dtype)
    b2p = jnp.pad(b2, ((0, 0), (0, pad))).astype(jnp.float32)
    w3p = jnp.pad(w3, ((0, pad), (0, 0))).T.astype(dtype)      # (1, HIDDEN_PAD)
    b3p = b3.astype(jnp.float32)
    return (w1p, b1p, w2p, b2p, w3p, b3p)


def reference_forward(x, params):
    """Pure-JAX reference matching the PyTorch module (unpadded, f32)."""
    w1, b1, w2, b2, w3, b3 = params
    h = x[:, :, 0]
    h = jnp.maximum(h @ w1 + b1, 0.0)
    h = jnp.maximum(h @ w2 + b2, 0.0)
    return h @ w3 + b3


if __name__ == "__main__":
    B, F, T = 8, 32, 8  # batch, input features (module's `inp`), seq length
    key = jax.random.PRNGKey(0)
    kx, kp = jax.random.split(key)
    x = jax.random.normal(kx, (B, F, T), dtype=jnp.float32)

    params = init_params(kp, F)
    ref = reference_forward(x, params)

    # Performance path: bf16 weights/activations on the MXU, f32 accumulation.
    out_bf16 = jax.block_until_ready(discrim_forward(x, prepare_params(params)))
    assert out_bf16.shape == (B, 1), out_bf16.shape
    assert jnp.allclose(out_bf16, ref, atol=5e-2, rtol=5e-2), "bf16 kernel deviates from reference"

    # Full-f32 path for a tight numerical check against the JAX reference.
    out_f32 = jax.block_until_ready(
        discrim_forward(x, prepare_params(params, dtype=jnp.float32)))
    assert out_f32.shape == (B, 1), out_f32.shape
    assert jnp.allclose(out_f32, ref, atol=1e-4, rtol=1e-4), "f32 kernel mismatch vs JAX reference"

    print("KERNEL_OK")
</pallas_src>

<mosaic_0001>
module attributes {stable_mosaic.version = 11 : i64} {
  func.func @_discrim_mlp_kernel(%arg0: i32, %arg1: memref<8x32xf32, #tpu.memory_space<vmem>>, %arg2: memref<32x1024xbf16, #tpu.memory_space<vmem>>, %arg3: memref<1x1024xf32, #tpu.memory_space<vmem>>, %arg4: memref<1024x1024xbf16, #tpu.memory_space<vmem>>, %arg5: memref<1x1024xf32, #tpu.memory_space<vmem>>, %arg6: memref<1x1024xbf16, #tpu.memory_space<vmem>>, %arg7: memref<1x1xf32, #tpu.memory_space<vmem>>, %arg8: memref<8x1xf32, #tpu.memory_space<vmem>>) attributes {dimension_semantics = [#tpu.dimension_semantics<parallel>], iteration_bounds = array<i64: 1>, scalar_prefetch = 0 : i64, scratch_operands = 0 : i64, tpu.core_type = #tpu.core_type<tc>, window_params = [{transform_indices = @transform_0, window_bounds = array<i64: 8, 32>}, {pipeline_mode = #tpu.pipeline_mode<synchronous>, transform_indices = @transform_1, window_bounds = array<i64: 32, 1024>}, {pipeline_mode = #tpu.pipeline_mode<synchronous>, transform_indices = @transform_2, window_bounds = array<i64: 1, 1024>}, {pipeline_mode = #tpu.pipeline_mode<synchronous>, transform_indices = @transform_3, window_bounds = array<i64: 1024, 1024>}, {pipeline_mode = #tpu.pipeline_mode<synchronous>, transform_indices = @transform_4, window_bounds = array<i64: 1, 1024>}, {pipeline_mode = #tpu.pipeline_mode<synchronous>, transform_indices = @transform_5, window_bounds = array<i64: 1, 1024>}, {pipeline_mode = #tpu.pipeline_mode<synchronous>, transform_indices = @transform_6, window_bounds = array<i64: 1, 1>}, {transform_indices = @transform_7, window_bounds = array<i64: 8, 1>}]} {
    %c0 = arith.constant 0 : index
    %c0_0 = arith.constant 0 : index
    %0 = vector.load %arg1[%c0, %c0_0] : memref<8x32xf32, #tpu.memory_space<vmem>>, vector<8x32xf32>
    %1 = arith.truncf %0 : vector<8x32xf32> to vector<8x32xbf16>
    %c0_1 = arith.constant 0 : index
    %c0_2 = arith.constant 0 : index
    %2 = vector.load %arg2[%c0_1, %c0_2] : memref<32x1024xbf16, #tpu.memory_space<vmem>>, vector<32x1024xbf16>
    %cst = arith.constant dense<0.000000e+00> : vector<8x1024xf32>
    %3 = tpu.matmul %1, %2, %cst {dimension_numbers = #tpu.dot_dimension_numbers<[1], [0], [0], [1], [0, 0, 1, 1], [], []>} : vector<8x32xbf16>, vector<32x1024xbf16>, vector<8x1024xf32> -> vector<8x1024xf32>
    %c0_3 = arith.constant 0 : index
    %c0_4 = arith.constant 0 : index
    %4 = vector.load %arg3[%c0_3, %c0_4] : memref<1x1024xf32, #tpu.memory_space<vmem>>, vector<1x1024xf32>
    %5 = vector.broadcast %4 : vector<1x1024xf32> to vector<8x1024xf32>
    %6 = arith.addf %3, %5 : vector<8x1024xf32>
    %cst_5 = arith.constant 0.000000e+00 : f32
    %7 = vector.broadcast %cst_5 : f32 to vector<8x1024xf32>
    %8 = arith.maximumf %6, %7 : vector<8x1024xf32>
    %9 = arith.truncf %8 : vector<8x1024xf32> to vector<8x1024xbf16>
    %c0_6 = arith.constant 0 : index
    %c0_7 = arith.constant 0 : index
    %10 = vector.load %arg4[%c0_6, %c0_7] : memref<1024x1024xbf16, #tpu.memory_space<vmem>>, vector<1024x1024xbf16>
    %cst_8 = arith.constant dense<0.000000e+00> : vector<8x1024xf32>
    %11 = tpu.matmul %9, %10, %cst_8 {dimension_numbers = #tpu.dot_dimension_numbers<[1], [0], [0], [1], [0, 0, 1, 1], [], []>} : vector<8x1024xbf16>, vector<1024x1024xbf16>, vector<8x1024xf32> -> vector<8x1024xf32>
    %c0_9 = arith.constant 0 : index
    %c0_10 = arith.constant 0 : index
    %12 = vector.load %arg5[%c0_9, %c0_10] : memref<1x1024xf32, #tpu.memory_space<vmem>>, vector<1x1024xf32>
    %13 = vector.broadcast %12 : vector<1x1024xf32> to vector<8x1024xf32>
    %14 = arith.addf %11, %13 : vector<8x1024xf32>
    %cst_11 = arith.constant 0.000000e+00 : f32
    %15 = vector.broadcast %cst_11 : f32 to vector<8x1024xf32>
    %16 = arith.maximumf %14, %15 : vector<8x1024xf32>
    %c0_12 = arith.constant 0 : index
    %c0_13 = arith.constant 0 : index
    %17 = vector.load %arg6[%c0_12, %c0_13] : memref<1x1024xbf16, #tpu.memory_space<vmem>>, vector<1x1024xbf16>
    %18 = arith.extf %17 : vector<1x1024xbf16> to vector<1x1024xf32>
    %19 = vector.broadcast %18 : vector<1x1024xf32> to vector<8x1024xf32>
    %20 = arith.mulf %16, %19 : vector<8x1024xf32>
    %cst_14 = arith.constant dense<0.000000e+00> : vector<8xf32>
    %21 = vector.multi_reduction <add>, %20, %cst_14 [1] : vector<8x1024xf32> to vector<8xf32>
    %22 = vector.shape_cast %21 : vector<8xf32> to vector<8x1xf32>
    %c0_15 = arith.constant 0 : index
    %c0_16 = arith.constant 0 : index
    %23 = vector.load %arg7[%c0_15, %c0_16] : memref<1x1xf32, #tpu.memory_space<vmem>>, vector<1x1xf32>
    %24 = vector.broadcast %23 : vector<1x1xf32> to vector<8x1xf32>
    %25 = arith.addf %22, %24 : vector<8x1xf32>
    %c0_17 = arith.constant 0 : index
    %c0_18 = arith.constant 0 : index
    %26 = vector.load %arg8[%c0_17, %c0_18] : memref<8x1xf32, #tpu.memory_space<vmem>>, vector<8x1xf32>
    tpu.vector_store %arg8[%c0_17, %c0_18], %25 {strides = array<i32>} : memref<8x1xf32, #tpu.memory_space<vmem>>, vector<8x1xf32>,
    return
  }
  func.func @transform_0(%arg0: i32) -> (i32, i32) {
    %c0_i32 = arith.constant 0 : i32
    %c0_i32_0 = arith.constant 0 : i32
    return %arg0, %c0_i32 : i32, i32
  }
  func.func @transform_1(%arg0: i32) -> (i32, i32) {
    %c0_i32 = arith.constant 0 : i32
    %c0_i32_0 = arith.constant 0 : i32
    %c0_i32_1 = arith.constant 0 : i32
    return %c0_i32, %c0_i32_0 : i32, i32
  }
  func.func @transform_2(%arg0: i32) -> (i32, i32) {
    %c0_i32 = arith.constant 0 : i32
    %c0_i32_0 = arith.constant 0 : i32
    %c0_i32_1 = arith.constant 0 : i32
    return %c0_i32, %c0_i32_0 : i32, i32
  }
  func.func @transform_3(%arg0: i32) -> (i32, i32) {
    %c0_i32 = arith.constant 0 : i32
    %c0_i32_0 = arith.constant 0 : i32
    %c0_i32_1 = arith.constant 0 : i32
    return %c0_i32, %c0_i32_0 : i32, i32
  }
  func.func @transform_4(%arg0: i32) -> (i32, i32) {
    %c0_i32 = arith.constant 0 : i32
    %c0_i32_0 = arith.constant 0 : i32
    %c0_i32_1 = arith.constant 0 : i32
    return %c0_i32, %c0_i32_0 : i32, i32
  }
  func.func @transform_5(%arg0: i32) -> (i32, i32) {
    %c0_i32 = arith.constant 0 : i32
    %c0_i32_0 = arith.constant 0 : i32
    %c0_i32_1 = arith.constant 0 : i32
    return %c0_i32, %c0_i32_0 : i32, i32
  }
  func.func @transform_6(%arg0: i32) -> (i32, i32) {
    %c0_i32 = arith.constant 0 : i32
    %c0_i32_0 = arith.constant 0 : i32
    %c0_i32_1 = arith.constant 0 : i32
    return %c0_i32, %c0_i32_0 : i32, i32
  }
  func.func @transform_7(%arg0: i32) -> (i32, i32) {
    %c0_i32 = arith.constant 0 : i32
    %c0_i32_0 = arith.constant 0 : i32
    return %arg0, %c0_i32 : i32, i32
  }
}

module attributes {stable_mosaic.version = 11 : i64} {
  func.func @_discrim_mlp_kernel(%arg0: i32, %arg1: memref<8x32xf32, #tpu.memory_space<vmem>>, %arg2: memref<32x1024xbf16, #tpu.memory_space<vmem>>, %arg3: memref<1x1024xf32, #tpu.memory_space<vmem>>, %arg4: memref<1024x1024xbf16, #tpu.memory_space<vmem>>, %arg5: memref<1x1024xf32, #tpu.memory_space<vmem>>, %arg6: memref<1x1024xbf16, #tpu.memory_space<vmem>>, %arg7: memref<1x1xf32, #tpu.memory_space<vmem>>, %arg8: memref<8x1xf32, #tpu.memory_space<vmem>>) attributes {dimension_semantics = [#tpu.dimension_semantics<parallel>], iteration_bounds = array<i64: 1>, scalar_prefetch = 0 : i64, scratch_operands = 0 : i64, tpu.core_type = #tpu.core_type<tc>, window_params = [{transform_indices = @transform_0, window_bounds = array<i64: 8, 32>}, {pipeline_mode = #tpu.pipeline_mode<synchronous>, transform_indices = @transform_1, window_bounds = array<i64: 32, 1024>}, {pipeline_mode = #tpu.pipeline_mode<synchronous>, transform_indices = @transform_2, window_bounds = array<i64: 1, 1024>}, {pipeline_mode = #tpu.pipeline_mode<synchronous>, transform_indices = @transform_3, window_bounds = array<i64: 1024, 1024>}, {pipeline_mode = #tpu.pipeline_mode<synchronous>, transform_indices = @transform_4, window_bounds = array<i64: 1, 1024>}, {pipeline_mode = #tpu.pipeline_mode<synchronous>, transform_indices = @transform_5, window_bounds = array<i64: 1, 1024>}, {pipeline_mode = #tpu.pipeline_mode<synchronous>, transform_indices = @transform_6, window_bounds = array<i64: 1, 1>}, {transform_indices = @transform_7, window_bounds = array<i64: 8, 1>}]} {
    %c0 = arith.constant 0 : index
    %c0_0 = arith.constant 0 : index
    %0 = vector.load %arg1[%c0, %c0_0] : memref<8x32xf32, #tpu.memory_space<vmem>>, vector<8x32xf32>
    %1 = arith.truncf %0 : vector<8x32xf32> to vector<8x32xbf16>
    %c0_1 = arith.constant 0 : index
    %c0_2 = arith.constant 0 : index
    %2 = vector.load %arg2[%c0_1, %c0_2] : memref<32x1024xbf16, #tpu.memory_space<vmem>>, vector<32x1024xbf16>
    %cst = arith.constant dense<0.000000e+00> : vector<8x1024xf32>
    %3 = tpu.matmul %1, %2, %cst {dimension_numbers = #tpu.dot_dimension_numbers<[1], [0], [0], [1], [0, 0, 1, 1], [], []>} : vector<8x32xbf16>, vector<32x1024xbf16>, vector<8x1024xf32> -> vector<8x1024xf32>
    %c0_3 = arith.constant 0 : index
    %c0_4 = arith.constant 0 : index
    %4 = vector.load %arg3[%c0_3, %c0_4] : memref<1x1024xf32, #tpu.memory_space<vmem>>, vector<1x1024xf32>
    %5 = vector.broadcast %4 : vector<1x1024xf32> to vector<8x1024xf32>
    %6 = arith.addf %3, %5 : vector<8x1024xf32>
    %cst_5 = arith.constant 0.000000e+00 : f32
    %7 = vector.broadcast %cst_5 : f32 to vector<8x1024xf32>
    %8 = arith.maximumf %6, %7 : vector<8x1024xf32>
    %9 = arith.truncf %8 : vector<8x1024xf32> to vector<8x1024xbf16>
    %c0_6 = arith.constant 0 : index
    %c0_7 = arith.constant 0 : index
    %10 = vector.load %arg4[%c0_6, %c0_7] : memref<1024x1024xbf16, #tpu.memory_space<vmem>>, vector<1024x1024xbf16>
    %cst_8 = arith.constant dense<0.000000e+00> : vector<8x1024xf32>
    %11 = tpu.matmul %9, %10, %cst_8 {dimension_numbers = #tpu.dot_dimension_numbers<[1], [0], [0], [1], [0, 0, 1, 1], [], []>} : vector<8x1024xbf16>, vector<1024x1024xbf16>, vector<8x1024xf32> -> vector<8x1024xf32>
    %c0_9 = arith.constant 0 : index
    %c0_10 = arith.constant 0 : index
    %12 = vector.load %arg5[%c0_9, %c0_10] : memref<1x1024xf32, #tpu.memory_space<vmem>>, vector<1x1024xf32>
    %13 = vector.broadcast %12 : vector<1x1024xf32> to vector<8x1024xf32>
    %14 = arith.addf %11, %13 : vector<8x1024xf32>
    %cst_11 = arith.constant 0.000000e+00 : f32
    %15 = vector.broadcast %cst_11 : f32 to vector<8x1024xf32>
    %16 = arith.maximumf %14, %15 : vector<8x1024xf32>
    %c0_12 = arith.constant 0 : index
    %c0_13 = arith.constant 0 : index
    %17 = vector.load %arg6[%c0_12, %c0_13] : memref<1x1024xbf16, #tpu.memory_space<vmem>>, vector<1x1024xbf16>
    %18 = arith.extf %17 : vector<1x1024xbf16> to vector<1x1024xf32>
    %19 = vector.broadcast %18 : vector<1x1024xf32> to vector<8x1024xf32>
    %20 = arith.mulf %16, %19 : vector<8x1024xf32>
    %cst_14 = arith.constant dense<0.000000e+00> : vector<8xf32>
    %21 = vector.multi_reduction <add>, %20, %cst_14 [1] : vector<8x1024xf32> to vector<8xf32>
    %22 = vector.shape_cast %21 : vector<8xf32> to vector<8x1xf32>
    %c0_15 = arith.constant 0 : index
    %c0_16 = arith.constant 0 : index
    %23 = vector.load %arg7[%c0_15, %c0_16] : memref<1x1xf32, #tpu.memory_space<vmem>>, vector<1x1xf32>
    %24 = vector.broadcast %23 : vector<1x1xf32> to vector<8x1xf32>
    %25 = arith.addf %22, %24 : vector<8x1xf32>
    %c0_17 = arith.constant 0 : index
    %c0_18 = arith.constant 0 : index
    %26 = vector.load %arg8[%c0_17, %c0_18] : memref<8x1xf32, #tpu.memory_space<vmem>>, vector<8x1xf32>
    tpu.vector_store %arg8[%c0_17, %c0_18], %25 {strides = array<i32>} : memref<8x1xf32, #tpu.memory_space<vmem>>, vector<8x1xf32>,
    return
  }
  func.func @transform_0(%arg0: i32) -> (i32, i32) {
    %c0_i32 = arith.constant 0 : i32
    %c0_i32_0 = arith.constant 0 : i32
    return %arg0, %c0_i32 : i32, i32
  }
  func.func @transform_1(%arg0: i32) -> (i32, i32) {
    %c0_i32 = arith.constant 0 : i32
    %c0_i32_0 = arith.constant 0 : i32
    %c0_i32_1 = arith.constant 0 : i32
    return %c0_i32, %c0_i32_0 : i32, i32
  }
  func.func @transform_2(%arg0: i32) -> (i32, i32) {
    %c0_i32 = arith.constant 0 : i32
    %c0_i32_0 = arith.constant 0 : i32
    %c0_i32_1 = arith.constant 0 : i32
    return %c0_i32, %c0_i32_0 : i32, i32
  }
  func.func @transform_3(%arg0: i32) -> (i32, i32) {
    %c0_i32 = arith.constant 0 : i32
    %c0_i32_0 = arith.constant 0 : i32
    %c0_i32_1 = arith.constant 0 : i32
    return %c0_i32, %c0_i32_0 : i32, i32
  }
  func.func @transform_4(%arg0: i32) -> (i32, i32) {
    %c0_i32 = arith.constant 0 : i32
    %c0_i32_0 = arith.constant 0 : i32
    %c0_i32_1 = arith.constant 0 : i32
    return %c0_i32, %c0_i32_0 : i32, i32
  }
  func.func @transform_5(%arg0: i32) -> (i32, i32) {
    %c0_i32 = arith.constant 0 : i32
    %c0_i32_0 = arith.constant 0 : i32
    %c0_i32_1 = arith.constant 0 : i32
    return %c0_i32, %c0_i32_0 : i32, i32
  }
  func.func @transform_6(%arg0: i32) -> (i32, i32) {
    %c0_i32 = arith.constant 0 : i32
    %c0_i32_0 = arith.constant 0 : i32
    %c0_i32_1 = arith.constant 0 : i32
    return %c0_i32, %c0_i32_0 : i32, i32
  }
  func.func @transform_7(%arg0: i32) -> (i32, i32) {
    %c0_i32 = arith.constant 0 : i32
    %c0_i32_0 = arith.constant 0 : i32
    return %arg0, %c0_i32 : i32, i32
  }
}

</mosaic_0001>

<bundles_post_ra>
// kernel: tpu_custom_call.1
= control target key start
LH: loop header
LB: loop body
LE: loop exit
PB: predicated region body
PF: predicated region fallthrough
CT: control target
= control target key end

     0   :  { %s5340_s0 = inlined_call_operand.hbm [shape: f32[8,32], index: 0, kind: input, shape index: {}]   ;;  %s5341_s1 = inlined_call_operand.hbm [shape: bf16[32,1024], index: 1, kind: input, shape index: {}]   ;;  %s5342_s2 = inlined_call_operand.hbm [shape: f32[1,1024], index: 2, kind: input, shape index: {}]   ;;  %s5343_s3 = inlined_call_operand.hbm [shape: bf16[1024,1024], index: 3, kind: input, shape index: {}]   ;;  %s5344_s4 = inlined_call_operand.hbm [shape: f32[1,1024], index: 4, kind: input, shape index: {}]   ;;  %s5345_s5 = inlined_call_operand.hbm [shape: bf16[1,1024], index: 5, kind: input, shape index: {}]   ;;  %s5346_s6 = inlined_call_operand.<no memory space> [shape: f32[1,1], index: 6, kind: input, shape index: {}]   ;;  %s5347_s7 = inlined_call_operand.vmem [shape: f32[8,1], index: 7, kind: output, shape index: {}]  }
   0x1   :  { %v12_v0 = vstv %s5346_s6 }
   0x2   :  { %13 = vst [vmem:[#allocation2] sm:$0x1] %v12_v0 }
   0x3   :  { %14 = vsyncpa [#allocation4], 0 }
   0x4   :  { %15 = vsyncpa [#allocation6], 0 }
   0x5   :  { %16 = vsyncpa [#allocation9], 0 }
   0x6   :  { %17 = vsyncpa [#allocation12], 0  ;;  %s5056_s26 = smov [#allocation5]   ;;  %s4916_s30 = scalar_lea.hbm %s5341_s1, 2048 }
   0x7   :  { %s33_s27 = sshll.u32 %s5056_s26, 4  ;;  %p4917_p0 = scmp.ne.s32.totalorder %s5341_s1, %s4916_s30  ;;  %s34_s27 = int_to_ptr.vmem [resolvable:$true] %s33_s27 }
   0x8   :  { %p4920_p1 = scmp.lt.u32.totalorder %s4916_s30, %s5341_s1 }
   0xa   :  { %p4922_p2 = pnand %p4920_p1, %p4917_p0 }
   0xc   :  { %4925 = shalt.err (!%p4922_p2)
}
   0xd   :  { %s4926_s6 = scalar_lea.vmem %s34_s27, 2048  ;;  %p4931_p4 = scmp.lt.s32.totalorder %s34_s27, %s34_s27 }
   0xe   :  { %p4927_p3 = scmp.ne.s32.totalorder %s34_s27, %s4926_s6  ;;  %p4932_p5 = scmp.lt.s32.totalorder %s4926_s6, %s4926_s6 }
  0x10   :  { %p4933_p6 = por %p4932_p5, %p4931_p4 }
  0x12   :  { %p4934_p7 = pnand %p4933_p6, %p4927_p3 }
  0x14   :  { %4937 = shalt.err (!%p4934_p7)
}
  0x15   :  { %s5057_s12 = smov 512   ;;  %s5058_s13 = smov 32  }
  0x16   :  { %39 = dma.hbm_to_vmem [thread:$0]  %s5341_s1, 2048, %s34_s27, [#allocation6], %s5057_s12, %s5057_s12, %s5058_s13  }
  0x17   :  { %s5059_s16 = smov [#allocation8]   ;;  %s5060_s18 = smov [#allocation3]  }
  0x18   :  { %s55_s17 = sshll.u32 %s5059_s16, 4  ;;  %s24_s19 = sshll.u32 %s5060_s18, 4  ;;  %s56_s17 = int_to_ptr.vmem [resolvable:$true] %s55_s17  ;;  %s25_s19 = int_to_ptr.vmem [resolvable:$true] %s24_s19 }
  0x19   :  { %s4938_s22 = scalar_lea.hbm %s5343_s3, 65536 }
  0x1a   :  { %p4939_p8 = scmp.ne.s32.totalorder %s5343_s3, %s4938_s22  ;;  %p4942_p9 = scmp.lt.u32.totalorder %s4938_s22, %s5343_s3 }
  0x1c   :  { %p4944_p10 = pnand %p4942_p9, %p4939_p8 }
  0x1e   :  { %4947 = shalt.err (!%p4944_p10)
}
  0x1f   :  { %s4948_s1 = scalar_lea.vmem %s56_s17, 65536  ;;  %p4953_p12 = scmp.lt.s32.totalorder %s56_s17, %s56_s17 }
  0x20   :  { %p4949_p11 = scmp.ne.s32.totalorder %s56_s17, %s4948_s1  ;;  %p4954_p13 = scmp.lt.s32.totalorder %s4948_s1, %s4948_s1 }
  0x22   :  { %p4955_p0 = por %p4954_p13, %p4953_p12 }
  0x24   :  { %p4956_p1 = pnand %p4955_p0, %p4949_p11 }
  0x26   :  { %4959 = shalt.err (!%p4956_p1)
}
  0x27   :  { %61 = dma.hbm_to_vmem [thread:$0]  %s5343_s3, 65536, %s56_s17, [#allocation9], %s5057_s12, %s5057_s12, %s5058_s13  }
  0x28   :  { %s4960_s8 = scalar_lea.hbm %s5340_s0, 128 }
  0x29   :  { %p4961_p2 = scmp.ne.s32.totalorder %s5340_s0, %s4960_s8  ;;  %p4964_p3 = scmp.lt.u32.totalorder %s4960_s8, %s5340_s0 }
  0x2b   :  { %p4966_p4 = pnand %p4964_p3, %p4961_p2 }
  0x2d   :  { %4969 = shalt.err (!%p4966_p4)
}
  0x2e   :  { %s4970_s14 = scalar_lea.vmem %s25_s19, 128  ;;  %p4975_p6 = scmp.lt.s32.totalorder %s25_s19, %s25_s19 }
  0x2f   :  { %p4971_p5 = scmp.ne.s32.totalorder %s25_s19, %s4970_s14  ;;  %p4976_p7 = scmp.lt.s32.totalorder %s4970_s14, %s4970_s14 }
  0x31   :  { %p4977_p8 = por %p4976_p7, %p4975_p6 }
  0x33   :  { %p4978_p9 = pnand %p4977_p8, %p4971_p5 }
  0x35   :  { %4981 = shalt.err (!%p4978_p9)
}
  0x36   :  { %27 = dma.hbm_to_vmem [thread:$0]  %s5340_s0, 128, %s25_s19, [#allocation4]  }
  0x37   :  { %s5061_s13 = smov [#allocation7]   ;;  %s5062_s16 = smov [#allocation10]  }
  0x38   :  { %s46_s15 = sshll.u32 %s5061_s13, 4  ;;  %s68_s17 = sshll.u32 %s5062_s16, 4  ;;  %s47_s15 = int_to_ptr.vmem [resolvable:$true] %s46_s15  ;;  %s69_s17 = int_to_ptr.vmem [resolvable:$true] %s68_s17 }
  0x39   :  { %s4982_s21 = scalar_lea.hbm %s5342_s2, 128 }
  0x3a   :  { %p4983_p10 = scmp.ne.s32.totalorder %s5342_s2, %s4982_s21  ;;  %p4986_p11 = scmp.lt.u32.totalorder %s4982_s21, %s5342_s2 }
  0x3c   :  { %p4988_p12 = pnand %p4986_p11, %p4983_p10 }
  0x3e   :  { %4991 = shalt.err (!%p4988_p12)
}
  0x3f   :  { %s4992_s0 = scalar_lea.vmem %s47_s15, 128  ;;  %p4997_p0 = scmp.lt.s32.totalorder %s47_s15, %s47_s15 }
  0x40   :  { %p4993_p13 = scmp.ne.s32.totalorder %s47_s15, %s4992_s0  ;;  %p4998_p1 = scmp.lt.s32.totalorder %s4992_s0, %s4992_s0 }
  0x42   :  { %p4999_p2 = por %p4998_p1, %p4997_p0 }
  0x44   :  { %p5000_p3 = pnand %p4999_p2, %p4993_p13 }
  0x46   :  { %5003 = shalt.err (!%p5000_p3)
}
  0x47   :  { %49 = dma.hbm_to_vmem [thread:$0]  %s5342_s2, 128, %s47_s15, [#allocation6]  }
  0x48   :  { %s5004_s28 = scalar_lea.hbm %s5344_s4, 128 }
  0x49   :  { %p5005_p4 = scmp.ne.s32.totalorder %s5344_s4, %s5004_s28  ;;  %p5008_p5 = scmp.lt.u32.totalorder %s5004_s28, %s5344_s4 }
  0x4b   :  { %p5010_p6 = pnand %p5008_p5, %p5005_p4 }
  0x4d   :  { %5013 = shalt.err (!%p5010_p6)
}
  0x4e   :  { %s5014_s10 = scalar_lea.vmem %s69_s17, 128  ;;  %p5019_p8 = scmp.lt.s32.totalorder %s69_s17, %s69_s17 }
  0x4f   :  { %p5015_p7 = scmp.ne.s32.totalorder %s69_s17, %s5014_s10  ;;  %p5020_p9 = scmp.lt.s32.totalorder %s5014_s10, %s5014_s10 }
  0x51   :  { %p5021_p10 = por %p5020_p9, %p5019_p8 }
  0x53   :  { %p5022_p11 = pnand %p5021_p10, %p5015_p7 }
  0x55   :  { %5025 = shalt.err (!%p5022_p11)
}
  0x56   :  { %71 = dma.hbm_to_vmem [thread:$0]  %s5344_s4, 128, %s69_s17, [#allocation9]  }
  0x57   :  { %s5063_s6 = smov [#allocation11]   ;;  %s5026_s13 = scalar_lea.hbm %s5345_s5, 128 }
  0x58   :  { %s78_s14 = sshll.u32 %s5063_s6, 4  ;;  %p5027_p12 = scmp.ne.s32.totalorder %s5345_s5, %s5026_s13  ;;  %s79_s14 = int_to_ptr.vmem [resolvable:$true] %s78_s14 }
  0x59   :  { %p5030_p13 = scmp.lt.u32.totalorder %s5026_s13, %s5345_s5 }
  0x5b   :  { %p5032_p0 = pnand %p5030_p13, %p5027_p12 }
  0x5d   :  { %5035 = shalt.err (!%p5032_p0)
}
  0x5e   :  { %s5036_s21 = scalar_lea.vmem %s79_s14, 128  ;;  %p5041_p2 = scmp.lt.s32.totalorder %s79_s14, %s79_s14 }
  0x5f   :  { %p5037_p1 = scmp.ne.s32.totalorder %s79_s14, %s5036_s21  ;;  %p5042_p3 = scmp.lt.s32.totalorder %s5036_s21, %s5036_s21 }
  0x61   :  { %p5043_p4 = por %p5042_p3, %p5041_p2 }
  0x63   :  { %p5044_p5 = pnand %p5043_p4, %p5037_p1 }
  0x65   :  { %5047 = shalt.err (!%p5044_p5)
}
  0x66   :  { %81 = dma.hbm_to_vmem [thread:$0]  %s5345_s5, 128, %s79_s14, [#allocation12]  }
  0x67   :  { %5048 = dma.done.wait [#allocation4], 128  }
  0x68   :  { %5049 = vsyncadd [#allocation4], 4294967168 }
  0x69   :  { %5050 = dma.done.wait [#allocation6], 2176  }
  0x6a   :  { %5051 = vsyncadd [#allocation6], 4294965120 }
  0x6b   :  { %5052 = dma.done.wait [#allocation9], 65664  }
  0x6c   :  { %5053 = vsyncadd [#allocation9], 4294901632 }
  0x6d   :  { %5054 = dma.done.wait [#allocation12], 128  }
  0x6e   :  { %5055 = vsyncadd [#allocation12], 4294967168  ;;  %v5064_v1 = vmov 0   ;;  %v105_v2 = vld [vmem:[#allocation5] sm:$0xff]  ;;  %v106_v8 = vld [vmem:[#allocation5 + $0x8] sm:$0xff]  ;;  %vm243_vm0 = vcmask 261120  }
  0x6f   :  { %279 = vmatprep.mubr.bf16.mxu0 %v5064_v1  ;;  %320 = vmatprep.mubr.bf16.mxu1 %v5064_v1  ;;  %v109_v3 = vld [vmem:[#allocation5 + $0x20] sm:$0xff]  ;;  %v110_v10 = vld [vmem:[#allocation5 + $0x28] sm:$0xff]  ;;  %v107_v16 = vld [vmem:[#allocation5 + $0x10] sm:$0xff]  ;;  %vm4307_vm1 = vcmask 7168  }
  0x70   :  { %v113_v4 = vld [vmem:[#allocation5 + $0x40] sm:$0xff]  ;;  %v4318_v5 = vcombine.high %v105_v2, %v109_v3  ;;  %v4317_v6 = vcombine.low %v105_v2, %v109_v3  ;;  %v114_v11 = vld [vmem:[#allocation5 + $0x48] sm:$0xff]  ;;  %v4320_v13 = vcombine.high %v106_v8, %v110_v10  ;;  %v4319_v14 = vcombine.low %v106_v8, %v110_v10  ;;  %v111_v17 = vld [vmem:[#allocation5 + $0x30] sm:$0xff] }
  0x71   :  { %v117_v7 = vld [vmem:[#allocation5 + $0x60] sm:$0xff]  ;;  %v118_v12 = vld [vmem:[#allocation5 + $0x68] sm:$0xff]  ;;  %v103_v19 = vld [vmem:[#allocation3] sm:$0xff]  ;;  %v4322_v22 = vcombine.high %v107_v16, %v111_v17  ;;  %v4321_v28 = vcombine.low %v107_v16, %v111_v17 }
  0x72   :  { %v4326_v9 = vcombine.high %v113_v4, %v117_v7  ;;  %247 = vmatprep.subr.bf16.mxu0 %v4318_v5  ;;  %v4328_v15 = vcombine.high %v114_v11, %v118_v12  ;;  %v4325_v18 = vcombine.low %v113_v4, %v117_v7  ;;  %v108_v20 = vld [vmem:[#allocation5 + $0x18] sm:$0xff]  ;;  %288 = vmatprep.subr.bf16.mxu1 %v4320_v13  ;;  %v115_v24 = vld [vmem:[#allocation5 + $0x50] sm:$0xff]  ;;  %v427_v33 = vld [vmem:[#allocation8] sm:$0xff] }
  0x73   :  { %248 = vmatpush1.bf16.msra.mxu0 %v4317_v6  ;;  %v112_v21 = vld [vmem:[#allocation5 + $0x38] sm:$0xff]  ;;  %289 = vmatpush1.bf16.msra.mxu1 %v4319_v14  ;;  %v4327_v23 = vcombine.low %v114_v11, %v118_v12  ;;  %v119_v25 = vld [vmem:[#allocation5 + $0x70] sm:$0xff]  ;;  %v104_v26 = vpack.c.bf16 %v103_v19, %v103_v19  ;;  %v431_v34 = vld [vmem:[#allocation8 + $0x20] sm:$0xff] }
  0x74   :  { %249 = vmatprep.subr.bf16.mxu0 %v4326_v9  ;;  %290 = vmatprep.subr.bf16.mxu1 %v4328_v15  ;;  %v4324_v27 = vcombine.high %v108_v20, %v112_v21  ;;  %v116_v29 = vld [vmem:[#allocation5 + $0x58] sm:$0xff]  ;;  %v4330_v31 = vcombine.high %v115_v24, %v119_v25  ;;  %v4323_v32 = vcombine.low %v108_v20, %v112_v21  ;;  %v428_v37 = vld [vmem:[#allocation8 + $0x8] sm:$0xff]  ;;  %v435_v41 = vld [vmem:[#allocation8 + $0x40] sm:$0xff] }
  0x75   :  { %v120_v30 = vld [vmem:[#allocation5 + $0x78] sm:$0xff]  ;;  %v4329_v36 = vcombine.low %v115_v24, %v119_v25  ;;  %v432_v38 = vld [vmem:[#allocation8 + $0x28] sm:$0xff]  ;;  %v4338_v39 = vcombine.high %v427_v33, %v431_v34  ;;  %v439_v42 = vld [vmem:[#allocation8 + $0x60] sm:$0xff]  ;;  %v4337_v44 = vcombine.low %v427_v33, %v431_v34 }
  0x76   :  { %v4332_v35 = vcombine.high %v116_v29, %v120_v30  ;;  %v4331_v40 = vcombine.low %v116_v29, %v120_v30  ;;  %v4340_v43 = vcombine.high %v428_v37, %v432_v38  ;;  %v436_v45 = vld [vmem:[#allocation8 + $0x48] sm:$0xff]  ;;  %v4346_v47 = vcombine.high %v435_v41, %v439_v42  ;;  %v443_v49 = vld [vmem:[#allocation8 + $0x80] sm:$0xff] }
  0x77   :  { %250 = vmatpush1.bf16.msra.mxu0 %v4325_v18  ;;  %291 = vmatpush1.bf16.msra.mxu1 %v4327_v23  ;;  %v440_v46 = vld [vmem:[#allocation8 + $0x68] sm:$0xff]  ;;  %v4339_v48 = vcombine.low %v428_v37, %v432_v38  ;;  %v447_v50 = vld [vmem:[#allocation8 + $0xa0] sm:$0xff]  ;;  %v4345_v52 = vcombine.low %v435_v41, %v439_v42 }
  0x78   :  { %329 = vmatprep.subr.bf16.mxu0 %v4322_v22  ;;  %370 = vmatprep.subr.bf16.mxu1 %v4324_v27  ;;  %v4348_v51 = vcombine.high %v436_v45, %v440_v46  ;;  %v444_v53 = vld [vmem:[#allocation8 + $0x88] sm:$0xff]  ;;  %v4354_v55 = vcombine.high %v443_v49, %v447_v50  ;;  %v4347_v56 = vcombine.low %v436_v45, %v440_v46  ;;  %v451_v57 = vld [vmem:[#allocation8 + $0xc0] sm:$0xff] }
  0x79   :  { %v448_v54 = vld [vmem:[#allocation8 + $0xa8] sm:$0xff]  ;;  %v455_v58 = vld [vmem:[#allocation8 + $0xe0] sm:$0xff]  ;;  %v4353_v60 = vcombine.low %v443_v49, %v447_v50 }
  0x7a   :  { %4333 = vmatmul.mubr.msk.bf16.vlgmr.msra.gmra.mrb[0].mxu0 %vm243_vm0, %v104_v26  ;;  %4334 = vmatmul.mubr.msk.bf16.vlgmr.msra.gmra.mrb[0].mxu1 %vm243_vm0, %v104_v26  ;;  %v4356_v59 = vcombine.high %v444_v53, %v448_v54  ;;  %v452_v61 = vld [vmem:[#allocation8 + $0xc8] sm:$0xff]  ;;  %v4362_v63 = vcombine.high %v451_v57, %v455_v58  ;;  %v4355_v0 = vcombine.low %v444_v53, %v448_v54  ;;  %v463_v2 = vld [vmem:[#allocation8 + $0x120] sm:$0xff] }
  0x7b   :  { %330 = vmatpush1.bf16.msra.mxu0 %v4321_v28  ;;  %361 = vmatprep.mubr.bf16.mxu0 %v5064_v1  ;;  %v456_v62 = vld [vmem:[#allocation8 + $0xe8] sm:$0xff]  ;;  %v4361_v4 = vcombine.low %v451_v57, %v455_v58  ;;  %v467_v9 = vld [vmem:[#allocation8 + $0x140] sm:$0xff] }
  0x7c   :  { %331 = vmatprep.subr.bf16.mxu0 %v4330_v31  ;;  %371 = vmatpush1.bf16.msra.mxu1 %v4323_v32  ;;  %v4364_v3 = vcombine.high %v452_v61, %v456_v62  ;;  %v460_v5 = vld [vmem:[#allocation8 + $0x108] sm:$0xff]  ;;  %v4363_v8 = vcombine.low %v452_v61, %v456_v62  ;;  %v471_v10 = vld [vmem:[#allocation8 + $0x160] sm:$0xff] }
  0x7d   :  { %402 = vmatprep.mubr.bf16.mxu1 %v5064_v1  ;;  %372 = vmatprep.subr.bf16.mxu1 %v4332_v35  ;;  %v459_v1 = vld [vmem:[#allocation8 + $0x100] sm:$0xff]  ;;  %v464_v6 = vld [vmem:[#allocation8 + $0x128] sm:$0xff]  ;;  %v4378_v15 = vcombine.high %v467_v9, %v471_v10  ;;  %v4377_v20 = vcombine.low %v467_v9, %v471_v10 }
  0x7e   :  { %v4370_v7 = vcombine.high %v459_v1, %v463_v2  ;;  %v4372_v11 = vcombine.high %v460_v5, %v464_v6  ;;  %v4369_v12 = vcombine.low %v459_v1, %v463_v2  ;;  %v468_v13 = vld [vmem:[#allocation8 + $0x148] sm:$0xff]  ;;  %v4371_v16 = vcombine.low %v460_v5, %v464_v6  ;;  %v475_v17 = vld [vmem:[#allocation8 + $0x180] sm:$0xff] }
  0x7f   :  { %332 = vmatpush1.bf16.msra.mxu0 %v4329_v36  ;;  %v472_v14 = vld [vmem:[#allocation8 + $0x168] sm:$0xff]  ;;  %v479_v18 = vld [vmem:[#allocation8 + $0x1a0] sm:$0xff] }
  0x80   :  { %3541 = vmatprep.subr.bf16.mxu0 %v4338_v39  ;;  %373 = vmatpush1.bf16.msra.mxu1 %v4331_v40  ;;  %v4380_v19 = vcombine.high %v468_v13, %v472_v14  ;;  %v476_v21 = vld [vmem:[#allocation8 + $0x188] sm:$0xff]  ;;  %v4386_v23 = vcombine.high %v475_v17, %v479_v18  ;;  %v4379_v24 = vcombine.low %v468_v13, %v472_v14  ;;  %v483_v25 = vld [vmem:[#allocation8 + $0x1c0] sm:$0xff] }
  0x81   :  { %3705 = vmatprep.subr.bf16.mxu1 %v4340_v43  ;;  %v480_v22 = vld [vmem:[#allocation8 + $0x1a8] sm:$0xff]  ;;  %v4385_v28 = vcombine.low %v475_v17, %v479_v18  ;;  %v491_v33 = vld [vmem:[#allocation8 + $0x200] sm:$0xff] }
  0x82   :  { %4335 = vmatmul.mubr.msk.bf16.vlgmr.msra.gmra.mrb[4].mxu0 %vm243_vm0, %v104_v26  ;;  %v4388_v27 = vcombine.high %v476_v21, %v480_v22  ;;  %v484_v29 = vld [vmem:[#allocation8 + $0x1c8] sm:$0xff]  ;;  %v4387_v32 = vcombine.low %v476_v21, %v480_v22  ;;  %v495_v34 = vld [vmem:[#allocation8 + $0x220] sm:$0xff] }
  0x83   :  { %3542 = vmatpush1.bf16.msra.mxu0 %v4337_v44  ;;  %4336 = vmatmul.mubr.msk.bf16.vlgmr.msra.gmra.mrb[4].mxu1 %vm243_vm0, %v104_v26  ;;  %v487_v26 = vld [vmem:[#allocation8 + $0x1e0] sm:$0xff]  ;;  %v488_v30 = vld [vmem:[#allocation8 + $0x1e8] sm:$0xff]  ;;  %v4402_v39 = vcombine.high %v491_v33, %v495_v34  ;;  %v4401_v44 = vcombine.low %v491_v33, %v495_v34 }
  0x84   :  { %3543 = vmatprep.subr.bf16.mxu0 %v4346_v47  ;;  %3706 = vmatpush1.bf16.msra.mxu1 %v4339_v48  ;;  %v4394_v31 = vcombine.high %v483_v25, %v487_v26  ;;  %v4396_v35 = vcombine.high %v484_v29, %v488_v30  ;;  %v4393_v36 = vcombine.low %v483_v25, %v487_v26  ;;  %v492_v37 = vld [vmem:[#allocation8 + $0x208] sm:$0xff]  ;;  %v499_v41 = vld [vmem:[#allocation8 + $0x240] sm:$0xff] }
  0x85   :  { %3707 = vmatprep.subr.bf16.mxu1 %v4348_v51  ;;  %v496_v38 = vld [vmem:[#allocation8 + $0x228] sm:$0xff]  ;;  %v4395_v40 = vcombine.low %v484_v29, %v488_v30  ;;  %v503_v42 = vld [vmem:[#allocation8 + $0x260] sm:$0xff] }
  0x86   :  { %v4404_v43 = vcombine.high %v492_v37, %v496_v38  ;;  %v500_v45 = vld [vmem:[#allocation8 + $0x248] sm:$0xff]  ;;  %v4410_v47 = vcombine.high %v499_v41, %v503_v42  ;;  %v4403_v48 = vcombine.low %v492_v37, %v496_v38  ;;  %v507_v49 = vld [vmem:[#allocation8 + $0x280] sm:$0xff] }
  0x87   :  { %3544 = vmatpush1.bf16.msra.mxu0 %v4345_v52  ;;  %v504_v46 = vld [vmem:[#allocation8 + $0x268] sm:$0xff]  ;;  %v511_v50 = vld [vmem:[#allocation8 + $0x2a0] sm:$0xff]  ;;  %v4409_v52 = vcombine.low %v499_v41, %v503_v42 }
  0x88   :  { %3545 = vmatprep.subr.bf16.mxu0 %v4354_v55  ;;  %3708 = vmatpush1.bf16.msra.mxu1 %v4347_v56  ;;  %v4412_v51 = vcombine.high %v500_v45, %v504_v46  ;;  %v508_v53 = vld [vmem:[#allocation8 + $0x288] sm:$0xff]  ;;  %v4418_v55 = vcombine.high %v507_v49, %v511_v50  ;;  %v4411_v56 = vcombine.low %v500_v45, %v504_v46  ;;  %v515_v57 = vld [vmem:[#allocation8 + $0x2c0] sm:$0xff] }
  0x89   :  { %3709 = vmatprep.subr.bf16.mxu1 %v4356_v59  ;;  %v512_v54 = vld [vmem:[#allocation8 + $0x2a8] sm:$0xff]  ;;  %v519_v58 = vld [vmem:[#allocation8 + $0x2e0] sm:$0xff] }
  0x8a   :  { %v4420_v59 = vcombine.high %v508_v53, %v512_v54  ;;  %v516_v61 = vld [vmem:[#allocation8 + $0x2c8] sm:$0xff]  ;;  %v523_v1 = vld [vmem:[#allocation8 + $0x300] sm:$0xff] }
  0x8b   :  { %3546 = vmatpush1.bf16.msra.mxu0 %v4353_v60  ;;  %v4417_v60 = vcombine.low %v507_v49, %v511_v50  ;;  %v520_v62 = vld [vmem:[#allocation8 + $0x2e8] sm:$0xff]  ;;  %v527_v2 = vld [vmem:[#allocation8 + $0x320] sm:$0xff] }
  0x8c   :  { %3547 = vmatprep.subr.bf16.mxu0 %v4362_v63  ;;  %3710 = vmatpush1.bf16.msra.mxu1 %v4355_v0  ;;  %v4426_v63 = vcombine.high %v515_v57, %v519_v58  ;;  %v4419_v0 = vcombine.low %v508_v53, %v512_v54  ;;  %v524_v5 = vld [vmem:[#allocation8 + $0x308] sm:$0xff]  ;;  %v531_v9 = vld [vmem:[#allocation8 + $0x340] sm:$0xff] }
  0x8d   :  { %3711 = vmatprep.subr.bf16.mxu1 %v4364_v3  ;;  %v4428_v3 = vcombine.high %v516_v61, %v520_v62  ;;  %v528_v6 = vld [vmem:[#allocation8 + $0x328] sm:$0xff]  ;;  %v535_v10 = vld [vmem:[#allocation8 + $0x360] sm:$0xff] }
  0x8e   :  { %v532_v13 = vld [vmem:[#allocation8 + $0x348] sm:$0xff]  ;;  %v4441_v18 = vcombine.low %v531_v9, %v535_v10  ;;  %v543_v21 = vld [vmem:[#allocation8 + $0x3a0] sm:$0xff] }
  0x8f   :  { %3548 = vmatpush1.bf16.msra.mxu0 %v4361_v4  ;;  %v4425_v4 = vcombine.low %v515_v57, %v519_v58  ;;  %v536_v14 = vld [vmem:[#allocation8 + $0x368] sm:$0xff]  ;;  %v551_v29 = vld [vmem:[#allocation8 + $0x3e0] sm:$0xff] }
  0x90   :  { %3549 = vmatprep.subr.bf16.mxu0 %v4370_v7  ;;  %3712 = vmatpush1.bf16.msra.mxu1 %v4363_v8  ;;  %v4434_v7 = vcombine.high %v523_v1, %v527_v2  ;;  %v4427_v8 = vcombine.low %v516_v61, %v520_v62  ;;  %v4444_v17 = vcombine.high %v532_v13, %v536_v14  ;;  %v540_v22 = vld [vmem:[#allocation8 + $0x388] sm:$0xff]  ;;  %v559_v37 = vld [vmem:[#allocation8 + $0x420] sm:$0xff] }
  0x91   :  { %3713 = vmatprep.subr.bf16.mxu1 %v4372_v11  ;;  %v4436_v11 = vcombine.high %v524_v5, %v528_v6  ;;  %v548_v30 = vld [vmem:[#allocation8 + $0x3c8] sm:$0xff]  ;;  %v563_v61 = vld [vmem:[#allocation8 + $0x440] sm:$0xff] }
  0x92   :  { %v556_v38 = vld [vmem:[#allocation8 + $0x408] sm:$0xff] }
  0x93   :  { %3550 = vmatpush1.bf16.msra.mxu0 %v4369_v12  ;;  %v4433_v12 = vcombine.low %v523_v1, %v527_v2  ;;  %v564_v1 = vld [vmem:[#allocation8 + $0x448] sm:$0xff] }
  0x94   :  { %3551 = vmatprep.subr.bf16.mxu0 %v4378_v15  ;;  %3714 = vmatpush1.bf16.msra.mxu1 %v4371_v16  ;;  %v4442_v15 = vcombine.high %v531_v9, %v535_v10  ;;  %v4435_v16 = vcombine.low %v524_v5, %v528_v6  ;;  %v568_v2 = vld [vmem:[#allocation8 + $0x468] sm:$0xff] }
  0x95   :  { %3715 = vmatprep.subr.bf16.mxu1 %v4380_v19  ;;  %v4443_v19 = vcombine.low %v532_v13, %v536_v14  ;;  %v4476_v10 = vcombine.high %v564_v1, %v568_v2  ;;  %v572_v13 = vld [vmem:[#allocation8 + $0x488] sm:$0xff] }
  0x96   :  { %v576_v14 = vld [vmem:[#allocation8 + $0x4a8] sm:$0xff] }
  0x97   :  { %3552 = vmatpush1.bf16.msra.mxu0 %v4377_v20  ;;  %v539_v20 = vld [vmem:[#allocation8 + $0x380] sm:$0xff] }
  0x98   :  { %3553 = vmatprep.subr.bf16.mxu0 %v4386_v23  ;;  %3716 = vmatpush1.bf16.msra.mxu1 %v4379_v24  ;;  %v4450_v23 = vcombine.high %v539_v20, %v543_v21  ;;  %v544_v24 = vld [vmem:[#allocation8 + $0x3a8] sm:$0xff]  ;;  %v4449_v25 = vcombine.low %v539_v20, %v543_v21 }
  0x99   :  { %3717 = vmatprep.subr.bf16.mxu1 %v4388_v27  ;;  %v4451_v26 = vcombine.low %v540_v22, %v544_v24  ;;  %v4452_v27 = vcombine.high %v540_v22, %v544_v24  ;;  %v4484_v22 = vcombine.high %v572_v13, %v576_v14 }
  0x9b   :  { %3554 = vmatpush1.bf16.msra.mxu0 %v4385_v28  ;;  %v547_v28 = vld [vmem:[#allocation8 + $0x3c0] sm:$0xff] }
  0x9c   :  { %3555 = vmatprep.subr.bf16.mxu0 %v4394_v31  ;;  %3718 = vmatpush1.bf16.msra.mxu1 %v4387_v32  ;;  %v4458_v31 = vcombine.high %v547_v28, %v551_v29  ;;  %v552_v32 = vld [vmem:[#allocation8 + $0x3e8] sm:$0xff]  ;;  %v4457_v33 = vcombine.low %v547_v28, %v551_v29  ;;  %v4483_v29 = vcombine.low %v572_v13, %v576_v14 }
  0x9d   :  { %3719 = vmatprep.subr.bf16.mxu1 %v4396_v35  ;;  %v4459_v34 = vcombine.low %v548_v30, %v552_v32  ;;  %v4460_v35 = vcombine.high %v548_v30, %v552_v32  ;;  %v587_v32 = vld [vmem:[#allocation8 + $0x500] sm:$0xff]  ;;  %v620_v13 = vld [vmem:[#allocation8 + $0x608] sm:$0xff] }
  0x9e   :  { %v624_v14 = vld [vmem:[#allocation8 + $0x628] sm:$0xff] }
  0x9f   :  { %3556 = vmatpush1.bf16.msra.mxu0 %v4393_v36  ;;  %v555_v36 = vld [vmem:[#allocation8 + $0x400] sm:$0xff] }
  0xa0   :  { %3557 = vmatprep.subr.bf16.mxu0 %v4402_v39  ;;  %3720 = vmatpush1.bf16.msra.mxu1 %v4395_v40  ;;  %v4466_v39 = vcombine.high %v555_v36, %v559_v37  ;;  %v560_v40 = vld [vmem:[#allocation8 + $0x428] sm:$0xff]  ;;  %v4465_v41 = vcombine.low %v555_v36, %v559_v37 }
  0xa1   :  { %3721 = vmatprep.subr.bf16.mxu1 %v4404_v43  ;;  %v4467_v42 = vcombine.low %v556_v38, %v560_v40  ;;  %v4468_v43 = vcombine.high %v556_v38, %v560_v40  ;;  %v595_v40 = vld [vmem:[#allocation8 + $0x540] sm:$0xff] }
  0xa3   :  { %3558 = vmatpush1.bf16.msra.mxu0 %v4401_v44  ;;  %v123_v44 = vlaneseq }
  0xa4   :  { %3559 = vmatprep.subr.bf16.mxu0 %v4410_v47  ;;  %3722 = vmatpush1.bf16.msra.mxu1 %v4403_v48  ;;  %v5189_v47 = vld [vmem:[#allocation7] sm:$0xff] }
  0xa5   :  { %3723 = vmatprep.subr.bf16.mxu1 %v4412_v51  ;;  %v5184_v45 = vshrl.u32 %v123_v44, 7 }
  0xa7   :  { %3560 = vmatpush1.bf16.msra.mxu0 %v4409_v52  ;;  %v5187_v46 = vsub.s32 0, %v5184_v45  ;;  %v129_v48 = vsub.s32 1, %v5184_v45  ;;  %v137_v49 = vsub.s32 3, %v5184_v45 }
  0xa8   :  { %3561 = vmatprep.subr.bf16.mxu0 %v4418_v55  ;;  %3724 = vmatpush1.bf16.msra.mxu1 %v4411_v56 }
  0xa9   :  { %3725 = vmatprep.subr.bf16.mxu1 %v4420_v59  ;;  %v126_v50 = vrot.slane %v5189_v47, %v5187_v46  ;;  %v130_v51 = vrot.slane %v5189_v47, %v129_v48  ;;  %v138_v53 = vrot.slane %v5189_v47, %v137_v49 }
  0xab   :  { %3562 = vmatpush1.bf16.msra.mxu0 %v4417_v60 }
  0xac   :  { %3563 = vmatprep.subr.bf16.mxu0 %v4426_v63  ;;  %3726 = vmatpush1.bf16.msra.mxu1 %v4419_v0  ;;  %v567_v0 = vld [vmem:[#allocation8 + $0x460] sm:$0xff] }
  0xad   :  { %3727 = vmatprep.subr.bf16.mxu1 %v4428_v3  ;;  %v4474_v9 = vcombine.high %v563_v61, %v567_v0 }
  0xaf   :  { %3564 = vmatpush1.bf16.msra.mxu0 %v4425_v4 }
  0xb0   :  { %3565 = vmatprep.subr.bf16.mxu0 %v4434_v7  ;;  %3728 = vmatpush1.bf16.msra.mxu1 %v4427_v8 }
  0xb1   :  { %3729 = vmatprep.subr.bf16.mxu1 %v4436_v11  ;;  %v571_v11 = vld [vmem:[#allocation8 + $0x480] sm:$0xff] }
  0xb3   :  { %3566 = vmatpush1.bf16.msra.mxu0 %v4433_v12  ;;  %v575_v12 = vld [vmem:[#allocation8 + $0x4a0] sm:$0xff] }
  0xb4   :  { %3567 = vmatprep.subr.bf16.mxu0 %v4442_v15  ;;  %3730 = vmatpush1.bf16.msra.mxu1 %v4435_v16  ;;  %v4482_v21 = vcombine.high %v571_v11, %v575_v12  ;;  %v4481_v28 = vcombine.low %v571_v11, %v575_v12  ;;  %v623_v12 = vld [vmem:[#allocation8 + $0x620] sm:$0xff] }
  0xb5   :  { %3731 = vmatprep.subr.bf16.mxu1 %v4444_v17 }
  0xb7   :  { %3568 = vmatpush1.bf16.msra.mxu0 %v4441_v18  ;;  %v4473_v18 = vcombine.low %v563_v61, %v567_v0  ;;  %v615_v0 = vld [vmem:[#allocation8 + $0x5e0] sm:$0xff] }
  0xb8   :  { %3732 = vmatpush1.bf16.msra.mxu1 %v4443_v19  ;;  %3569 = vmatprep.subr.bf16.mxu0 %v4450_v23  ;;  %v4475_v19 = vcombine.low %v564_v1, %v568_v2  ;;  %v579_v23 = vld [vmem:[#allocation8 + $0x4c0] sm:$0xff]  ;;  %v612_v1 = vld [vmem:[#allocation8 + $0x5c8] sm:$0xff] }
  0xb9   :  { %3733 = vmatprep.subr.bf16.mxu1 %v4452_v27  ;;  %v584_v27 = vld [vmem:[#allocation8 + $0x4e8] sm:$0xff] }
  0xba   :  { %v616_v2 = vld [vmem:[#allocation8 + $0x5e8] sm:$0xff] }
  0xbb   :  { %3570 = vmatpush1.bf16.msra.mxu0 %v4449_v25  ;;  %v583_v25 = vld [vmem:[#allocation8 + $0x4e0] sm:$0xff] }
  0xbc   :  { %3734 = vmatpush1.bf16.msra.mxu1 %v4451_v26  ;;  %3571 = vmatprep.subr.bf16.mxu0 %v4458_v31  ;;  %v580_v26 = vld [vmem:[#allocation8 + $0x4c8] sm:$0xff]  ;;  %v4490_v30 = vcombine.high %v579_v23, %v583_v25  ;;  %v4489_v36 = vcombine.low %v579_v23, %v583_v25  ;;  %v627_v23 = vld [vmem:[#allocation8 + $0x640] sm:$0xff] }
  0xbd   :  { %3735 = vmatprep.subr.bf16.mxu1 %v4460_v35  ;;  %v4492_v31 = vcombine.high %v580_v26, %v584_v27  ;;  %v592_v35 = vld [vmem:[#allocation8 + $0x528] sm:$0xff]  ;;  %v4491_v37 = vcombine.low %v580_v26, %v584_v27 }
  0xbe   :  { %v628_v25 = vld [vmem:[#allocation8 + $0x648] sm:$0xff] }
  0xbf   :  { %3572 = vmatpush1.bf16.msra.mxu0 %v4457_v33  ;;  %v591_v33 = vld [vmem:[#allocation8 + $0x520] sm:$0xff]  ;;  %v632_v26 = vld [vmem:[#allocation8 + $0x668] sm:$0xff] }
  0xc0   :  { %3736 = vmatpush1.bf16.msra.mxu1 %v4459_v34  ;;  %3582 = vmatprep.subr.bf16.mxu0 %v4466_v39  ;;  %v588_v34 = vld [vmem:[#allocation8 + $0x508] sm:$0xff]  ;;  %v4498_v38 = vcombine.high %v587_v32, %v591_v33  ;;  %v4497_v44 = vcombine.low %v587_v32, %v591_v33  ;;  %v639_v32 = vld [vmem:[#allocation8 + $0x6a0] sm:$0xff] }
  0xc1   :  { %3746 = vmatprep.subr.bf16.mxu1 %v4468_v43  ;;  %v4500_v39 = vcombine.high %v588_v34, %v592_v35  ;;  %v600_v43 = vld [vmem:[#allocation8 + $0x568] sm:$0xff] }
  0xc2   :  { %v636_v33 = vld [vmem:[#allocation8 + $0x688] sm:$0xff] }
 0x14d   :  { %v281_v52 = vpop.f32.mrb[0].mxu0  ;;  %v5201_v58 = vpop.f32.mrb[0].mxu1 }
 0x14e   :  { %v282_v54 = vadd.f32 %v281_v52, %v126_v50  ;;  %v283_v55 = vpop.f32.mrb[1].mxu0  ;;  %v324_v62 = vpop.f32.mrb[1].mxu1  ;;  %v4499_v50 = vcombine.low %v588_v34, %v592_v35  ;;  %v640_v34 = vld [vmem:[#allocation8 + $0x6a8] sm:$0xff] }
 0x14f   :  { %v284_v56 = vadd.f32 %v283_v55, %v130_v51  ;;  %v285_v57 = vpop.f32.mrb[2].mxu0  ;;  %v325_v3 = vadd.f32 %v324_v62, %v138_v53  ;;  %v326_v4 = vpop.f32.mrb[2].mxu1  ;;  %v603_v53 = vld [vmem:[#allocation8 + $0x580] sm:$0xff]  ;;  %v604_v55 = vld [vmem:[#allocation8 + $0x588] sm:$0xff] }
 0x150   :  { %v411_v59 = vmax.f32 %v282_v54, 0.0  ;;  %v286_v60 = vpop.f32.mrb[3].mxu0  ;;  %v327_v5 = vpop.f32.mrb[3].mxu1  ;;  %v607_v54 = vld [vmem:[#allocation8 + $0x5a0] sm:$0xff] }
 0x151   :  { %v412_v63 = vmax.f32 %v284_v56, 0.0  ;;  %v414_v7 = vmax.f32 %v325_v3, 0.0  ;;  %v608_v56 = vld [vmem:[#allocation8 + $0x5a8] sm:$0xff]  ;;  %v4514_v60 = vcombine.high %v603_v53, %v607_v54  ;;  %v611_v62 = vld [vmem:[#allocation8 + $0x5c0] sm:$0xff]  ;;  %v4513_v3 = vcombine.low %v603_v53, %v607_v54 }
 0x152   :  { %v5205_v8 = vpack.c.bf16 %v411_v59, %v411_v59  ;;  %v4516_v61 = vcombine.high %v604_v55, %v608_v56  ;;  %v4515_v4 = vcombine.low %v604_v55, %v608_v56  ;;  %v655_v53 = vld [vmem:[#allocation8 + $0x720] sm:$0xff]  ;;  %v652_v54 = vld [vmem:[#allocation8 + $0x708] sm:$0xff] }
 0x153   :  { %v5203_v6 = vpack.c.bf16 %v412_v63, %v412_v63  ;;  %v5209_v15 = vpack.c.bf16 %v414_v7, %v414_v7  ;;  %v4522_v7 = vcombine.high %v611_v62, %v615_v0  ;;  %v656_v55 = vld [vmem:[#allocation8 + $0x728] sm:$0xff] }
 0x155   :  { %3573 = vmatprep.mubr.bf16.mxu0 %v5203_v6  ;;  %3737 = vmatprep.mubr.bf16.mxu1 %v5203_v6  ;;  %v5211_v16 = vpop.f32.mrb[4].mxu0 }
 0x156   :  { %3574 = vmatmul.mubr.bf16.vlgmr.msra.gmra.mrb[8].mxu0 %v5205_v8  ;;  %3738 = vmatmul.mubr.bf16.vlgmr.msra.gmra.mrb[8].mxu1 %v5205_v8  ;;  %v5215_v17 = vpop.f32.mrb[5].mxu0  ;;  %v5219_v63 = vpop.f32.mrb[4].mxu1 }
 0x157   :  { %3583 = vmatpush1.bf16.msra.mxu0 %v4465_v41  ;;  %3747 = vmatpush1.bf16.msra.mxu1 %v4467_v42  ;;  %v367_v20 = vpop.f32.mrb[6].mxu0  ;;  %v599_v41 = vld [vmem:[#allocation8 + $0x560] sm:$0xff]  ;;  %v596_v42 = vld [vmem:[#allocation8 + $0x548] sm:$0xff]  ;;  %v5221_v5 = vpop.f32.mrb[5].mxu1 }
 0x158   :  { %3584 = vmatprep.subr.bf16.mxu0 %v4474_v9  ;;  %3748 = vmatprep.subr.bf16.mxu1 %v4476_v10  ;;  %v368_v24 = vpop.f32.mrb[7].mxu0  ;;  %v4506_v51 = vcombine.high %v595_v40, %v599_v41  ;;  %v4508_v52 = vcombine.high %v596_v42, %v600_v43  ;;  %v4505_v57 = vcombine.low %v595_v40, %v599_v41  ;;  %v619_v10 = vld [vmem:[#allocation8 + $0x600] sm:$0xff]  ;;  %v408_v11 = vpop.f32.mrb[6].mxu1  ;;  %v644_v41 = vld [vmem:[#allocation8 + $0x6c8] sm:$0xff] }
 0x159   :  { %3614 = vmatprep.mubr.bf16.mxu0 %v5209_v15  ;;  %3778 = vmatprep.mubr.bf16.mxu1 %v5209_v15  ;;  %v4507_v59 = vcombine.low %v596_v42, %v600_v43  ;;  %v4524_v9 = vcombine.high %v612_v1, %v616_v2  ;;  %v4523_v20 = vcombine.low %v612_v1, %v616_v2  ;;  %v631_v24 = vld [vmem:[#allocation8 + $0x660] sm:$0xff]  ;;  %v648_v42 = vld [vmem:[#allocation8 + $0x6e8] sm:$0xff]  ;;  %v5224_v2 = vsub.s32 2, %v5184_v45 }
 0x15a   :  { %v4529_v27 = vcombine.low %v619_v10, %v623_v12  ;;  %v4537_v35 = vcombine.low %v627_v23, %v631_v24  ;;  %v647_v40 = vld [vmem:[#allocation8 + $0x6e0] sm:$0xff]  ;;  %v664_v1 = vld [vmem:[#allocation8 + $0x768] sm:$0xff] }
 0x15b   :  { %3585 = vmatpush1.bf16.msra.mxu0 %v4473_v18  ;;  %3749 = vmatpush1.bf16.msra.mxu1 %v4475_v19  ;;  %v409_v18 = vpop.f32.mrb[7].mxu1  ;;  %v4521_v19 = vcombine.low %v611_v62, %v615_v0  ;;  %v663_v62 = vld [vmem:[#allocation8 + $0x760] sm:$0xff]  ;;  %v660_v0 = vld [vmem:[#allocation8 + $0x748] sm:$0xff] }
 0x15c   :  { %3586 = vmatprep.subr.bf16.mxu0 %v4482_v21  ;;  %3750 = vmatprep.subr.bf16.mxu1 %v4484_v22  ;;  %v4530_v21 = vcombine.high %v619_v10, %v623_v12  ;;  %v4532_v22 = vcombine.high %v620_v13, %v624_v14  ;;  %v667_v10 = vld [vmem:[#allocation8 + $0x780] sm:$0xff]  ;;  %v668_v12 = vld [vmem:[#allocation8 + $0x788] sm:$0xff]  ;;  %v134_v18 = vrot.slane %v5189_v47, %v5224_v2 }
 0x15d   :  { %v671_v11 = vld [vmem:[#allocation8 + $0x7a0] sm:$0xff] }
 0x15f   :  { %3587 = vmatpush1.bf16.msra.mxu0 %v4481_v28  ;;  %3751 = vmatpush1.bf16.msra.mxu1 %v4483_v29  ;;  %v4531_v28 = vcombine.low %v620_v13, %v624_v14  ;;  %v4538_v29 = vcombine.high %v627_v23, %v631_v24  ;;  %v672_v13 = vld [vmem:[#allocation8 + $0x7a8] sm:$0xff]  ;;  %v145_v14 = vsub.s32 5, %v5184_v45  ;;  %v675_v23 = vld [vmem:[#allocation8 + $0x7c0] sm:$0xff] }
 0x160   :  { %3588 = vmatprep.subr.bf16.mxu0 %v4490_v30  ;;  %3752 = vmatprep.subr.bf16.mxu1 %v4492_v31  ;;  %v4540_v30 = vcombine.high %v628_v25, %v632_v26  ;;  %v635_v31 = vld [vmem:[#allocation8 + $0x680] sm:$0xff] }
 0x161   :  { %v4545_v43 = vcombine.low %v635_v31, %v639_v32  ;;  %v679_v24 = vld [vmem:[#allocation8 + $0x7e0] sm:$0xff] }
 0x163   :  { %3589 = vmatpush1.bf16.msra.mxu0 %v4489_v36  ;;  %3753 = vmatpush1.bf16.msra.mxu1 %v4491_v37  ;;  %v4539_v36 = vcombine.low %v628_v25, %v632_v26  ;;  %v4546_v37 = vcombine.high %v635_v31, %v639_v32  ;;  %v676_v25 = vld [vmem:[#allocation8 + $0x7c8] sm:$0xff]  ;;  %v4586_v31 = vcombine.high %v675_v23, %v679_v24 }
 0x164   :  { %3590 = vmatprep.subr.bf16.mxu0 %v4498_v38  ;;  %3754 = vmatprep.subr.bf16.mxu1 %v4500_v39  ;;  %v4548_v38 = vcombine.high %v636_v33, %v640_v34  ;;  %v643_v39 = vld [vmem:[#allocation8 + $0x6c0] sm:$0xff]  ;;  %v680_v26 = vld [vmem:[#allocation8 + $0x7e8] sm:$0xff] }
 0x165   :  { %v4553_v56 = vcombine.low %v643_v39, %v647_v40  ;;  %v4588_v32 = vcombine.high %v676_v25, %v680_v26 }
 0x167   :  { %3591 = vmatpush1.bf16.msra.mxu0 %v4497_v44  ;;  %3755 = vmatpush1.bf16.msra.mxu1 %v4499_v50  ;;  %v4547_v44 = vcombine.low %v636_v33, %v640_v34  ;;  %v4554_v50 = vcombine.high %v643_v39, %v647_v40  ;;  %v683_v33 = vld [vmem:[#allocation8 + $0x800] sm:$0xff]  ;;  %v4585_v39 = vcombine.low %v675_v23, %v679_v24 }
 0x168   :  { %3592 = vmatprep.subr.bf16.mxu0 %v4506_v51  ;;  %3756 = vmatprep.subr.bf16.mxu1 %v4508_v52  ;;  %v4556_v51 = vcombine.high %v644_v41, %v648_v42  ;;  %v651_v52 = vld [vmem:[#allocation8 + $0x700] sm:$0xff]  ;;  %v4587_v40 = vcombine.low %v676_v25, %v680_v26 }
 0x169   :  { %v687_v34 = vld [vmem:[#allocation8 + $0x820] sm:$0xff] }
 0x16b   :  { %3593 = vmatpush1.bf16.msra.mxu0 %v4505_v57  ;;  %3757 = vmatpush1.bf16.msra.mxu1 %v4507_v59  ;;  %v4555_v57 = vcombine.low %v644_v41, %v648_v42  ;;  %v4562_v59 = vcombine.high %v651_v52, %v655_v53  ;;  %v691_v42 = vld [vmem:[#allocation8 + $0x840] sm:$0xff] }
 0x16c   :  { %3594 = vmatprep.subr.bf16.mxu0 %v4514_v60  ;;  %3758 = vmatprep.subr.bf16.mxu1 %v4516_v61  ;;  %v4564_v60 = vcombine.high %v652_v54, %v656_v55  ;;  %v659_v61 = vld [vmem:[#allocation8 + $0x740] sm:$0xff] }
 0x16f   :  { %3595 = vmatpush1.bf16.msra.mxu0 %v4513_v3  ;;  %3759 = vmatpush1.bf16.msra.mxu1 %v4515_v4  ;;  %v4561_v3 = vcombine.low %v651_v52, %v655_v53  ;;  %v4563_v4 = vcombine.low %v652_v54, %v656_v55  ;;  %v4593_v53 = vcombine.low %v683_v33, %v687_v34 }
 0x170   :  { %3596 = vmatprep.subr.bf16.mxu0 %v4522_v7  ;;  %3760 = vmatprep.subr.bf16.mxu1 %v4524_v9  ;;  %v4570_v7 = vcombine.high %v659_v61, %v663_v62  ;;  %v4572_v9 = vcombine.high %v660_v0, %v664_v1 }
 0x173   :  { %3597 = vmatpush1.bf16.msra.mxu0 %v4521_v19  ;;  %3761 = vmatpush1.bf16.msra.mxu1 %v4523_v20  ;;  %v4569_v19 = vcombine.low %v659_v61, %v663_v62  ;;  %v4571_v20 = vcombine.low %v660_v0, %v664_v1 }
 0x174   :  { %3598 = vmatprep.subr.bf16.mxu0 %v4530_v21  ;;  %3762 = vmatprep.subr.bf16.mxu1 %v4532_v22  ;;  %v4578_v21 = vcombine.high %v667_v10, %v671_v11  ;;  %v4580_v22 = vcombine.high %v668_v12, %v672_v13 }
 0x177   :  { %3599 = vmatpush1.bf16.msra.mxu0 %v4529_v27  ;;  %3763 = vmatpush1.bf16.msra.mxu1 %v4531_v28  ;;  %v146_v27 = vrot.slane %v5189_v47, %v145_v14  ;;  %v323_v28 = vadd.f32 %v5201_v58, %v134_v18  ;;  %v4594_v58 = vcombine.high %v683_v33, %v687_v34 }
 0x178   :  { %3600 = vmatprep.subr.bf16.mxu0 %v4538_v29  ;;  %3764 = vmatprep.subr.bf16.mxu1 %v4540_v30  ;;  %v4577_v29 = vcombine.low %v667_v10, %v671_v11  ;;  %v4579_v30 = vcombine.low %v668_v12, %v672_v13  ;;  %v712_v10 = vld [vmem:[#allocation8 + $0x8e8] sm:$0xff] }
 0x17b   :  { %3601 = vmatpush1.bf16.msra.mxu0 %v4537_v35  ;;  %3765 = vmatpush1.bf16.msra.mxu1 %v4539_v36  ;;  %v684_v35 = vld [vmem:[#allocation8 + $0x808] sm:$0xff] }
 0x17c   :  { %3602 = vmatprep.subr.bf16.mxu0 %v4546_v37  ;;  %3766 = vmatprep.subr.bf16.mxu1 %v4548_v38  ;;  %v688_v36 = vld [vmem:[#allocation8 + $0x828] sm:$0xff]  ;;  %v366_v37 = vadd.f32 %v5215_v17, %v146_v27  ;;  %v413_v38 = vmax.f32 %v323_v28, 0.0  ;;  %v723_v27 = vld [vmem:[#allocation8 + $0x940] sm:$0xff] }
 0x17d   :  { %v4596_v41 = vcombine.high %v684_v35, %v688_v36  ;;  %v4595_v17 = vcombine.low %v684_v35, %v688_v36  ;;  %v727_v28 = vld [vmem:[#allocation8 + $0x960] sm:$0xff] }
 0x17e   :  { %v5234_v52 = vpack.c.bf16 %v413_v38, %v413_v38  ;;  %v4634_v33 = vcombine.high %v723_v27, %v727_v28  ;;  %v731_v35 = vld [vmem:[#allocation8 + $0x980] sm:$0xff]  ;;  %v736_v38 = vld [vmem:[#allocation8 + $0x9a8] sm:$0xff] }
 0x17f   :  { %3603 = vmatpush1.bf16.msra.mxu0 %v4545_v43  ;;  %3767 = vmatpush1.bf16.msra.mxu1 %v4547_v44  ;;  %v695_v43 = vld [vmem:[#allocation8 + $0x860] sm:$0xff]  ;;  %v692_v44 = vld [vmem:[#allocation8 + $0x848] sm:$0xff] }
 0x180   :  { %3604 = vmatprep.subr.bf16.mxu0 %v4554_v50  ;;  %3768 = vmatprep.subr.bf16.mxu1 %v4556_v51  ;;  %v696_v50 = vld [vmem:[#allocation8 + $0x868] sm:$0xff]  ;;  %v416_v51 = vmax.f32 %v366_v37, 0.0  ;;  %v4602_v54 = vcombine.high %v691_v42, %v695_v43  ;;  %v4601_v62 = vcombine.low %v691_v42, %v695_v43  ;;  %v735_v36 = vld [vmem:[#allocation8 + $0x9a0] sm:$0xff] }
 0x181   :  { %v4604_v55 = vcombine.high %v692_v44, %v696_v50  ;;  %v4603_v0 = vcombine.low %v692_v44, %v696_v50  ;;  %v732_v37 = vld [vmem:[#allocation8 + $0x988] sm:$0xff]  ;;  %v739_v42 = vld [vmem:[#allocation8 + $0x9c0] sm:$0xff] }
 0x182   :  { %v5236_v61 = vpack.c.bf16 %v416_v51, %v416_v51  ;;  %v743_v43 = vld [vmem:[#allocation8 + $0x9e0] sm:$0xff]  ;;  %v740_v44 = vld [vmem:[#allocation8 + $0x9c8] sm:$0xff]  ;;  %v4641_v51 = vcombine.low %v731_v35, %v735_v36 }
 0x183   :  { %3605 = vmatpush1.bf16.msra.mxu0 %v4553_v56  ;;  %3769 = vmatpush1.bf16.msra.mxu1 %v4555_v57  ;;  %v699_v56 = vld [vmem:[#allocation8 + $0x880] sm:$0xff]  ;;  %v744_v50 = vld [vmem:[#allocation8 + $0x9e8] sm:$0xff] }
 0x184   :  { %3606 = vmatprep.subr.bf16.mxu0 %v4562_v59  ;;  %3770 = vmatprep.subr.bf16.mxu1 %v4564_v60  ;;  %v703_v57 = vld [vmem:[#allocation8 + $0x8a0] sm:$0xff]  ;;  %v700_v59 = vld [vmem:[#allocation8 + $0x888] sm:$0xff] }
 0x185   :  { %v704_v60 = vld [vmem:[#allocation8 + $0x8a8] sm:$0xff]  ;;  %v4610_v1 = vcombine.high %v699_v56, %v703_v57  ;;  %v4609_v11 = vcombine.low %v699_v56, %v703_v57  ;;  %v751_v56 = vld [vmem:[#allocation8 + $0xa20] sm:$0xff] }
 0x186   :  { %v4611_v12 = vcombine.low %v700_v59, %v704_v60  ;;  %v748_v57 = vld [vmem:[#allocation8 + $0xa08] sm:$0xff] }
 0x187   :  { %3607 = vmatpush1.bf16.msra.mxu0 %v4561_v3  ;;  %3771 = vmatpush1.bf16.msra.mxu1 %v4563_v4  ;;  %v4612_v3 = vcombine.high %v700_v59, %v704_v60  ;;  %v707_v4 = vld [vmem:[#allocation8 + $0x8c0] sm:$0xff]  ;;  %v752_v59 = vld [vmem:[#allocation8 + $0xa28] sm:$0xff]  ;;  %v4649_v60 = vcombine.low %v739_v42, %v743_v43 }
 0x188   :  { %3608 = vmatprep.subr.bf16.mxu0 %v4570_v7  ;;  %3772 = vmatprep.subr.bf16.mxu1 %v4572_v9  ;;  %v711_v7 = vld [vmem:[#allocation8 + $0x8e0] sm:$0xff]  ;;  %v708_v9 = vld [vmem:[#allocation8 + $0x8c8] sm:$0xff] }
 0x189   :  { %v4618_v13 = vcombine.high %v707_v4, %v711_v7  ;;  %v4620_v18 = vcombine.high %v708_v9, %v712_v10  ;;  %v4617_v23 = vcombine.low %v707_v4, %v711_v7  ;;  %v4619_v24 = vcombine.low %v708_v9, %v712_v10  ;;  %v759_v4 = vld [vmem:[#allocation8 + $0xa60] sm:$0xff]  ;;  %v756_v7 = vld [vmem:[#allocation8 + $0xa48] sm:$0xff] }
 0x18a   :  { %v760_v9 = vld [vmem:[#allocation8 + $0xa68] sm:$0xff] }
 0x18b   :  { %3609 = vmatpush1.bf16.msra.mxu0 %v4569_v19  ;;  %3773 = vmatpush1.bf16.msra.mxu1 %v4571_v20  ;;  %v715_v19 = vld [vmem:[#allocation8 + $0x900] sm:$0xff] }
 0x18c   :  { %3610 = vmatprep.subr.bf16.mxu0 %v4578_v21  ;;  %3774 = vmatprep.subr.bf16.mxu1 %v4580_v22  ;;  %v719_v20 = vld [vmem:[#allocation8 + $0x920] sm:$0xff]  ;;  %v716_v21 = vld [vmem:[#allocation8 + $0x908] sm:$0xff] }
 0x18d   :  { %v720_v22 = vld [vmem:[#allocation8 + $0x928] sm:$0xff]  ;;  %v4626_v25 = vcombine.high %v715_v19, %v719_v20 }
 0x18e   :  { %v4628_v26 = vcombine.high %v716_v21, %v720_v22 }
 0x18f   :  { %3611 = vmatpush1.bf16.msra.mxu0 %v4577_v29  ;;  %3775 = vmatpush1.bf16.msra.mxu1 %v4579_v30  ;;  %v724_v29 = vld [vmem:[#allocation8 + $0x948] sm:$0xff] }
 0x190   :  { %3612 = vmatprep.subr.bf16.mxu0 %v4586_v31  ;;  %3776 = vmatprep.subr.bf16.mxu1 %v4588_v32  ;;  %v728_v30 = vld [vmem:[#allocation8 + $0x968] sm:$0xff]  ;;  %v4625_v31 = vcombine.low %v715_v19, %v719_v20  ;;  %v4627_v32 = vcombine.low %v716_v21, %v720_v22  ;;  %v767_v19 = vld [vmem:[#allocation8 + $0xaa0] sm:$0xff] }
 0x191   :  { %v4636_v34 = vcombine.high %v724_v29, %v728_v30  ;;  %v764_v20 = vld [vmem:[#allocation8 + $0xa88] sm:$0xff] }
 0x192   :  { %v768_v21 = vld [vmem:[#allocation8 + $0xaa8] sm:$0xff] }
 0x193   :  { %3613 = vmatpush1.bf16.msra.mxu0 %v4585_v39  ;;  %3777 = vmatpush1.bf16.msra.mxu1 %v4587_v40  ;;  %v4633_v39 = vcombine.low %v723_v27, %v727_v28  ;;  %v4635_v40 = vcombine.low %v724_v29, %v728_v30  ;;  %v775_v27 = vld [vmem:[#allocation8 + $0xae0] sm:$0xff]  ;;  %v772_v28 = vld [vmem:[#allocation8 + $0xac8] sm:$0xff] }
 0x194   :  { %3623 = vmatprep.subr.bf16.mxu0 %v4594_v58  ;;  %3787 = vmatprep.subr.bf16.mxu1 %v4596_v41  ;;  %v4642_v58 = vcombine.high %v731_v35, %v735_v36  ;;  %v4644_v41 = vcombine.high %v732_v37, %v736_v38  ;;  %v776_v29 = vld [vmem:[#allocation8 + $0xae8] sm:$0xff]  ;;  %v783_v35 = vld [vmem:[#allocation8 + $0xb20] sm:$0xff] }
 0x195   :  { %v780_v36 = vld [vmem:[#allocation8 + $0xb08] sm:$0xff] }
 0x196   :  { %3615 = vmatmul.mubr.bf16.vlgmr.msra.gmra.mrb[8].mxu0 %v5234_v52  ;;  %3779 = vmatmul.mubr.bf16.vlgmr.msra.gmra.mrb[8].mxu1 %v5234_v52 }
 0x197   :  { %3624 = vmatpush1.bf16.msra.mxu0 %v4593_v53  ;;  %3788 = vmatpush1.bf16.msra.mxu1 %v4595_v17  ;;  %v4643_v53 = vcombine.low %v732_v37, %v736_v38  ;;  %v4650_v17 = vcombine.high %v739_v42, %v743_v43  ;;  %v784_v37 = vld [vmem:[#allocation8 + $0xb28] sm:$0xff]  ;;  %v791_v42 = vld [vmem:[#allocation8 + $0xb60] sm:$0xff] }
 0x198   :  { %3625 = vmatprep.subr.bf16.mxu0 %v4602_v54  ;;  %3789 = vmatprep.subr.bf16.mxu1 %v4604_v55  ;;  %v4652_v54 = vcombine.high %v740_v44, %v744_v50  ;;  %v747_v55 = vld [vmem:[#allocation8 + $0xa00] sm:$0xff]  ;;  %v788_v43 = vld [vmem:[#allocation8 + $0xb48] sm:$0xff] }
 0x199   :  { %3655 = vmatprep.mubr.bf16.mxu0 %v5236_v61  ;;  %3819 = vmatprep.mubr.bf16.mxu1 %v5236_v61  ;;  %v4657_v10 = vcombine.low %v747_v55, %v751_v56 }
 0x19b   :  { %3626 = vmatpush1.bf16.msra.mxu0 %v4601_v62  ;;  %3790 = vmatpush1.bf16.msra.mxu1 %v4603_v0  ;;  %v4651_v62 = vcombine.low %v740_v44, %v744_v50  ;;  %v4658_v0 = vcombine.high %v747_v55, %v751_v56  ;;  %v792_v44 = vld [vmem:[#allocation8 + $0xb68] sm:$0xff]  ;;  %v5243_v50 = vsub.s32 4, %v5184_v45  ;;  %v795_v55 = vld [vmem:[#allocation8 + $0xb80] sm:$0xff] }
 0x19c   :  { %3627 = vmatprep.subr.bf16.mxu0 %v4610_v1  ;;  %3791 = vmatprep.subr.bf16.mxu1 %v4612_v3  ;;  %v4660_v1 = vcombine.high %v748_v57, %v752_v59  ;;  %v755_v3 = vld [vmem:[#allocation8 + $0xa40] sm:$0xff] }
 0x19d   :  { %v4665_v22 = vcombine.low %v755_v3, %v759_v4  ;;  %v799_v56 = vld [vmem:[#allocation8 + $0xba0] sm:$0xff] }
 0x19f   :  { %3628 = vmatpush1.bf16.msra.mxu0 %v4609_v11  ;;  %3792 = vmatpush1.bf16.msra.mxu1 %v4611_v12  ;;  %v4659_v11 = vcombine.low %v748_v57, %v752_v59  ;;  %v4666_v12 = vcombine.high %v755_v3, %v759_v4  ;;  %v796_v57 = vld [vmem:[#allocation8 + $0xb88] sm:$0xff]  ;;  %v4706_v3 = vcombine.high %v795_v55, %v799_v56 }
 0x1a0   :  { %3629 = vmatprep.subr.bf16.mxu0 %v4618_v13  ;;  %3793 = vmatprep.subr.bf16.mxu1 %v4620_v18  ;;  %v4668_v13 = vcombine.high %v756_v7, %v760_v9  ;;  %v763_v18 = vld [vmem:[#allocation8 + $0xa80] sm:$0xff]  ;;  %v800_v59 = vld [vmem:[#allocation8 + $0xba8] sm:$0xff] }
 0x1a1   :  { %v4673_v30 = vcombine.low %v763_v18, %v767_v19  ;;  %v4708_v4 = vcombine.high %v796_v57, %v800_v59 }
 0x1a3   :  { %3630 = vmatpush1.bf16.msra.mxu0 %v4617_v23  ;;  %3794 = vmatpush1.bf16.msra.mxu1 %v4619_v24  ;;  %v4667_v23 = vcombine.low %v756_v7, %v760_v9  ;;  %v4674_v24 = vcombine.high %v763_v18, %v767_v19  ;;  %v803_v7 = vld [vmem:[#allocation8 + $0xbc0] sm:$0xff]  ;;  %v4705_v18 = vcombine.low %v795_v55, %v799_v56  ;;  %v836_v55 = vld [vmem:[#allocation8 + $0xcc8] sm:$0xff] }
 0x1a4   :  { %3631 = vmatprep.subr.bf16.mxu0 %v4626_v25  ;;  %3795 = vmatprep.subr.bf16.mxu1 %v4628_v26  ;;  %v4676_v25 = vcombine.high %v764_v20, %v768_v21  ;;  %v771_v26 = vld [vmem:[#allocation8 + $0xac0] sm:$0xff]  ;;  %v4707_v19 = vcombine.low %v796_v57, %v800_v59  ;;  %v840_v56 = vld [vmem:[#allocation8 + $0xce8] sm:$0xff] }
 0x1a5   :  { %v4681_v38 = vcombine.low %v771_v26, %v775_v27  ;;  %v807_v9 = vld [vmem:[#allocation8 + $0xbe0] sm:$0xff] }
 0x1a7   :  { %3632 = vmatpush1.bf16.msra.mxu0 %v4625_v31  ;;  %3796 = vmatpush1.bf16.msra.mxu1 %v4627_v32  ;;  %v4675_v31 = vcombine.low %v764_v20, %v768_v21  ;;  %v4682_v32 = vcombine.high %v771_v26, %v775_v27  ;;  %v4714_v20 = vcombine.high %v803_v7, %v807_v9 }
 0x1a8   :  { %3633 = vmatprep.subr.bf16.mxu0 %v4634_v33  ;;  %3797 = vmatprep.subr.bf16.mxu1 %v4636_v34  ;;  %v4684_v33 = vcombine.high %v772_v28, %v776_v29  ;;  %v779_v34 = vld [vmem:[#allocation8 + $0xb00] sm:$0xff] }
 0x1ab   :  { %3634 = vmatpush1.bf16.msra.mxu0 %v4633_v39  ;;  %3798 = vmatpush1.bf16.msra.mxu1 %v4635_v40  ;;  %v4683_v39 = vcombine.low %v772_v28, %v776_v29  ;;  %v4690_v40 = vcombine.high %v779_v34, %v783_v35 }
 0x1ac   :  { %3635 = vmatprep.subr.bf16.mxu0 %v4642_v58  ;;  %3799 = vmatprep.subr.bf16.mxu1 %v4644_v41  ;;  %v4692_v58 = vcombine.high %v780_v36, %v784_v37  ;;  %v787_v41 = vld [vmem:[#allocation8 + $0xb40] sm:$0xff] }
 0x1af   :  { %3636 = vmatpush1.bf16.msra.mxu0 %v4641_v51  ;;  %3800 = vmatpush1.bf16.msra.mxu1 %v4643_v53  ;;  %v4689_v51 = vcombine.low %v779_v34, %v783_v35  ;;  %v4691_v53 = vcombine.low %v780_v36, %v784_v37 }
 0x1b0   :  { %3637 = vmatprep.subr.bf16.mxu0 %v4650_v17  ;;  %3801 = vmatprep.subr.bf16.mxu1 %v4652_v54  ;;  %v4698_v17 = vcombine.high %v787_v41, %v791_v42  ;;  %v4700_v54 = vcombine.high %v788_v43, %v792_v44 }
 0x1b3   :  { %3638 = vmatpush1.bf16.msra.mxu0 %v4649_v60  ;;  %3802 = vmatpush1.bf16.msra.mxu1 %v4651_v62  ;;  %v153_v60 = vsub.s32 7, %v5184_v45  ;;  %v142_v62 = vrot.slane %v5189_v47, %v5243_v50 }
 0x1b4   :  { %3639 = vmatprep.subr.bf16.mxu0 %v4658_v0  ;;  %3803 = vmatprep.subr.bf16.mxu1 %v4660_v1  ;;  %v4697_v0 = vcombine.low %v787_v41, %v791_v42  ;;  %v4699_v1 = vcombine.low %v788_v43, %v792_v44  ;;  %v832_v41 = vld [vmem:[#allocation8 + $0xca8] sm:$0xff] }
 0x1b7   :  { %3640 = vmatpush1.bf16.msra.mxu0 %v4657_v10  ;;  %3804 = vmatpush1.bf16.msra.mxu1 %v4659_v11  ;;  %v804_v10 = vld [vmem:[#allocation8 + $0xbc8] sm:$0xff] }
 0x1b8   :  { %3641 = vmatprep.subr.bf16.mxu0 %v4666_v12  ;;  %3805 = vmatprep.subr.bf16.mxu1 %v4668_v13  ;;  %v808_v11 = vld [vmem:[#allocation8 + $0xbe8] sm:$0xff]  ;;  %v154_v12 = vrot.slane %v5189_v47, %v153_v60  ;;  %v364_v13 = vadd.f32 %v5211_v16, %v142_v62  ;;  %v4713_v47 = vcombine.low %v803_v7, %v807_v9 }
 0x1b9   :  { %v4716_v21 = vcombine.high %v804_v10, %v808_v11  ;;  %v4715_v28 = vcombine.low %v804_v10, %v808_v11  ;;  %v848_v7 = vld [vmem:[#allocation8 + $0xd28] sm:$0xff]  ;;  %v4747_v10 = vcombine.low %v836_v55, %v840_v56 }
 0x1ba   :  { %v407_v26 = vadd.f32 %v5221_v5, %v154_v12  ;;  %v415_v27 = vmax.f32 %v364_v13, 0.0  ;;  %v851_v13 = vld [vmem:[#allocation8 + $0xd40] sm:$0xff] }
 0x1bb   :  { %3642 = vmatpush1.bf16.msra.mxu0 %v4665_v22  ;;  %3806 = vmatpush1.bf16.msra.mxu1 %v4667_v23  ;;  %v811_v22 = vld [vmem:[#allocation8 + $0xc00] sm:$0xff] }
 0x1bc   :  { %3643 = vmatprep.subr.bf16.mxu0 %v4674_v24  ;;  %3807 = vmatprep.subr.bf16.mxu1 %v4676_v25  ;;  %v815_v23 = vld [vmem:[#allocation8 + $0xc20] sm:$0xff]  ;;  %v812_v24 = vld [vmem:[#allocation8 + $0xc08] sm:$0xff]  ;;  %v418_v34 = vmax.f32 %v407_v26, 0.0  ;;  %v5253_v35 = vpack.c.bf16 %v415_v27, %v415_v27 }
 0x1bd   :  { %v816_v25 = vld [vmem:[#allocation8 + $0xc28] sm:$0xff]  ;;  %v4722_v16 = vcombine.high %v811_v22, %v815_v23  ;;  %v4721_v36 = vcombine.low %v811_v22, %v815_v23  ;;  %v863_v26 = vld [vmem:[#allocation8 + $0xda0] sm:$0xff] }
 0x1be   :  { %v4724_v29 = vcombine.high %v812_v24, %v816_v25  ;;  %v4723_v5 = vcombine.low %v812_v24, %v816_v25  ;;  %v5255_v42 = vpack.c.bf16 %v418_v34, %v418_v34  ;;  %v859_v25 = vld [vmem:[#allocation8 + $0xd80] sm:$0xff]  ;;  %v860_v27 = vld [vmem:[#allocation8 + $0xd88] sm:$0xff] }
 0x1bf   :  { %3644 = vmatpush1.bf16.msra.mxu0 %v4673_v30  ;;  %3808 = vmatpush1.bf16.msra.mxu1 %v4675_v31  ;;  %v819_v30 = vld [vmem:[#allocation8 + $0xc40] sm:$0xff]  ;;  %v872_v34 = vld [vmem:[#allocation8 + $0xde8] sm:$0xff] }
 0x1c0   :  { %3645 = vmatprep.subr.bf16.mxu0 %v4682_v32  ;;  %3809 = vmatprep.subr.bf16.mxu1 %v4684_v33  ;;  %v823_v31 = vld [vmem:[#allocation8 + $0xc60] sm:$0xff]  ;;  %v820_v32 = vld [vmem:[#allocation8 + $0xc48] sm:$0xff] }
 0x1c1   :  { %v824_v33 = vld [vmem:[#allocation8 + $0xc68] sm:$0xff]  ;;  %v4730_v37 = vcombine.high %v819_v30, %v823_v31  ;;  %v4729_v43 = vcombine.low %v819_v30, %v823_v31  ;;  %v867_v31 = vld [vmem:[#allocation8 + $0xdc0] sm:$0xff] }
 0x1c2   :  { %v4731_v44 = vcombine.low %v820_v32, %v824_v33 }
 0x1c3   :  { %3646 = vmatpush1.bf16.msra.mxu0 %v4681_v38  ;;  %3810 = vmatpush1.bf16.msra.mxu1 %v4683_v39  ;;  %v4732_v38 = vcombine.high %v820_v32, %v824_v33  ;;  %v827_v39 = vld [vmem:[#allocation8 + $0xc80] sm:$0xff]  ;;  %v868_v33 = vld [vmem:[#allocation8 + $0xdc8] sm:$0xff] }
 0x1c4   :  { %3647 = vmatprep.subr.bf16.mxu0 %v4690_v40  ;;  %3811 = vmatprep.subr.bf16.mxu1 %v4692_v58  ;;  %v831_v40 = vld [vmem:[#allocation8 + $0xca0] sm:$0xff]  ;;  %v828_v58 = vld [vmem:[#allocation8 + $0xc88] sm:$0xff] }
 0x1c5   :  { %v4737_v57 = vcombine.low %v827_v39, %v831_v40  ;;  %v4739_v59 = vcombine.low %v828_v58, %v832_v41  ;;  %v871_v32 = vld [vmem:[#allocation8 + $0xde0] sm:$0xff] }
 0x1c7   :  { %3648 = vmatpush1.bf16.msra.mxu0 %v4689_v51  ;;  %3812 = vmatpush1.bf16.msra.mxu1 %v4691_v53  ;;  %v4738_v51 = vcombine.high %v827_v39, %v831_v40  ;;  %v4740_v53 = vcombine.high %v828_v58, %v832_v41  ;;  %v875_v39 = vld [vmem:[#allocation8 + $0xe00] sm:$0xff]  ;;  %v876_v58 = vld [vmem:[#allocation8 + $0xe08] sm:$0xff] }
 0x1c8   :  { %3649 = vmatprep.subr.bf16.mxu0 %v4698_v17  ;;  %3813 = vmatprep.subr.bf16.mxu1 %v4700_v54  ;;  %v835_v17 = vld [vmem:[#allocation8 + $0xcc0] sm:$0xff]  ;;  %v880_v41 = vld [vmem:[#allocation8 + $0xe28] sm:$0xff] }
 0x1c9   :  { %v839_v54 = vld [vmem:[#allocation8 + $0xce0] sm:$0xff] }
 0x1ca   :  { %v4746_v62 = vcombine.high %v835_v17, %v839_v54  ;;  %v4745_v9 = vcombine.low %v835_v17, %v839_v54  ;;  %v879_v40 = vld [vmem:[#allocation8 + $0xe20] sm:$0xff] }
 0x1cb   :  { %3650 = vmatpush1.bf16.msra.mxu0 %v4697_v0  ;;  %3814 = vmatpush1.bf16.msra.mxu1 %v4699_v1  ;;  %v4748_v0 = vcombine.high %v836_v55, %v840_v56  ;;  %v843_v1 = vld [vmem:[#allocation8 + $0xd00] sm:$0xff]  ;;  %v884_v55 = vld [vmem:[#allocation8 + $0xe48] sm:$0xff] }
 0x1cc   :  { %3651 = vmatprep.subr.bf16.mxu0 %v4706_v3  ;;  %3815 = vmatprep.subr.bf16.mxu1 %v4708_v4  ;;  %v847_v3 = vld [vmem:[#allocation8 + $0xd20] sm:$0xff]  ;;  %v844_v4 = vld [vmem:[#allocation8 + $0xd08] sm:$0xff] }
 0x1cd   :  { %v4754_v11 = vcombine.high %v843_v1, %v847_v3  ;;  %v4756_v12 = vcombine.high %v844_v4, %v848_v7  ;;  %v4755_v22 = vcombine.low %v844_v4, %v848_v7  ;;  %v883_v17 = vld [vmem:[#allocation8 + $0xe40] sm:$0xff]  ;;  %v888_v56 = vld [vmem:[#allocation8 + $0xe68] sm:$0xff] }
 0x1ce   :  { %v887_v54 = vld [vmem:[#allocation8 + $0xe60] sm:$0xff]  ;;  %v892_v4 = vld [vmem:[#allocation8 + $0xe88] sm:$0xff] }
 0x1cf   :  { %3652 = vmatpush1.bf16.msra.mxu0 %v4705_v18  ;;  %3816 = vmatpush1.bf16.msra.mxu1 %v4707_v19  ;;  %v855_v18 = vld [vmem:[#allocation8 + $0xd60] sm:$0xff]  ;;  %v852_v19 = vld [vmem:[#allocation8 + $0xd48] sm:$0xff] }
 0x1d0   :  { %3653 = vmatprep.subr.bf16.mxu0 %v4714_v20  ;;  %3817 = vmatprep.subr.bf16.mxu1 %v4716_v21  ;;  %v856_v20 = vld [vmem:[#allocation8 + $0xd68] sm:$0xff]  ;;  %v4753_v21 = vcombine.low %v843_v1, %v847_v3  ;;  %v4762_v23 = vcombine.high %v851_v13, %v855_v18  ;;  %v891_v1 = vld [vmem:[#allocation8 + $0xe80] sm:$0xff] }
 0x1d1   :  { %v4764_v24 = vcombine.high %v852_v19, %v856_v20  ;;  %v895_v3 = vld [vmem:[#allocation8 + $0xea0] sm:$0xff]  ;;  %v896_v7 = vld [vmem:[#allocation8 + $0xea8] sm:$0xff] }
 0x1d3   :  { %3654 = vmatpush1.bf16.msra.mxu0 %v4713_v47  ;;  %3818 = vmatpush1.bf16.msra.mxu1 %v4715_v28  ;;  %v864_v47 = vld [vmem:[#allocation8 + $0xda8] sm:$0xff]  ;;  %v4761_v28 = vcombine.low %v851_v13, %v855_v18  ;;  %v899_v13 = vld [vmem:[#allocation8 + $0xec0] sm:$0xff] }
 0x1d4   :  { %3664 = vmatprep.subr.bf16.mxu0 %v4722_v16  ;;  %3828 = vmatprep.subr.bf16.mxu1 %v4724_v29  ;;  %v4763_v16 = vcombine.low %v852_v19, %v856_v20  ;;  %v4770_v29 = vcombine.high %v859_v25, %v863_v26  ;;  %v4772_v30 = vcombine.high %v860_v27, %v864_v47  ;;  %v903_v18 = vld [vmem:[#allocation8 + $0xee0] sm:$0xff]  ;;  %v900_v19 = vld [vmem:[#allocation8 + $0xec8] sm:$0xff] }
 0x1d5   :  { %v904_v20 = vld [vmem:[#allocation8 + $0xee8] sm:$0xff] }
 0x1d6   :  { %3656 = vmatmul.mubr.bf16.vlgmr.msra.gmra.mrb[8].mxu0 %v5253_v35  ;;  %3820 = vmatmul.mubr.bf16.vlgmr.msra.gmra.mrb[8].mxu1 %v5253_v35 }
 0x1d7   :  { %3665 = vmatpush1.bf16.msra.mxu0 %v4721_v36  ;;  %3829 = vmatpush1.bf16.msra.mxu1 %v4723_v5  ;;  %v4769_v36 = vcombine.low %v859_v25, %v863_v26  ;;  %v4771_v5 = vcombine.low %v860_v27, %v864_v47  ;;  %v907_v25 = vld [vmem:[#allocation8 + $0xf00] sm:$0xff]  ;;  %v908_v27 = vld [vmem:[#allocation8 + $0xf08] sm:$0xff] }
 0x1d8   :  { %3666 = vmatprep.subr.bf16.mxu0 %v4730_v37  ;;  %3830 = vmatprep.subr.bf16.mxu1 %v4732_v38  ;;  %v4778_v37 = vcombine.high %v867_v31, %v871_v32  ;;  %v4780_v38 = vcombine.high %v868_v33, %v872_v34  ;;  %v911_v26 = vld [vmem:[#allocation8 + $0xf20] sm:$0xff]  ;;  %v912_v47 = vld [vmem:[#allocation8 + $0xf28] sm:$0xff] }
 0x1d9   :  { %3696 = vmatprep.mubr.bf16.mxu0 %v5255_v42  ;;  %3860 = vmatprep.mubr.bf16.mxu1 %v5255_v42 }
 0x1db   :  { %3667 = vmatpush1.bf16.msra.mxu0 %v4729_v43  ;;  %3831 = vmatpush1.bf16.msra.mxu1 %v4731_v44  ;;  %v4777_v43 = vcombine.low %v867_v31, %v871_v32  ;;  %v4779_v44 = vcombine.low %v868_v33, %v872_v34  ;;  %v915_v31 = vld [vmem:[#allocation8 + $0xf40] sm:$0xff]  ;;  %v916_v33 = vld [vmem:[#allocation8 + $0xf48] sm:$0xff] }
 0x1dc   :  { %3668 = vmatprep.subr.bf16.mxu0 %v4738_v51  ;;  %3832 = vmatprep.subr.bf16.mxu1 %v4740_v53  ;;  %v4786_v51 = vcombine.high %v875_v39, %v879_v40  ;;  %v4788_v53 = vcombine.high %v876_v58, %v880_v41  ;;  %v919_v32 = vld [vmem:[#allocation8 + $0xf60] sm:$0xff]  ;;  %v920_v34 = vld [vmem:[#allocation8 + $0xf68] sm:$0xff] }
 0x1df   :  { %3669 = vmatpush1.bf16.msra.mxu0 %v4737_v57  ;;  %3833 = vmatpush1.bf16.msra.mxu1 %v4739_v59  ;;  %v4785_v57 = vcombine.low %v875_v39, %v879_v40  ;;  %v4787_v59 = vcombine.low %v876_v58, %v880_v41  ;;  %v4828_v39 = vcombine.high %v916_v33, %v920_v34  ;;  %v923_v40 = vld [vmem:[#allocation8 + $0xf80] sm:$0xff]  ;;  %v924_v41 = vld [vmem:[#allocation8 + $0xf88] sm:$0xff] }
 0x1e0   :  { %3670 = vmatprep.subr.bf16.mxu0 %v4746_v62  ;;  %3834 = vmatprep.subr.bf16.mxu1 %v4748_v0  ;;  %v4794_v62 = vcombine.high %v883_v17, %v887_v54  ;;  %v4796_v0 = vcombine.high %v884_v55, %v888_v56  ;;  %v927_v58 = vld [vmem:[#allocation8 + $0xfa0] sm:$0xff] }
 0x1e3   :  { %3671 = vmatpush1.bf16.msra.mxu0 %v4745_v9  ;;  %3835 = vmatpush1.bf16.msra.mxu1 %v4747_v10  ;;  %v4793_v9 = vcombine.low %v883_v17, %v887_v54  ;;  %v4795_v10 = vcombine.low %v884_v55, %v888_v56  ;;  %v4834_v54 = vcombine.high %v923_v40, %v927_v58  ;;  %v931_v56 = vld [vmem:[#allocation8 + $0xfc0] sm:$0xff] }
 0x1e4   :  { %3672 = vmatprep.subr.bf16.mxu0 %v4754_v11  ;;  %3836 = vmatprep.subr.bf16.mxu1 %v4756_v12  ;;  %v4802_v11 = vcombine.high %v891_v1, %v895_v3  ;;  %v4804_v12 = vcombine.high %v892_v4, %v896_v7 }
 0x1e7   :  { %3673 = vmatpush1.bf16.msra.mxu0 %v4753_v21  ;;  %3837 = vmatpush1.bf16.msra.mxu1 %v4755_v22  ;;  %v4801_v21 = vcombine.low %v891_v1, %v895_v3  ;;  %v4803_v22 = vcombine.low %v892_v4, %v896_v7 }
 0x1e8   :  { %3674 = vmatprep.subr.bf16.mxu0 %v4762_v23  ;;  %3838 = vmatprep.subr.bf16.mxu1 %v4764_v24  ;;  %v4810_v23 = vcombine.high %v899_v13, %v903_v18  ;;  %v4812_v24 = vcombine.high %v900_v19, %v904_v20 }
 0x1eb   :  { %3675 = vmatpush1.bf16.msra.mxu0 %v4761_v28  ;;  %3839 = vmatpush1.bf16.msra.mxu1 %v4763_v16  ;;  %v4809_v28 = vcombine.low %v899_v13, %v903_v18  ;;  %v4811_v16 = vcombine.low %v900_v19, %v904_v20 }
 0x1ec   :  { %3676 = vmatprep.subr.bf16.mxu0 %v4770_v29  ;;  %3840 = vmatprep.subr.bf16.mxu1 %v4772_v30  ;;  %v4818_v29 = vcombine.high %v907_v25, %v911_v26  ;;  %v4820_v30 = vcombine.high %v908_v27, %v912_v47 }
 0x1ef   :  { %3677 = vmatpush1.bf16.msra.mxu0 %v4769_v36  ;;  %3841 = vmatpush1.bf16.msra.mxu1 %v4771_v5  ;;  %v4817_v36 = vcombine.low %v907_v25, %v911_v26  ;;  %v4819_v5 = vcombine.low %v908_v27, %v912_v47 }
 0x1f0   :  { %3678 = vmatprep.subr.bf16.mxu0 %v4778_v37  ;;  %3842 = vmatprep.subr.bf16.mxu1 %v4780_v38  ;;  %v5262_v37 = vsub.s32 6, %v5184_v45  ;;  %v4826_v38 = vcombine.high %v915_v31, %v919_v32 }
 0x1f3   :  { %3679 = vmatpush1.bf16.msra.mxu0 %v4777_v43  ;;  %3843 = vmatpush1.bf16.msra.mxu1 %v4779_v44  ;;  %v928_v43 = vld [vmem:[#allocation8 + $0xfa8] sm:$0xff]  ;;  %v4825_v44 = vcombine.low %v915_v31, %v919_v32  ;;  %v450_v31 = vld [vmem:[#allocation8 + $0xb8] sm:$0xff] }
 0x1f4   :  { %3680 = vmatprep.subr.bf16.mxu0 %v4786_v51  ;;  %3844 = vmatprep.subr.bf16.mxu1 %v4788_v53  ;;  %v4827_v51 = vcombine.low %v916_v33, %v920_v34  ;;  %v4915_v53 = vld [vmem:[#allocation7] sm:$0xff]  ;;  %v4836_v55 = vcombine.high %v924_v41, %v928_v43  ;;  %v4835_v1 = vcombine.low %v924_v41, %v928_v43 }
 0x1f5   :  { %v150_v17 = vrot.slane %v4915_v53, %v5262_v37  ;;  %v465_v53 = vld [vmem:[#allocation8 + $0x130] sm:$0xff] }
 0x1f7   :  { %3681 = vmatpush1.bf16.msra.mxu0 %v4785_v57  ;;  %3845 = vmatpush1.bf16.msra.mxu1 %v4787_v59  ;;  %v935_v57 = vld [vmem:[#allocation8 + $0xfe0] sm:$0xff]  ;;  %v932_v59 = vld [vmem:[#allocation8 + $0xfc8] sm:$0xff]  ;;  %v405_v3 = vadd.f32 %v5219_v63, %v150_v17  ;;  %v438_v63 = vld [vmem:[#allocation8 + $0x58] sm:$0xff] }
 0x1f8   :  { %3682 = vmatprep.subr.bf16.mxu0 %v4794_v62  ;;  %3846 = vmatprep.subr.bf16.mxu1 %v4796_v0  ;;  %v936_v62 = vld [vmem:[#allocation8 + $0xfe8] sm:$0xff]  ;;  %v4833_v0 = vcombine.low %v923_v40, %v927_v58  ;;  %v4842_v4 = vcombine.high %v931_v56, %v935_v57  ;;  %v4841_v13 = vcombine.low %v931_v56, %v935_v57  ;;  %v458_v40 = vld [vmem:[#allocation8 + $0xf8] sm:$0xff] }
 0x1f9   :  { %v4844_v7 = vcombine.high %v932_v59, %v936_v62  ;;  %v4843_v18 = vcombine.low %v932_v59, %v936_v62  ;;  %v417_v19 = vmax.f32 %v405_v3, 0.0  ;;  %v466_v17 = vld [vmem:[#allocation8 + $0x138] sm:$0xff]  ;;  %v469_v59 = vld [vmem:[#allocation8 + $0x150] sm:$0xff] }
 0x1fa   :  { %v473_v62 = vld [vmem:[#allocation8 + $0x170] sm:$0xff] }
 0x1fb   :  { %3683 = vmatpush1.bf16.msra.mxu0 %v4793_v9  ;;  %3847 = vmatpush1.bf16.msra.mxu1 %v4795_v10  ;;  %v429_v9 = vld [vmem:[#allocation8 + $0x10] sm:$0xff]  ;;  %v5266_v26 = vpack.c.bf16 %v417_v19, %v417_v19 }
 0x1fc   :  { %3684 = vmatprep.subr.bf16.mxu0 %v4802_v11  ;;  %3848 = vmatprep.subr.bf16.mxu1 %v4804_v12  ;;  %v433_v10 = vld [vmem:[#allocation8 + $0x30] sm:$0xff]  ;;  %v430_v11 = vld [vmem:[#allocation8 + $0x18] sm:$0xff] }
 0x1fd   :  { %v434_v12 = vld [vmem:[#allocation8 + $0x38] sm:$0xff]  ;;  %v4342_v20 = vcombine.high %v429_v9, %v433_v10  ;;  %v4341_v25 = vcombine.low %v429_v9, %v433_v10  ;;  %v477_v10 = vld [vmem:[#allocation8 + $0x190] sm:$0xff] }
 0x1fe   :  { %v4343_v27 = vcombine.low %v430_v11, %v434_v12 }
 0x1ff   :  { %3685 = vmatpush1.bf16.msra.mxu0 %v4801_v21  ;;  %3849 = vmatpush1.bf16.msra.mxu1 %v4803_v22  ;;  %v4344_v21 = vcombine.high %v430_v11, %v434_v12  ;;  %v437_v22 = vld [vmem:[#allocation8 + $0x50] sm:$0xff]  ;;  %v478_v12 = vld [vmem:[#allocation8 + $0x198] sm:$0xff] }
 0x200   :  { %3686 = vmatprep.subr.bf16.mxu0 %v4810_v23  ;;  %3850 = vmatprep.subr.bf16.mxu1 %v4812_v24  ;;  %v441_v23 = vld [vmem:[#allocation8 + $0x70] sm:$0xff]  ;;  %v442_v24 = vld [vmem:[#allocation8 + $0x78] sm:$0xff] }
 0x201   :  { %v4350_v47 = vcombine.high %v437_v22, %v441_v23  ;;  %v4349_v32 = vcombine.low %v437_v22, %v441_v23  ;;  %v4351_v33 = vcombine.low %v438_v63, %v442_v24  ;;  %v481_v11 = vld [vmem:[#allocation8 + $0x1b0] sm:$0xff] }
 0x202   :  { %v485_v22 = vld [vmem:[#allocation8 + $0x1d0] sm:$0xff] }
 0x203   :  { %3687 = vmatpush1.bf16.msra.mxu0 %v4809_v28  ;;  %3851 = vmatpush1.bf16.msra.mxu1 %v4811_v16  ;;  %v4352_v28 = vcombine.high %v438_v63, %v442_v24  ;;  %v445_v16 = vld [vmem:[#allocation8 + $0x90] sm:$0xff]  ;;  %v486_v63 = vld [vmem:[#allocation8 + $0x1d8] sm:$0xff] }
 0x204   :  { %3688 = vmatprep.subr.bf16.mxu0 %v4818_v29  ;;  %3852 = vmatprep.subr.bf16.mxu1 %v4820_v30  ;;  %v449_v29 = vld [vmem:[#allocation8 + $0xb0] sm:$0xff]  ;;  %v446_v30 = vld [vmem:[#allocation8 + $0x98] sm:$0xff] }
 0x205   :  { %v4358_v34 = vcombine.high %v445_v16, %v449_v29  ;;  %v4357_v58 = vcombine.low %v445_v16, %v449_v29  ;;  %v4359_v41 = vcombine.low %v446_v30, %v450_v31  ;;  %v489_v23 = vld [vmem:[#allocation8 + $0x1f0] sm:$0xff]  ;;  %v490_v24 = vld [vmem:[#allocation8 + $0x1f8] sm:$0xff] }
 0x206   :  { %v493_v16 = vld [vmem:[#allocation8 + $0x210] sm:$0xff] }
 0x207   :  { %3689 = vmatpush1.bf16.msra.mxu0 %v4817_v36  ;;  %3853 = vmatpush1.bf16.msra.mxu1 %v4819_v5  ;;  %v4360_v36 = vcombine.high %v446_v30, %v450_v31  ;;  %v453_v5 = vld [vmem:[#allocation8 + $0xd0] sm:$0xff]  ;;  %v494_v30 = vld [vmem:[#allocation8 + $0x218] sm:$0xff] }
 0x208   :  { %3690 = vmatprep.subr.bf16.mxu0 %v4826_v38  ;;  %3854 = vmatprep.subr.bf16.mxu1 %v4828_v39  ;;  %v457_v38 = vld [vmem:[#allocation8 + $0xf0] sm:$0xff]  ;;  %v454_v39 = vld [vmem:[#allocation8 + $0xd8] sm:$0xff] }
 0x209   :  { %v4366_v43 = vcombine.high %v453_v5, %v457_v38  ;;  %v497_v29 = vld [vmem:[#allocation8 + $0x230] sm:$0xff]  ;;  %v498_v31 = vld [vmem:[#allocation8 + $0x238] sm:$0xff] }
 0x20b   :  { %3691 = vmatpush1.bf16.msra.mxu0 %v4825_v44  ;;  %3855 = vmatpush1.bf16.msra.mxu1 %v4827_v51  ;;  %v4368_v44 = vcombine.high %v454_v39, %v458_v40  ;;  %v461_v51 = vld [vmem:[#allocation8 + $0x110] sm:$0xff] }
 0x20c   :  { %3692 = vmatprep.subr.bf16.mxu0 %v4834_v54  ;;  %3856 = vmatprep.subr.bf16.mxu1 %v4836_v55  ;;  %v4365_v54 = vcombine.low %v453_v5, %v457_v38  ;;  %v4367_v55 = vcombine.low %v454_v39, %v458_v40  ;;  %v4374_v56 = vcombine.high %v461_v51, %v465_v53  ;;  %v501_v5 = vld [vmem:[#allocation8 + $0x250] sm:$0xff]  ;;  %v502_v39 = vld [vmem:[#allocation8 + $0x258] sm:$0xff] }
 0x20d   :  { %v4373_v3 = vcombine.low %v461_v51, %v465_v53  ;;  %v505_v38 = vld [vmem:[#allocation8 + $0x270] sm:$0xff]  ;;  %v506_v40 = vld [vmem:[#allocation8 + $0x278] sm:$0xff] }
 0x20e   :  { %v509_v51 = vld [vmem:[#allocation8 + $0x290] sm:$0xff] }
 0x20f   :  { %3693 = vmatpush1.bf16.msra.mxu0 %v4833_v0  ;;  %3857 = vmatpush1.bf16.msra.mxu1 %v4835_v1  ;;  %v470_v0 = vld [vmem:[#allocation8 + $0x158] sm:$0xff]  ;;  %v513_v53 = vld [vmem:[#allocation8 + $0x2b0] sm:$0xff] }
 0x210   :  { %3694 = vmatprep.subr.bf16.mxu0 %v4842_v4  ;;  %3858 = vmatprep.subr.bf16.mxu1 %v4844_v7  ;;  %v474_v1 = vld [vmem:[#allocation8 + $0x178] sm:$0xff]  ;;  %v4382_v7 = vcombine.high %v469_v59, %v473_v62 }
 0x211   :  { %v4384_v9 = vcombine.high %v470_v0, %v474_v1  ;;  %v4383_v19 = vcombine.low %v470_v0, %v474_v1  ;;  %v518_v0 = vld [vmem:[#allocation8 + $0x2d8] sm:$0xff] }
 0x212   :  { %v522_v1 = vld [vmem:[#allocation8 + $0x2f8] sm:$0xff] }
 0x213   :  { %3695 = vmatpush1.bf16.msra.mxu0 %v4841_v13  ;;  %3859 = vmatpush1.bf16.msra.mxu1 %v4843_v18  ;;  %v482_v13 = vld [vmem:[#allocation8 + $0x1b8] sm:$0xff]  ;;  %v4381_v18 = vcombine.low %v469_v59, %v473_v62  ;;  %v517_v59 = vld [vmem:[#allocation8 + $0x2d0] sm:$0xff] }
 0x214   :  { %3869 = vmatprep.subr.bf16.mxu0 %v4342_v20  ;;  %4033 = vmatprep.subr.bf16.mxu1 %v4344_v21  ;;  %v4390_v20 = vcombine.high %v477_v10, %v481_v11  ;;  %v4392_v21 = vcombine.high %v478_v12, %v482_v13  ;;  %v521_v62 = vld [vmem:[#allocation8 + $0x2f0] sm:$0xff] }
 0x216   :  { %3697 = vmatmul.mubr.bf16.vlgmr.msra.gmra.mrb[8].mxu0 %v5266_v26  ;;  %3861 = vmatmul.mubr.bf16.vlgmr.msra.gmra.mrb[8].mxu1 %v5266_v26 }
 0x217   :  { %3870 = vmatpush1.bf16.msra.mxu0 %v4341_v25  ;;  %3901 = vmatprep.mubr.bf16.mxu0 %v5203_v6  ;;  %v4389_v25 = vcombine.low %v477_v10, %v481_v11  ;;  %v525_v10 = vld [vmem:[#allocation8 + $0x310] sm:$0xff] }
 0x218   :  { %4034 = vmatpush1.bf16.msra.mxu1 %v4343_v27  ;;  %4065 = vmatprep.mubr.bf16.mxu1 %v5203_v6  ;;  %v462_v6 = vld [vmem:[#allocation8 + $0x118] sm:$0xff]  ;;  %v4391_v27 = vcombine.low %v478_v12, %v482_v13  ;;  %v529_v11 = vld [vmem:[#allocation8 + $0x330] sm:$0xff] }
 0x219   :  { %3871 = vmatprep.subr.bf16.mxu0 %v4350_v47  ;;  %4035 = vmatprep.subr.bf16.mxu1 %v4352_v28  ;;  %v4376_v57 = vcombine.high %v462_v6, %v466_v17  ;;  %v4375_v4 = vcombine.low %v462_v6, %v466_v17  ;;  %v4398_v47 = vcombine.high %v485_v22, %v489_v23  ;;  %v510_v6 = vld [vmem:[#allocation8 + $0x298] sm:$0xff] }
 0x21a   :  { %v4400_v28 = vcombine.high %v486_v63, %v490_v24  ;;  %v514_v17 = vld [vmem:[#allocation8 + $0x2b8] sm:$0xff] }
 0x21b   :  { %3872 = vmatpush1.bf16.msra.mxu0 %v4349_v32  ;;  %v4397_v32 = vcombine.low %v485_v22, %v489_v23  ;;  %v526_v12 = vld [vmem:[#allocation8 + $0x318] sm:$0xff]  ;;  %v533_v22 = vld [vmem:[#allocation8 + $0x350] sm:$0xff] }
 0x21c   :  { %4036 = vmatpush1.bf16.msra.mxu1 %v4351_v33  ;;  %3873 = vmatprep.subr.bf16.mxu0 %v4358_v34  ;;  %v4399_v33 = vcombine.low %v486_v63, %v490_v24  ;;  %v4406_v34 = vcombine.high %v493_v16, %v497_v29  ;;  %v530_v13 = vld [vmem:[#allocation8 + $0x338] sm:$0xff]  ;;  %v537_v23 = vld [vmem:[#allocation8 + $0x370] sm:$0xff] }
 0x21d   :  { %4037 = vmatprep.subr.bf16.mxu1 %v4360_v36  ;;  %v4408_v36 = vcombine.high %v494_v30, %v498_v31  ;;  %v534_v63 = vld [vmem:[#allocation8 + $0x358] sm:$0xff] }
 0x21e   :  { %v538_v24 = vld [vmem:[#allocation8 + $0x378] sm:$0xff] }
 0x21f   :  { %3874 = vmatpush1.bf16.msra.mxu0 %v4357_v58  ;;  %v4405_v58 = vcombine.low %v493_v16, %v497_v29  ;;  %v541_v16 = vld [vmem:[#allocation8 + $0x390] sm:$0xff] }
 0x220   :  { %4038 = vmatpush1.bf16.msra.mxu1 %v4359_v41  ;;  %3875 = vmatprep.subr.bf16.mxu0 %v4366_v43  ;;  %v4407_v41 = vcombine.low %v494_v30, %v498_v31  ;;  %v4414_v43 = vcombine.high %v501_v5, %v505_v38  ;;  %v545_v29 = vld [vmem:[#allocation8 + $0x3b0] sm:$0xff]  ;;  %v542_v30 = vld [vmem:[#allocation8 + $0x398] sm:$0xff] }
 0x221   :  { %4039 = vmatprep.subr.bf16.mxu1 %v4368_v44  ;;  %v4416_v44 = vcombine.high %v502_v39, %v506_v40  ;;  %v546_v31 = vld [vmem:[#allocation8 + $0x3b8] sm:$0xff] }
 0x223   :  { %3876 = vmatpush1.bf16.msra.mxu0 %v4365_v54  ;;  %v4413_v54 = vcombine.low %v501_v5, %v505_v38  ;;  %v549_v5 = vld [vmem:[#allocation8 + $0x3d0] sm:$0xff] }
 0x224   :  { %4040 = vmatpush1.bf16.msra.mxu1 %v4367_v55  ;;  %3877 = vmatprep.subr.bf16.mxu0 %v4374_v56  ;;  %v4415_v55 = vcombine.low %v502_v39, %v506_v40  ;;  %v4422_v56 = vcombine.high %v509_v51, %v513_v53  ;;  %v553_v38 = vld [vmem:[#allocation8 + $0x3f0] sm:$0xff]  ;;  %v550_v39 = vld [vmem:[#allocation8 + $0x3d8] sm:$0xff] }
 0x225   :  { %4041 = vmatprep.subr.bf16.mxu1 %v4376_v57  ;;  %v4424_v57 = vcombine.high %v510_v6, %v514_v17  ;;  %v554_v40 = vld [vmem:[#allocation8 + $0x3f8] sm:$0xff] }
 0x227   :  { %3878 = vmatpush1.bf16.msra.mxu0 %v4373_v3  ;;  %v4421_v3 = vcombine.low %v509_v51, %v513_v53  ;;  %v557_v51 = vld [vmem:[#allocation8 + $0x410] sm:$0xff] }
 0x228   :  { %4042 = vmatpush1.bf16.msra.mxu1 %v4375_v4  ;;  %3879 = vmatprep.subr.bf16.mxu0 %v4382_v7  ;;  %v4423_v4 = vcombine.low %v510_v6, %v514_v17  ;;  %v4430_v7 = vcombine.high %v517_v59, %v521_v62  ;;  %v561_v53 = vld [vmem:[#allocation8 + $0x430] sm:$0xff]  ;;  %v558_v6 = vld [vmem:[#allocation8 + $0x418] sm:$0xff] }
 0x229   :  { %4043 = vmatprep.subr.bf16.mxu1 %v4384_v9  ;;  %v4432_v9 = vcombine.high %v518_v0, %v522_v1  ;;  %v562_v17 = vld [vmem:[#allocation8 + $0x438] sm:$0xff] }
 0x22b   :  { %3880 = vmatpush1.bf16.msra.mxu0 %v4381_v18  ;;  %v4429_v18 = vcombine.low %v517_v59, %v521_v62  ;;  %v565_v59 = vld [vmem:[#allocation8 + $0x450] sm:$0xff] }
 0x22c   :  { %4044 = vmatpush1.bf16.msra.mxu1 %v4383_v19  ;;  %3881 = vmatprep.subr.bf16.mxu0 %v4390_v20  ;;  %v4431_v19 = vcombine.low %v518_v0, %v522_v1  ;;  %v4438_v20 = vcombine.high %v525_v10, %v529_v11  ;;  %v569_v62 = vld [vmem:[#allocation8 + $0x470] sm:$0xff]  ;;  %v4469_v0 = vcombine.low %v557_v51, %v561_v53  ;;  %v566_v1 = vld [vmem:[#allocation8 + $0x458] sm:$0xff] }
 0x22d   :  { %4045 = vmatprep.subr.bf16.mxu1 %v4392_v21  ;;  %v4440_v21 = vcombine.high %v526_v12, %v530_v13 }
 0x22f   :  { %3882 = vmatpush1.bf16.msra.mxu0 %v4389_v25  ;;  %v4437_v25 = vcombine.low %v525_v10, %v529_v11  ;;  %v577_v10 = vld [vmem:[#allocation8 + $0x4b0] sm:$0xff] }
 0x230   :  { %4046 = vmatpush1.bf16.msra.mxu1 %v4391_v27  ;;  %3883 = vmatprep.subr.bf16.mxu0 %v4398_v47  ;;  %v4439_v27 = vcombine.low %v526_v12, %v530_v13  ;;  %v4446_v47 = vcombine.high %v533_v22, %v537_v23  ;;  %v574_v12 = vld [vmem:[#allocation8 + $0x498] sm:$0xff] }
 0x231   :  { %4047 = vmatprep.subr.bf16.mxu1 %v4400_v28  ;;  %v4448_v28 = vcombine.high %v534_v63, %v538_v24  ;;  %v578_v13 = vld [vmem:[#allocation8 + $0x4b8] sm:$0xff] }
 0x233   :  { %3884 = vmatpush1.bf16.msra.mxu0 %v4397_v32  ;;  %v4445_v32 = vcombine.low %v533_v22, %v537_v23  ;;  %v581_v22 = vld [vmem:[#allocation8 + $0x4d0] sm:$0xff] }
 0x234   :  { %4048 = vmatpush1.bf16.msra.mxu1 %v4399_v33  ;;  %3885 = vmatprep.subr.bf16.mxu0 %v4406_v34  ;;  %v4447_v33 = vcombine.low %v534_v63, %v538_v24  ;;  %v4454_v34 = vcombine.high %v541_v16, %v545_v29  ;;  %v585_v23 = vld [vmem:[#allocation8 + $0x4f0] sm:$0xff]  ;;  %v582_v63 = vld [vmem:[#allocation8 + $0x4d8] sm:$0xff] }
 0x235   :  { %4049 = vmatprep.subr.bf16.mxu1 %v4408_v36  ;;  %v4456_v36 = vcombine.high %v542_v30, %v546_v31  ;;  %v586_v24 = vld [vmem:[#allocation8 + $0x4f8] sm:$0xff] }
 0x237   :  { %3886 = vmatpush1.bf16.msra.mxu0 %v4405_v58  ;;  %v4453_v58 = vcombine.low %v541_v16, %v545_v29  ;;  %v593_v16 = vld [vmem:[#allocation8 + $0x530] sm:$0xff]  ;;  %v590_v29 = vld [vmem:[#allocation8 + $0x518] sm:$0xff] }
 0x238   :  { %4050 = vmatpush1.bf16.msra.mxu1 %v4407_v41  ;;  %3887 = vmatprep.subr.bf16.mxu0 %v4414_v43  ;;  %v4455_v41 = vcombine.low %v542_v30, %v546_v31  ;;  %v4462_v43 = vcombine.high %v549_v5, %v553_v38  ;;  %v594_v30 = vld [vmem:[#allocation8 + $0x538] sm:$0xff]  ;;  %v4495_v31 = vcombine.low %v582_v63, %v586_v24 }
 0x239   :  { %4051 = vmatprep.subr.bf16.mxu1 %v4416_v44  ;;  %v4464_v44 = vcombine.high %v550_v39, %v554_v40 }
 0x23b   :  { %3888 = vmatpush1.bf16.msra.mxu0 %v4413_v54  ;;  %v4461_v54 = vcombine.low %v549_v5, %v553_v38  ;;  %v598_v5 = vld [vmem:[#allocation8 + $0x558] sm:$0xff] }
 0x23c   :  { %4052 = vmatpush1.bf16.msra.mxu1 %v4415_v55  ;;  %3889 = vmatprep.subr.bf16.mxu0 %v4422_v56  ;;  %v4463_v55 = vcombine.low %v550_v39, %v554_v40  ;;  %v4470_v56 = vcombine.high %v557_v51, %v561_v53  ;;  %v602_v38 = vld [vmem:[#allocation8 + $0x578] sm:$0xff]  ;;  %v4503_v40 = vcombine.low %v590_v29, %v594_v30 }
 0x23d   :  { %4053 = vmatprep.subr.bf16.mxu1 %v4424_v57  ;;  %v4472_v57 = vcombine.high %v558_v6, %v562_v17  ;;  %v606_v51 = vld [vmem:[#allocation8 + $0x598] sm:$0xff] }
 0x23e   :  { %v610_v53 = vld [vmem:[#allocation8 + $0x5b8] sm:$0xff] }
 0x23f   :  { %3890 = vmatpush1.bf16.msra.mxu0 %v4421_v3  ;;  %v570_v3 = vld [vmem:[#allocation8 + $0x478] sm:$0xff] }
 0x240   :  { %4054 = vmatpush1.bf16.msra.mxu1 %v4423_v4  ;;  %3891 = vmatprep.subr.bf16.mxu0 %v4430_v7  ;;  %v4471_v4 = vcombine.low %v558_v6, %v562_v17  ;;  %v4478_v7 = vcombine.high %v565_v59, %v569_v62  ;;  %v4480_v11 = vcombine.high %v566_v1, %v570_v3 }
 0x241   :  { %4055 = vmatprep.subr.bf16.mxu1 %v4432_v9  ;;  %v573_v9 = vld [vmem:[#allocation8 + $0x490] sm:$0xff]  ;;  %v4511_v17 = vcombine.low %v598_v5, %v602_v38 }
 0x243   :  { %3892 = vmatpush1.bf16.msra.mxu0 %v4429_v18  ;;  %v4477_v18 = vcombine.low %v565_v59, %v569_v62  ;;  %v614_v59 = vld [vmem:[#allocation8 + $0x5d8] sm:$0xff] }
 0x244   :  { %4056 = vmatpush1.bf16.msra.mxu1 %v4431_v19  ;;  %3893 = vmatprep.subr.bf16.mxu0 %v4438_v20  ;;  %v4479_v19 = vcombine.low %v566_v1, %v570_v3  ;;  %v4486_v20 = vcombine.high %v573_v9, %v577_v10  ;;  %v618_v62 = vld [vmem:[#allocation8 + $0x5f8] sm:$0xff]  ;;  %v4519_v1 = vcombine.low %v606_v51, %v610_v53 }
 0x245   :  { %4057 = vmatprep.subr.bf16.mxu1 %v4440_v21  ;;  %v4488_v21 = vcombine.high %v574_v12, %v578_v13 }
 0x247   :  { %3894 = vmatpush1.bf16.msra.mxu0 %v4437_v25  ;;  %v4485_v25 = vcombine.low %v573_v9, %v577_v10  ;;  %v625_v9 = vld [vmem:[#allocation8 + $0x630] sm:$0xff]  ;;  %v622_v10 = vld [vmem:[#allocation8 + $0x618] sm:$0xff] }
 0x248   :  { %4058 = vmatpush1.bf16.msra.mxu1 %v4439_v27  ;;  %3895 = vmatprep.subr.bf16.mxu0 %v4446_v47  ;;  %v4494_v27 = vcombine.high %v581_v22, %v585_v23  ;;  %v4496_v47 = vcombine.high %v582_v63, %v586_v24 }
 0x249   :  { %4059 = vmatprep.subr.bf16.mxu1 %v4448_v28  ;;  %v589_v28 = vld [vmem:[#allocation8 + $0x510] sm:$0xff] }
 0x24a   :  { %v4501_v39 = vcombine.low %v589_v28, %v593_v16 }
 0x24b   :  { %3896 = vmatpush1.bf16.msra.mxu0 %v4445_v32  ;;  %v4502_v32 = vcombine.high %v589_v28, %v593_v16  ;;  %v638_v28 = vld [vmem:[#allocation8 + $0x698] sm:$0xff] }
 0x24c   :  { %4060 = vmatpush1.bf16.msra.mxu1 %v4447_v33  ;;  %3897 = vmatprep.subr.bf16.mxu0 %v4454_v34  ;;  %v4504_v33 = vcombine.high %v590_v29, %v594_v30  ;;  %v597_v34 = vld [vmem:[#allocation8 + $0x550] sm:$0xff]  ;;  %v642_v16 = vld [vmem:[#allocation8 + $0x6b8] sm:$0xff] }
 0x24d   :  { %4061 = vmatprep.subr.bf16.mxu1 %v4456_v36  ;;  %v601_v36 = vld [vmem:[#allocation8 + $0x570] sm:$0xff] }
 0x24e   :  { %v4509_v6 = vcombine.low %v597_v34, %v601_v36 }
 0x24f   :  { %3898 = vmatpush1.bf16.msra.mxu0 %v4453_v58  ;;  %v4510_v58 = vcombine.high %v597_v34, %v601_v36  ;;  %v646_v34 = vld [vmem:[#allocation8 + $0x6d8] sm:$0xff] }
 0x250   :  { %4062 = vmatpush1.bf16.msra.mxu1 %v4455_v41  ;;  %3899 = vmatprep.subr.bf16.mxu0 %v4462_v43  ;;  %v4512_v41 = vcombine.high %v598_v5, %v602_v38  ;;  %v605_v43 = vld [vmem:[#allocation8 + $0x590] sm:$0xff]  ;;  %v650_v36 = vld [vmem:[#allocation8 + $0x6f8] sm:$0xff]  ;;  %v4551_v38 = vcombine.low %v638_v28, %v642_v16 }
 0x251   :  { %4063 = vmatprep.subr.bf16.mxu1 %v4464_v44  ;;  %v609_v44 = vld [vmem:[#allocation8 + $0x5b0] sm:$0xff] }
 0x253   :  { %3900 = vmatpush1.bf16.msra.mxu0 %v4461_v54  ;;  %v4518_v54 = vcombine.high %v605_v43, %v609_v44 }
 0x254   :  { %4064 = vmatpush1.bf16.msra.mxu1 %v4463_v55  ;;  %3910 = vmatprep.subr.bf16.mxu0 %v4470_v56  ;;  %v4520_v55 = vcombine.high %v606_v51, %v610_v53  ;;  %v613_v56 = vld [vmem:[#allocation8 + $0x5d0] sm:$0xff]  ;;  %v4559_v53 = vcombine.low %v646_v34, %v650_v36 }
 0x255   :  { %4074 = vmatprep.subr.bf16.mxu1 %v4472_v57  ;;  %v617_v57 = vld [vmem:[#allocation8 + $0x5f0] sm:$0xff] }
 0x256   :  { %3902 = vmatmul.mubr.bf16.vlgmr.msra.gmra.mrb[12].mxu0 %v5205_v8  ;;  %v4526_v3 = vcombine.high %v613_v56, %v617_v57 }
 0x257   :  { %4066 = vmatmul.mubr.bf16.vlgmr.msra.gmra.mrb[12].mxu1 %v5205_v8  ;;  %3911 = vmatpush1.bf16.msra.mxu0 %v4469_v0  ;;  %v4487_v8 = vcombine.low %v574_v12, %v578_v13  ;;  %v4517_v0 = vcombine.low %v605_v43, %v609_v44  ;;  %v4525_v12 = vcombine.low %v613_v56, %v617_v57  ;;  %v654_v43 = vld [vmem:[#allocation8 + $0x718] sm:$0xff] }
 0x258   :  { %3942 = vmatprep.mubr.bf16.mxu0 %v5209_v15  ;;  %4075 = vmatpush1.bf16.msra.mxu1 %v4471_v4  ;;  %v4528_v4 = vcombine.high %v614_v59, %v618_v62  ;;  %v4527_v13 = vcombine.low %v614_v59, %v618_v62  ;;  %v658_v44 = vld [vmem:[#allocation8 + $0x738] sm:$0xff] }
 0x259   :  { %4106 = vmatprep.mubr.bf16.mxu1 %v5209_v15  ;;  %3912 = vmatprep.subr.bf16.mxu0 %v4478_v7  ;;  %v4493_v15 = vcombine.low %v581_v22, %v585_v23  ;;  %v621_v7 = vld [vmem:[#allocation8 + $0x610] sm:$0xff]  ;;  %v630_v22 = vld [vmem:[#allocation8 + $0x658] sm:$0xff]  ;;  %v4567_v62 = vcombine.low %v654_v43, %v658_v44 }
 0x25a   :  { %4076 = vmatprep.subr.bf16.mxu1 %v4480_v11  ;;  %v626_v11 = vld [vmem:[#allocation8 + $0x638] sm:$0xff]  ;;  %v4533_v63 = vcombine.low %v621_v7, %v625_v9 }
 0x25b   :  { %3913 = vmatpush1.bf16.msra.mxu0 %v4477_v18  ;;  %v4534_v18 = vcombine.high %v621_v7, %v625_v9  ;;  %v634_v23 = vld [vmem:[#allocation8 + $0x678] sm:$0xff]  ;;  %v4535_v24 = vcombine.low %v622_v10, %v626_v11 }
 0x25c   :  { %4077 = vmatpush1.bf16.msra.mxu1 %v4479_v19  ;;  %3914 = vmatprep.subr.bf16.mxu0 %v4486_v20  ;;  %v4536_v19 = vcombine.high %v622_v10, %v626_v11  ;;  %v629_v20 = vld [vmem:[#allocation8 + $0x650] sm:$0xff]  ;;  %v4543_v30 = vcombine.low %v630_v22, %v634_v23  ;;  %v662_v56 = vld [vmem:[#allocation8 + $0x758] sm:$0xff] }
 0x25d   :  { %4078 = vmatprep.subr.bf16.mxu1 %v4488_v21  ;;  %v633_v21 = vld [vmem:[#allocation8 + $0x670] sm:$0xff]  ;;  %v666_v57 = vld [vmem:[#allocation8 + $0x778] sm:$0xff] }
 0x25e   :  { %v4541_v29 = vcombine.low %v629_v20, %v633_v21  ;;  %v670_v7 = vld [vmem:[#allocation8 + $0x798] sm:$0xff]  ;;  %v4575_v11 = vcombine.low %v662_v56, %v666_v57 }
 0x25f   :  { %3915 = vmatpush1.bf16.msra.mxu0 %v4485_v25  ;;  %v4542_v25 = vcombine.high %v629_v20, %v633_v21  ;;  %v674_v9 = vld [vmem:[#allocation8 + $0x7b8] sm:$0xff] }
 0x260   :  { %4079 = vmatpush1.bf16.msra.mxu1 %v4487_v8  ;;  %3916 = vmatprep.subr.bf16.mxu0 %v4494_v27  ;;  %v4544_v8 = vcombine.high %v630_v22, %v634_v23  ;;  %v637_v27 = vld [vmem:[#allocation8 + $0x690] sm:$0xff]  ;;  %v678_v20 = vld [vmem:[#allocation8 + $0x7d8] sm:$0xff]  ;;  %v4583_v23 = vcombine.low %v670_v7, %v674_v9 }
 0x261   :  { %4080 = vmatprep.subr.bf16.mxu1 %v4496_v47  ;;  %v641_v47 = vld [vmem:[#allocation8 + $0x6b0] sm:$0xff]  ;;  %v682_v21 = vld [vmem:[#allocation8 + $0x7f8] sm:$0xff] }
 0x262   :  { %v4549_v5 = vcombine.low %v637_v27, %v641_v47 }
 0x263   :  { %3917 = vmatpush1.bf16.msra.mxu0 %v4493_v15  ;;  %v4550_v15 = vcombine.high %v637_v27, %v641_v47  ;;  %v686_v27 = vld [vmem:[#allocation8 + $0x818] sm:$0xff] }
 0x264   :  { %4081 = vmatpush1.bf16.msra.mxu1 %v4495_v31  ;;  %3918 = vmatprep.subr.bf16.mxu0 %v4502_v32  ;;  %v4552_v31 = vcombine.high %v638_v28, %v642_v16  ;;  %v645_v32 = vld [vmem:[#allocation8 + $0x6d0] sm:$0xff]  ;;  %v690_v47 = vld [vmem:[#allocation8 + $0x838] sm:$0xff]  ;;  %v4591_v16 = vcombine.low %v678_v20, %v682_v21 }
 0x265   :  { %4082 = vmatprep.subr.bf16.mxu1 %v4504_v33  ;;  %v649_v33 = vld [vmem:[#allocation8 + $0x6f0] sm:$0xff] }
 0x266   :  { %v4557_v51 = vcombine.low %v645_v32, %v649_v33 }
 0x267   :  { %3919 = vmatpush1.bf16.msra.mxu0 %v4501_v39  ;;  %v4558_v39 = vcombine.high %v645_v32, %v649_v33  ;;  %v694_v33 = vld [vmem:[#allocation8 + $0x858] sm:$0xff] }
 0x268   :  { %4083 = vmatpush1.bf16.msra.mxu1 %v4503_v40  ;;  %3920 = vmatprep.subr.bf16.mxu0 %v4510_v58  ;;  %v4560_v40 = vcombine.high %v646_v34, %v650_v36  ;;  %v653_v58 = vld [vmem:[#allocation8 + $0x710] sm:$0xff]  ;;  %v698_v34 = vld [vmem:[#allocation8 + $0x878] sm:$0xff]  ;;  %v4599_v36 = vcombine.low %v686_v27, %v690_v47 }
 0x269   :  { %4084 = vmatprep.subr.bf16.mxu1 %v4512_v41  ;;  %v657_v41 = vld [vmem:[#allocation8 + $0x730] sm:$0xff] }
 0x26a   :  { %v4565_v59 = vcombine.low %v653_v58, %v657_v41 }
 0x26b   :  { %3921 = vmatpush1.bf16.msra.mxu0 %v4509_v6  ;;  %v4566_v6 = vcombine.high %v653_v58, %v657_v41  ;;  %v702_v58 = vld [vmem:[#allocation8 + $0x898] sm:$0xff] }
 0x26c   :  { %4085 = vmatpush1.bf16.msra.mxu1 %v4511_v17  ;;  %3922 = vmatprep.subr.bf16.mxu0 %v4518_v54  ;;  %v4568_v17 = vcombine.high %v654_v43, %v658_v44  ;;  %v661_v54 = vld [vmem:[#allocation8 + $0x750] sm:$0xff]  ;;  %v706_v41 = vld [vmem:[#allocation8 + $0x8b8] sm:$0xff]  ;;  %v4607_v44 = vcombine.low %v694_v33, %v698_v34 }
 0x26d   :  { %4086 = vmatprep.subr.bf16.mxu1 %v4520_v55  ;;  %v665_v55 = vld [vmem:[#allocation8 + $0x770] sm:$0xff] }
 0x26e   :  { %v4573_v10 = vcombine.low %v661_v54, %v665_v55 }
 0x26f   :  { %3923 = vmatpush1.bf16.msra.mxu0 %v4517_v0  ;;  %v4574_v0 = vcombine.high %v661_v54, %v665_v55  ;;  %v710_v54 = vld [vmem:[#allocation8 + $0x8d8] sm:$0xff] }
 0x270   :  { %4087 = vmatpush1.bf16.msra.mxu1 %v4519_v1  ;;  %3924 = vmatprep.subr.bf16.mxu0 %v4526_v3  ;;  %v4576_v1 = vcombine.high %v662_v56, %v666_v57  ;;  %v669_v3 = vld [vmem:[#allocation8 + $0x790] sm:$0xff]  ;;  %v714_v55 = vld [vmem:[#allocation8 + $0x8f8] sm:$0xff] }
 0x271   :  { %4088 = vmatprep.subr.bf16.mxu1 %v4528_v4  ;;  %v673_v4 = vld [vmem:[#allocation8 + $0x7b0] sm:$0xff] }
 0x272   :  { %v4581_v22 = vcombine.low %v669_v3, %v673_v4 }
 0x273   :  { %3925 = vmatpush1.bf16.msra.mxu0 %v4525_v12  ;;  %v4582_v12 = vcombine.high %v669_v3, %v673_v4  ;;  %v722_v3 = vld [vmem:[#allocation8 + $0x938] sm:$0xff]  ;;  %v4623_v4 = vcombine.low %v710_v54, %v714_v55 }
 0x274   :  { %4089 = vmatpush1.bf16.msra.mxu1 %v4527_v13  ;;  %3926 = vmatprep.subr.bf16.mxu0 %v4534_v18  ;;  %v4584_v13 = vcombine.high %v670_v7, %v674_v9  ;;  %v677_v18 = vld [vmem:[#allocation8 + $0x7d0] sm:$0xff] }
 0x275   :  { %4090 = vmatprep.subr.bf16.mxu1 %v4536_v19  ;;  %v681_v19 = vld [vmem:[#allocation8 + $0x7f0] sm:$0xff] }
 0x276   :  { %v4589_v28 = vcombine.low %v677_v18, %v681_v19 }
 0x277   :  { %3927 = vmatpush1.bf16.msra.mxu0 %v4533_v63  ;;  %v4590_v63 = vcombine.high %v677_v18, %v681_v19 }
 0x278   :  { %4091 = vmatpush1.bf16.msra.mxu1 %v4535_v24  ;;  %3928 = vmatprep.subr.bf16.mxu0 %v4542_v25  ;;  %v4592_v24 = vcombine.high %v678_v20, %v682_v21  ;;  %v685_v25 = vld [vmem:[#allocation8 + $0x810] sm:$0xff] }
 0x279   :  { %4092 = vmatprep.subr.bf16.mxu1 %v4544_v8  ;;  %v689_v8 = vld [vmem:[#allocation8 + $0x830] sm:$0xff] }
 0x27a   :  { %v4597_v32 = vcombine.low %v685_v25, %v689_v8 }
 0x27b   :  { %3929 = vmatpush1.bf16.msra.mxu0 %v4541_v29  ;;  %v4598_v29 = vcombine.high %v685_v25, %v689_v8 }
 0x27c   :  { %4093 = vmatpush1.bf16.msra.mxu1 %v4543_v30  ;;  %3930 = vmatprep.subr.bf16.mxu0 %v4550_v15  ;;  %v4600_v30 = vcombine.high %v686_v27, %v690_v47  ;;  %v693_v15 = vld [vmem:[#allocation8 + $0x850] sm:$0xff] }
 0x27d   :  { %4094 = vmatprep.subr.bf16.mxu1 %v4552_v31  ;;  %v697_v31 = vld [vmem:[#allocation8 + $0x870] sm:$0xff] }
 0x27e   :  { %v4605_v43 = vcombine.low %v693_v15, %v697_v31 }
 0x27f   :  { %3931 = vmatpush1.bf16.msra.mxu0 %v4549_v5  ;;  %v4606_v5 = vcombine.high %v693_v15, %v697_v31 }
 0x280   :  { %4095 = vmatpush1.bf16.msra.mxu1 %v4551_v38  ;;  %3932 = vmatprep.subr.bf16.mxu0 %v4558_v39  ;;  %v701_v38 = vld [vmem:[#allocation8 + $0x890] sm:$0xff] }
 0x281   :  { %4096 = vmatprep.subr.bf16.mxu1 %v4560_v40  ;;  %v705_v39 = vld [vmem:[#allocation8 + $0x8b0] sm:$0xff]  ;;  %v4608_v40 = vcombine.high %v694_v33, %v698_v34 }
 0x282   :  { %v4613_v56 = vcombine.low %v701_v38, %v705_v39  ;;  %v749_v34 = vld [vmem:[#allocation8 + $0xa10] sm:$0xff] }
 0x283   :  { %3933 = vmatpush1.bf16.msra.mxu0 %v4557_v51  ;;  %v4614_v51 = vcombine.high %v701_v38, %v705_v39  ;;  %v754_v38 = vld [vmem:[#allocation8 + $0xa38] sm:$0xff] }
 0x284   :  { %4097 = vmatpush1.bf16.msra.mxu1 %v4559_v53  ;;  %3934 = vmatprep.subr.bf16.mxu0 %v4566_v6  ;;  %v4616_v53 = vcombine.high %v702_v58, %v706_v41  ;;  %v709_v6 = vld [vmem:[#allocation8 + $0x8d0] sm:$0xff] }
 0x285   :  { %4098 = vmatprep.subr.bf16.mxu1 %v4568_v17  ;;  %v713_v17 = vld [vmem:[#allocation8 + $0x8f0] sm:$0xff] }
 0x286   :  { %v4622_v57 = vcombine.high %v709_v6, %v713_v17 }
 0x287   :  { %3935 = vmatpush1.bf16.msra.mxu0 %v4565_v59  ;;  %v4624_v59 = vcombine.high %v710_v54, %v714_v55 }
 0x288   :  { %4099 = vmatpush1.bf16.msra.mxu1 %v4567_v62  ;;  %3936 = vmatprep.subr.bf16.mxu0 %v4574_v0  ;;  %v717_v62 = vld [vmem:[#allocation8 + $0x910] sm:$0xff] }
 0x289   :  { %4100 = vmatprep.subr.bf16.mxu1 %v4576_v1  ;;  %v721_v0 = vld [vmem:[#allocation8 + $0x930] sm:$0xff]  ;;  %v718_v1 = vld [vmem:[#allocation8 + $0x918] sm:$0xff] }
 0x28a   :  { %v4630_v7 = vcombine.high %v717_v62, %v721_v0  ;;  %v4632_v9 = vcombine.high %v718_v1, %v722_v3  ;;  %v4629_v18 = vcombine.low %v717_v62, %v721_v0  ;;  %v4631_v19 = vcombine.low %v718_v1, %v722_v3 }
 0x28b   :  { %3937 = vmatpush1.bf16.msra.mxu0 %v4573_v10  ;;  %v725_v10 = vld [vmem:[#allocation8 + $0x950] sm:$0xff] }
 0x28c   :  { %4101 = vmatpush1.bf16.msra.mxu1 %v4575_v11  ;;  %3938 = vmatprep.subr.bf16.mxu0 %v4582_v12  ;;  %v729_v11 = vld [vmem:[#allocation8 + $0x970] sm:$0xff]  ;;  %v726_v12 = vld [vmem:[#allocation8 + $0x958] sm:$0xff] }
 0x28d   :  { %4102 = vmatprep.subr.bf16.mxu1 %v4584_v13  ;;  %v730_v13 = vld [vmem:[#allocation8 + $0x978] sm:$0xff]  ;;  %v4638_v20 = vcombine.high %v725_v10, %v729_v11  ;;  %v4637_v25 = vcombine.low %v725_v10, %v729_v11 }
 0x28e   :  { %v4640_v21 = vcombine.high %v726_v12, %v730_v13  ;;  %v4639_v8 = vcombine.low %v726_v12, %v730_v13 }
 0x28f   :  { %3939 = vmatpush1.bf16.msra.mxu0 %v4581_v22  ;;  %v733_v22 = vld [vmem:[#allocation8 + $0x990] sm:$0xff] }
 0x290   :  { %4103 = vmatpush1.bf16.msra.mxu1 %v4583_v23  ;;  %3940 = vmatprep.subr.bf16.mxu0 %v4590_v63  ;;  %v737_v23 = vld [vmem:[#allocation8 + $0x9b0] sm:$0xff]  ;;  %v734_v63 = vld [vmem:[#allocation8 + $0x998] sm:$0xff] }
 0x291   :  { %4104 = vmatprep.subr.bf16.mxu1 %v4592_v24  ;;  %v738_v24 = vld [vmem:[#allocation8 + $0x9b8] sm:$0xff]  ;;  %v4646_v27 = vcombine.high %v733_v22, %v737_v23  ;;  %v4645_v15 = vcombine.low %v733_v22, %v737_v23 }
 0x292   :  { %v4648_v47 = vcombine.high %v734_v63, %v738_v24  ;;  %v4647_v31 = vcombine.low %v734_v63, %v738_v24 }
 0x293   :  { %3941 = vmatpush1.bf16.msra.mxu0 %v4589_v28  ;;  %v741_v28 = vld [vmem:[#allocation8 + $0x9d0] sm:$0xff] }
 0x294   :  { %4105 = vmatpush1.bf16.msra.mxu1 %v4591_v16  ;;  %3951 = vmatprep.subr.bf16.mxu0 %v4598_v29  ;;  %v745_v16 = vld [vmem:[#allocation8 + $0x9f0] sm:$0xff]  ;;  %v742_v29 = vld [vmem:[#allocation8 + $0x9d8] sm:$0xff] }
 0x295   :  { %4115 = vmatprep.subr.bf16.mxu1 %v4600_v30  ;;  %v746_v30 = vld [vmem:[#allocation8 + $0x9f8] sm:$0xff]  ;;  %v4653_v39 = vcombine.low %v741_v28, %v745_v16 }
 0x296   :  { %3943 = vmatmul.mubr.bf16.vlgmr.msra.gmra.mrb[12].mxu0 %v5234_v52  ;;  %v4656_v33 = vcombine.high %v742_v29, %v746_v30 }
 0x297   :  { %4107 = vmatmul.mubr.bf16.vlgmr.msra.gmra.mrb[12].mxu1 %v5234_v52  ;;  %3952 = vmatpush1.bf16.msra.mxu0 %v4597_v32  ;;  %v4615_v52 = vcombine.low %v702_v58, %v706_v41  ;;  %v4654_v32 = vcombine.high %v741_v28, %v745_v16 }
 0x298   :  { %3983 = vmatprep.mubr.bf16.mxu0 %v5236_v61  ;;  %4116 = vmatpush1.bf16.msra.mxu1 %v4599_v36  ;;  %v753_v36 = vld [vmem:[#allocation8 + $0xa30] sm:$0xff] }
 0x299   :  { %4147 = vmatprep.mubr.bf16.mxu1 %v5236_v61  ;;  %3953 = vmatprep.subr.bf16.mxu0 %v4606_v5  ;;  %v4621_v61 = vcombine.low %v709_v6, %v713_v17  ;;  %v750_v5 = vld [vmem:[#allocation8 + $0xa18] sm:$0xff]  ;;  %v4662_v58 = vcombine.high %v749_v34, %v753_v36  ;;  %v4661_v6 = vcombine.low %v749_v34, %v753_v36 }
 0x29a   :  { %4117 = vmatprep.subr.bf16.mxu1 %v4608_v40  ;;  %v4655_v40 = vcombine.low %v742_v29, %v746_v30  ;;  %v4664_v41 = vcombine.high %v750_v5, %v754_v38  ;;  %v4663_v17 = vcombine.low %v750_v5, %v754_v38 }
 0x29b   :  { %3954 = vmatpush1.bf16.msra.mxu0 %v4605_v43  ;;  %v757_v43 = vld [vmem:[#allocation8 + $0xa50] sm:$0xff] }
 0x29c   :  { %4118 = vmatpush1.bf16.msra.mxu1 %v4607_v44  ;;  %3955 = vmatprep.subr.bf16.mxu0 %v4614_v51  ;;  %v761_v44 = vld [vmem:[#allocation8 + $0xa70] sm:$0xff]  ;;  %v758_v51 = vld [vmem:[#allocation8 + $0xa58] sm:$0xff] }
 0x29d   :  { %4119 = vmatprep.subr.bf16.mxu1 %v4616_v53  ;;  %v762_v53 = vld [vmem:[#allocation8 + $0xa78] sm:$0xff]  ;;  %v4670_v54 = vcombine.high %v757_v43, %v761_v44  ;;  %v4669_v62 = vcombine.low %v757_v43, %v761_v44 }
 0x29e   :  { %v4672_v55 = vcombine.high %v758_v51, %v762_v53  ;;  %v4671_v0 = vcombine.low %v758_v51, %v762_v53 }
 0x29f   :  { %3956 = vmatpush1.bf16.msra.mxu0 %v4613_v56  ;;  %v765_v56 = vld [vmem:[#allocation8 + $0xa90] sm:$0xff] }
 0x2a0   :  { %4120 = vmatpush1.bf16.msra.mxu1 %v4615_v52  ;;  %3957 = vmatprep.subr.bf16.mxu0 %v4622_v57  ;;  %v769_v52 = vld [vmem:[#allocation8 + $0xab0] sm:$0xff]  ;;  %v766_v57 = vld [vmem:[#allocation8 + $0xa98] sm:$0xff] }
 0x2a1   :  { %4121 = vmatprep.subr.bf16.mxu1 %v4624_v59  ;;  %v770_v59 = vld [vmem:[#allocation8 + $0xab8] sm:$0xff]  ;;  %v4678_v1 = vcombine.high %v765_v56, %v769_v52  ;;  %v4677_v10 = vcombine.low %v765_v56, %v769_v52 }
 0x2a2   :  { %v4680_v3 = vcombine.high %v766_v57, %v770_v59  ;;  %v4679_v11 = vcombine.low %v766_v57, %v770_v59 }
 0x2a3   :  { %3958 = vmatpush1.bf16.msra.mxu0 %v4621_v61  ;;  %v773_v61 = vld [vmem:[#allocation8 + $0xad0] sm:$0xff] }
 0x2a4   :  { %4122 = vmatpush1.bf16.msra.mxu1 %v4623_v4  ;;  %3959 = vmatprep.subr.bf16.mxu0 %v4630_v7  ;;  %v777_v4 = vld [vmem:[#allocation8 + $0xaf0] sm:$0xff]  ;;  %v774_v7 = vld [vmem:[#allocation8 + $0xad8] sm:$0xff] }
 0x2a5   :  { %4123 = vmatprep.subr.bf16.mxu1 %v4632_v9  ;;  %v778_v9 = vld [vmem:[#allocation8 + $0xaf8] sm:$0xff]  ;;  %v4686_v12 = vcombine.high %v773_v61, %v777_v4  ;;  %v4685_v22 = vcombine.low %v773_v61, %v777_v4 }
 0x2a6   :  { %v4688_v13 = vcombine.high %v774_v7, %v778_v9  ;;  %v4687_v23 = vcombine.low %v774_v7, %v778_v9  ;;  %v826_v61 = vld [vmem:[#allocation8 + $0xc78] sm:$0xff]  ;;  %v829_v9 = vld [vmem:[#allocation8 + $0xc90] sm:$0xff] }
 0x2a7   :  { %3960 = vmatpush1.bf16.msra.mxu0 %v4629_v18  ;;  %v781_v18 = vld [vmem:[#allocation8 + $0xb10] sm:$0xff] }
 0x2a8   :  { %4124 = vmatpush1.bf16.msra.mxu1 %v4631_v19  ;;  %3961 = vmatprep.subr.bf16.mxu0 %v4638_v20  ;;  %v785_v19 = vld [vmem:[#allocation8 + $0xb30] sm:$0xff]  ;;  %v782_v20 = vld [vmem:[#allocation8 + $0xb18] sm:$0xff] }
 0x2a9   :  { %4125 = vmatprep.subr.bf16.mxu1 %v4640_v21  ;;  %v786_v21 = vld [vmem:[#allocation8 + $0xb38] sm:$0xff]  ;;  %v4694_v63 = vcombine.high %v781_v18, %v785_v19  ;;  %v4693_v28 = vcombine.low %v781_v18, %v785_v19 }
 0x2aa   :  { %v4696_v24 = vcombine.high %v782_v20, %v786_v21  ;;  %v4695_v16 = vcombine.low %v782_v20, %v786_v21 }
 0x2ab   :  { %3962 = vmatpush1.bf16.msra.mxu0 %v4637_v25  ;;  %v789_v25 = vld [vmem:[#allocation8 + $0xb50] sm:$0xff] }
 0x2ac   :  { %4126 = vmatpush1.bf16.msra.mxu1 %v4639_v8  ;;  %3963 = vmatprep.subr.bf16.mxu0 %v4646_v27  ;;  %v793_v8 = vld [vmem:[#allocation8 + $0xb70] sm:$0xff]  ;;  %v790_v27 = vld [vmem:[#allocation8 + $0xb58] sm:$0xff] }
 0x2ad   :  { %4127 = vmatprep.subr.bf16.mxu1 %v4648_v47  ;;  %v794_v47 = vld [vmem:[#allocation8 + $0xb78] sm:$0xff]  ;;  %v4702_v29 = vcombine.high %v789_v25, %v793_v8  ;;  %v4701_v34 = vcombine.low %v789_v25, %v793_v8 }
 0x2ae   :  { %v4704_v30 = vcombine.high %v790_v27, %v794_v47  ;;  %v4703_v36 = vcombine.low %v790_v27, %v794_v47  ;;  %v845_v47 = vld [vmem:[#allocation8 + $0xd10] sm:$0xff] }
 0x2af   :  { %3964 = vmatpush1.bf16.msra.mxu0 %v4645_v15  ;;  %v797_v15 = vld [vmem:[#allocation8 + $0xb90] sm:$0xff] }
 0x2b0   :  { %4128 = vmatpush1.bf16.msra.mxu1 %v4647_v31  ;;  %3965 = vmatprep.subr.bf16.mxu0 %v4654_v32  ;;  %v801_v31 = vld [vmem:[#allocation8 + $0xbb0] sm:$0xff]  ;;  %v798_v32 = vld [vmem:[#allocation8 + $0xb98] sm:$0xff] }
 0x2b1   :  { %4129 = vmatprep.subr.bf16.mxu1 %v4656_v33  ;;  %v802_v33 = vld [vmem:[#allocation8 + $0xbb8] sm:$0xff]  ;;  %v4710_v5 = vcombine.high %v797_v15, %v801_v31  ;;  %v4709_v43 = vcombine.low %v797_v15, %v801_v31 }
 0x2b2   :  { %v4712_v38 = vcombine.high %v798_v32, %v802_v33  ;;  %v4711_v44 = vcombine.low %v798_v32, %v802_v33  ;;  %v853_v33 = vld [vmem:[#allocation8 + $0xd50] sm:$0xff] }
 0x2b3   :  { %3966 = vmatpush1.bf16.msra.mxu0 %v4653_v39  ;;  %v805_v39 = vld [vmem:[#allocation8 + $0xbd0] sm:$0xff] }
 0x2b4   :  { %4130 = vmatpush1.bf16.msra.mxu1 %v4655_v40  ;;  %3967 = vmatprep.subr.bf16.mxu0 %v4662_v58  ;;  %v809_v40 = vld [vmem:[#allocation8 + $0xbf0] sm:$0xff]  ;;  %v806_v58 = vld [vmem:[#allocation8 + $0xbd8] sm:$0xff] }
 0x2b5   :  { %4131 = vmatprep.subr.bf16.mxu1 %v4664_v41  ;;  %v810_v41 = vld [vmem:[#allocation8 + $0xbf8] sm:$0xff]  ;;  %v4718_v51 = vcombine.high %v805_v39, %v809_v40  ;;  %v4717_v56 = vcombine.low %v805_v39, %v809_v40  ;;  %v5289_v40 = vld [vmem:[#allocation10] sm:$0xff] }
 0x2b6   :  { %v4720_v53 = vcombine.high %v806_v58, %v810_v41  ;;  %v4719_v52 = vcombine.low %v806_v58, %v810_v41 }
 0x2b7   :  { %3968 = vmatpush1.bf16.msra.mxu0 %v4661_v6  ;;  %v813_v6 = vld [vmem:[#allocation8 + $0xc10] sm:$0xff] }
 0x2b8   :  { %4132 = vmatpush1.bf16.msra.mxu1 %v4663_v17  ;;  %3969 = vmatprep.subr.bf16.mxu0 %v4670_v54  ;;  %v817_v17 = vld [vmem:[#allocation8 + $0xc30] sm:$0xff]  ;;  %v814_v54 = vld [vmem:[#allocation8 + $0xc18] sm:$0xff] }
 0x2b9   :  { %4133 = vmatprep.subr.bf16.mxu1 %v4672_v55  ;;  %v818_v55 = vld [vmem:[#allocation8 + $0xc38] sm:$0xff]  ;;  %v4726_v57 = vcombine.high %v813_v6, %v817_v17 }
 0x2ba   :  { %v4728_v59 = vcombine.high %v814_v54, %v818_v55  ;;  %v4727_v4 = vcombine.low %v814_v54, %v818_v55  ;;  %v862_v54 = vld [vmem:[#allocation8 + $0xd98] sm:$0xff] }
 0x2bb   :  { %3970 = vmatpush1.bf16.msra.mxu0 %v4669_v62  ;;  %v821_v62 = vld [vmem:[#allocation8 + $0xc50] sm:$0xff]  ;;  %v866_v55 = vld [vmem:[#allocation8 + $0xdb8] sm:$0xff] }
 0x2bc   :  { %4134 = vmatpush1.bf16.msra.mxu1 %v4671_v0  ;;  %3971 = vmatprep.subr.bf16.mxu0 %v4678_v1  ;;  %v825_v0 = vld [vmem:[#allocation8 + $0xc70] sm:$0xff]  ;;  %v4725_v1 = vcombine.low %v813_v6, %v817_v17  ;;  %v952_v17 = vrot.slane %v5289_v40, %v5224_v2 }
 0x2bd   :  { %4135 = vmatprep.subr.bf16.mxu1 %v4680_v3  ;;  %v822_v3 = vld [vmem:[#allocation8 + $0xc58] sm:$0xff]  ;;  %v4734_v7 = vcombine.high %v821_v62, %v825_v0  ;;  %v4733_v18 = vcombine.low %v821_v62, %v825_v0 }
 0x2be   :  { %v4735_v19 = vcombine.low %v822_v3, %v826_v61 }
 0x2bf   :  { %3972 = vmatpush1.bf16.msra.mxu0 %v4677_v10  ;;  %v833_v10 = vld [vmem:[#allocation8 + $0xcb0] sm:$0xff] }
 0x2c0   :  { %4136 = vmatpush1.bf16.msra.mxu1 %v4679_v11  ;;  %3973 = vmatprep.subr.bf16.mxu0 %v4686_v12  ;;  %v4736_v11 = vcombine.high %v822_v3, %v826_v61  ;;  %v830_v12 = vld [vmem:[#allocation8 + $0xc98] sm:$0xff]  ;;  %v4742_v20 = vcombine.high %v829_v9, %v833_v10  ;;  %v4741_v25 = vcombine.low %v829_v9, %v833_v10 }
 0x2c1   :  { %4137 = vmatprep.subr.bf16.mxu1 %v4688_v13  ;;  %v834_v13 = vld [vmem:[#allocation8 + $0xcb8] sm:$0xff] }
 0x2c2   :  { %v4744_v21 = vcombine.high %v830_v12, %v834_v13 }
 0x2c3   :  { %3974 = vmatpush1.bf16.msra.mxu0 %v4685_v22  ;;  %v837_v22 = vld [vmem:[#allocation8 + $0xcd0] sm:$0xff] }
 0x2c4   :  { %4138 = vmatpush1.bf16.msra.mxu1 %v4687_v23  ;;  %3975 = vmatprep.subr.bf16.mxu0 %v4694_v63  ;;  %v841_v23 = vld [vmem:[#allocation8 + $0xcf0] sm:$0xff]  ;;  %v838_v63 = vld [vmem:[#allocation8 + $0xcd8] sm:$0xff] }
 0x2c5   :  { %4139 = vmatprep.subr.bf16.mxu1 %v4696_v24  ;;  %v842_v24 = vld [vmem:[#allocation8 + $0xcf8] sm:$0xff]  ;;  %v4750_v8 = vcombine.high %v837_v22, %v841_v23 }
 0x2c6   :  { %v4752_v27 = vcombine.high %v838_v63, %v842_v24  ;;  %v4751_v15 = vcombine.low %v838_v63, %v842_v24 }
 0x2c7   :  { %3976 = vmatpush1.bf16.msra.mxu0 %v4693_v28  ;;  %v849_v28 = vld [vmem:[#allocation8 + $0xd30] sm:$0xff] }
 0x2c8   :  { %4140 = vmatpush1.bf16.msra.mxu1 %v4695_v16  ;;  %3977 = vmatprep.subr.bf16.mxu0 %v4702_v29  ;;  %v846_v16 = vld [vmem:[#allocation8 + $0xd18] sm:$0xff]  ;;  %v4758_v31 = vcombine.high %v845_v47, %v849_v28  ;;  %v4757_v39 = vcombine.low %v845_v47, %v849_v28 }
 0x2c9   :  { %4141 = vmatprep.subr.bf16.mxu1 %v4704_v30  ;;  %v850_v29 = vld [vmem:[#allocation8 + $0xd38] sm:$0xff]  ;;  %v5284_v30 = vld [vmem:[#allocation11] sm:$0xff] }
 0x2ca   :  { %v4760_v32 = vcombine.high %v846_v16, %v850_v29  ;;  %v4759_v58 = vcombine.low %v846_v16, %v850_v29 }
 0x2cb   :  { %3978 = vmatpush1.bf16.msra.mxu0 %v4701_v34  ;;  %v857_v34 = vld [vmem:[#allocation8 + $0xd70] sm:$0xff] }
 0x2cc   :  { %4142 = vmatpush1.bf16.msra.mxu1 %v4703_v36  ;;  %3979 = vmatprep.subr.bf16.mxu0 %v4710_v5  ;;  %v5287_v36 = vunpack.c.l.bf16 %v5284_v30  ;;  %v854_v5 = vld [vmem:[#allocation8 + $0xd58] sm:$0xff]  ;;  %v4766_v41 = vcombine.high %v853_v33, %v857_v34 }
 0x2cd   :  { %4143 = vmatprep.subr.bf16.mxu1 %v4712_v38  ;;  %v858_v38 = vld [vmem:[#allocation8 + $0xd78] sm:$0xff] }
 0x2ce   :  { %v4213_v6 = vrot.slane %v5287_v36, %v5187_v46  ;;  %v4767_v62 = vcombine.low %v854_v5, %v858_v38  ;;  %v4221_v61 = vrot.slane %v5287_v36, %v5243_v50 }
 0x2cf   :  { %3980 = vmatpush1.bf16.msra.mxu0 %v4709_v43  ;;  %v4768_v43 = vcombine.high %v854_v5, %v858_v38 }
 0x2d0   :  { %4144 = vmatpush1.bf16.msra.mxu1 %v4711_v44  ;;  %3981 = vmatprep.subr.bf16.mxu0 %v4718_v51  ;;  %v861_v44 = vld [vmem:[#allocation8 + $0xd90] sm:$0xff]  ;;  %v4253_v10 = vrot.slane %v4213_v6, %v5187_v46  ;;  %v4261_v16 = vrot.slane %v4221_v61, %v5187_v46  ;;  %v894_v61 = vld [vmem:[#allocation8 + $0xe98] sm:$0xff] }
 0x2d1   :  { %4145 = vmatprep.subr.bf16.mxu1 %v4720_v53  ;;  %v865_v51 = vld [vmem:[#allocation8 + $0xdb0] sm:$0xff]  ;;  %v944_v53 = vrot.slane %v5289_v40, %v5187_v46 }
 0x2d2   :  { %v4774_v0 = vcombine.high %v861_v44, %v865_v51  ;;  %v4773_v24 = vcombine.low %v861_v44, %v865_v51  ;;  %v889_v6 = vld [vmem:[#allocation8 + $0xe70] sm:$0xff] }
 0x2d3   :  { %3982 = vmatpush1.bf16.msra.mxu0 %v4717_v56  ;;  %v948_v56 = vrot.slane %v5289_v40, %v129_v48  ;;  %v869_v48 = vld [vmem:[#allocation8 + $0xdd0] sm:$0xff] }
 0x2d4   :  { %4146 = vmatpush1.bf16.msra.mxu1 %v4719_v52  ;;  %3992 = vmatprep.subr.bf16.mxu0 %v4726_v57  ;;  %v4217_v52 = vrot.slane %v5287_v36, %v5224_v2  ;;  %v956_v57 = vrot.slane %v5289_v40, %v137_v49 }
 0x2d5   :  { %4156 = vmatprep.subr.bf16.mxu1 %v4728_v59  ;;  %v4765_v59 = vcombine.low %v853_v33, %v857_v34  ;;  %v878_v33 = vld [vmem:[#allocation8 + $0xe18] sm:$0xff] }
 0x2d6   :  { %3984 = vmatmul.mubr.bf16.vlgmr.msra.gmra.mrb[12].mxu0 %v5253_v35  ;;  %v882_v34 = vld [vmem:[#allocation8 + $0xe38] sm:$0xff] }
 0x2d7   :  { %4148 = vmatmul.mubr.bf16.vlgmr.msra.gmra.mrb[12].mxu1 %v5253_v35  ;;  %3993 = vmatpush1.bf16.msra.mxu0 %v4725_v1  ;;  %v4743_v35 = vcombine.low %v830_v12, %v834_v13  ;;  %v4225_v13 = vrot.slane %v5287_v36, %v5262_v37  ;;  %v4792_v51 = vcombine.high %v878_v33, %v882_v34 }
 0x2d8   :  { %4024 = vmatprep.mubr.bf16.mxu0 %v5255_v42  ;;  %4157 = vmatpush1.bf16.msra.mxu1 %v4727_v4  ;;  %v4776_v4 = vcombine.high %v862_v54, %v866_v55 }
 0x2d9   :  { %4188 = vmatprep.mubr.bf16.mxu1 %v5255_v42  ;;  %3994 = vmatprep.subr.bf16.mxu0 %v4734_v7  ;;  %v4749_v42 = vcombine.low %v837_v22, %v841_v23  ;;  %v873_v7 = vld [vmem:[#allocation8 + $0xdf0] sm:$0xff]  ;;  %v4265_v38 = vrot.slane %v4225_v13, %v5187_v46  ;;  %v906_v13 = vld [vmem:[#allocation8 + $0xef8] sm:$0xff] }
 0x2da   :  { %4158 = vmatprep.subr.bf16.mxu1 %v4736_v11  ;;  %v4782_v47 = vcombine.high %v869_v48, %v873_v7 }
 0x2db   :  { %3995 = vmatpush1.bf16.msra.mxu0 %v4733_v18  ;;  %v870_v18 = vld [vmem:[#allocation8 + $0xdd8] sm:$0xff] }
 0x2dc   :  { %4159 = vmatpush1.bf16.msra.mxu1 %v4735_v19  ;;  %3996 = vmatprep.subr.bf16.mxu0 %v4742_v20  ;;  %v874_v19 = vld [vmem:[#allocation8 + $0xdf8] sm:$0xff] }
 0x2dd   :  { %4160 = vmatprep.subr.bf16.mxu1 %v4744_v21  ;;  %v4257_v21 = vrot.slane %v4217_v52, %v5187_v46 }
 0x2df   :  { %3997 = vmatpush1.bf16.msra.mxu0 %v4741_v25 }
 0x2e0   :  { %4161 = vmatpush1.bf16.msra.mxu1 %v4743_v35  ;;  %3998 = vmatprep.subr.bf16.mxu0 %v4750_v8 }
 0x2e1   :  { %4162 = vmatprep.subr.bf16.mxu1 %v4752_v27  ;;  %v4775_v27 = vcombine.low %v862_v54, %v866_v55  ;;  %v890_v54 = vld [vmem:[#allocation8 + $0xe78] sm:$0xff] }
 0x2e3   :  { %3999 = vmatpush1.bf16.msra.mxu0 %v4749_v42  ;;  %v4784_v42 = vcombine.high %v870_v18, %v874_v19 }
 0x2e4   :  { %4163 = vmatpush1.bf16.msra.mxu1 %v4751_v15  ;;  %4000 = vmatprep.subr.bf16.mxu0 %v4758_v31  ;;  %v877_v15 = vld [vmem:[#allocation8 + $0xe10] sm:$0xff] }
 0x2e5   :  { %4164 = vmatprep.subr.bf16.mxu1 %v4760_v32  ;;  %v881_v31 = vld [vmem:[#allocation8 + $0xe30] sm:$0xff] }
 0x2e6   :  { %v4789_v52 = vcombine.low %v877_v15, %v881_v31 }
 0x2e7   :  { %4001 = vmatpush1.bf16.msra.mxu0 %v4757_v39  ;;  %v4781_v39 = vcombine.low %v869_v48, %v873_v7 }
 0x2e8   :  { %4165 = vmatpush1.bf16.msra.mxu1 %v4759_v58  ;;  %4002 = vmatprep.subr.bf16.mxu0 %v4766_v41  ;;  %v4783_v58 = vcombine.low %v870_v18, %v874_v19  ;;  %v4790_v41 = vcombine.high %v877_v15, %v881_v31 }
 0x2e9   :  { %v3698_v1 = vpop.f32.mrb[8].mxu0  ;;  %v3862_v3 = vpop.f32.mrb[8].mxu1  ;;  %4166 = vmatprep.subr.bf16.mxu1 %v4768_v43 }
 0x2ea   :  { %v4850_v9 = vadd.f32 %v3698_v1, %v944_v53  ;;  %v4852_v11 = vadd.f32 %v3862_v3, %v952_v17  ;;  %v3700_v12 = vpop.f32.mrb[9].mxu0  ;;  %v3864_v49 = vpop.f32.mrb[9].mxu1  ;;  %v885_v53 = vld [vmem:[#allocation8 + $0xe50] sm:$0xff]  ;;  %v886_v17 = vld [vmem:[#allocation8 + $0xe58] sm:$0xff] }
 0x2eb   :  { %v4851_v20 = vadd.f32 %v3700_v12, %v948_v56  ;;  %v4853_v22 = vadd.f32 %v3864_v49, %v956_v57  ;;  %v3702_v23 = vpop.f32.mrb[10].mxu0  ;;  %v3866_v63 = vpop.f32.mrb[10].mxu1  ;;  %4003 = vmatpush1.bf16.msra.mxu0 %v4765_v59  ;;  %v4791_v57 = vcombine.low %v878_v33, %v882_v34  ;;  %v4798_v59 = vcombine.high %v885_v53, %v889_v6  ;;  %v893_v1 = vld [vmem:[#allocation8 + $0xe90] sm:$0xff]  ;;  %v902_v49 = vld [vmem:[#allocation8 + $0xed8] sm:$0xff] }
 0x2ec   :  { %v4197_v25 = vmax.f32 %v4850_v9, 0.0  ;;  %4167 = vmatpush1.bf16.msra.mxu1 %v4767_v62  ;;  %v3703_v35 = vpop.f32.mrb[11].mxu0  ;;  %v3867_v8 = vpop.f32.mrb[11].mxu1  ;;  %4004 = vmatprep.subr.bf16.mxu0 %v4774_v0  ;;  %v4199_v28 = vmax.f32 %v4852_v11, 0.0  ;;  %v4800_v0 = vcombine.high %v886_v17, %v890_v54  ;;  %v897_v3 = vld [vmem:[#allocation8 + $0xeb0] sm:$0xff]  ;;  %v4797_v48 = vcombine.low %v885_v53, %v889_v6  ;;  %v910_v63 = vld [vmem:[#allocation8 + $0xf18] sm:$0xff] }
 0x2ed   :  { %v4198_v29 = vmax.f32 %v4851_v20, 0.0  ;;  %4168 = vmatprep.subr.bf16.mxu1 %v4776_v4  ;;  %v4200_v5 = vmax.f32 %v4853_v22, 0.0  ;;  %v898_v4 = vld [vmem:[#allocation8 + $0xeb8] sm:$0xff]  ;;  %v4799_v7 = vcombine.low %v886_v17, %v890_v54  ;;  %v4806_v9 = vcombine.high %v893_v1, %v897_v3  ;;  %v901_v11 = vld [vmem:[#allocation8 + $0xed0] sm:$0xff] }
 0x2ee   :  { %v4282_v32 = vmul.f32 %v4253_v10, %v4197_v25  ;;  %v4284_v43 = vmul.f32 %v4261_v16, %v4199_v28  ;;  %v4808_v10 = vcombine.high %v894_v61, %v898_v4  ;;  %v905_v12 = vld [vmem:[#allocation8 + $0xef0] sm:$0xff]  ;;  %v4805_v18 = vcombine.low %v893_v1, %v897_v3  ;;  %v918_v16 = vld [vmem:[#allocation8 + $0xf58] sm:$0xff] }
 0x2ef   :  { %v4283_v36 = vmul.f32 %v4257_v21, %v4198_v29  ;;  %4005 = vmatpush1.bf16.msra.mxu0 %v4773_v24  ;;  %v4285_v55 = vmul.f32 %v4265_v38, %v4200_v5  ;;  %v4807_v19 = vcombine.low %v894_v61, %v898_v4  ;;  %v4814_v20 = vcombine.high %v901_v11, %v905_v12  ;;  %v909_v22 = vld [vmem:[#allocation8 + $0xf10] sm:$0xff]  ;;  %v914_v24 = vld [vmem:[#allocation8 + $0xf38] sm:$0xff] }
 0x2f0   :  { %4169 = vmatpush1.bf16.msra.mxu1 %v4775_v27  ;;  %4006 = vmatprep.subr.bf16.mxu0 %v4782_v47  ;;  %v4816_v21 = vcombine.high %v902_v49, %v906_v13  ;;  %v913_v23 = vld [vmem:[#allocation8 + $0xf30] sm:$0xff]  ;;  %v4813_v25 = vcombine.low %v901_v11, %v905_v12  ;;  %v4815_v35 = vcombine.low %v902_v49, %v906_v13  ;;  %v922_v29 = vld [vmem:[#allocation8 + $0xf78] sm:$0xff] }
 0x2f1   :  { %v4290_v44 = vadd.f32 %v4283_v36, %v4282_v32  ;;  %4170 = vmatprep.subr.bf16.mxu1 %v4784_v42  ;;  %v4822_v8 = vcombine.high %v909_v22, %v913_v23  ;;  %v4824_v27 = vcombine.high %v910_v63, %v914_v24  ;;  %v917_v47 = vld [vmem:[#allocation8 + $0xf50] sm:$0xff]  ;;  %v4821_v42 = vcombine.low %v909_v22, %v913_v23  ;;  %v926_v36 = vld [vmem:[#allocation8 + $0xf98] sm:$0xff] }
 0x2f2   :  { %v921_v28 = vld [vmem:[#allocation8 + $0xf70] sm:$0xff]  ;;  %v4823_v15 = vcombine.low %v910_v63, %v914_v24  ;;  %v4832_v32 = vcombine.high %v918_v16, %v922_v29  ;;  %v930_v5 = vld [vmem:[#allocation8 + $0xfb8] sm:$0xff]  ;;  %v968_v1 = vrot.slane %v5289_v40, %v5262_v37  ;;  %v964_v3 = vrot.slane %v5289_v40, %v145_v14 }
 0x2f3   :  { %v4291_v56 = vadd.f32 %v4290_v44, %v4284_v43  ;;  %4007 = vmatpush1.bf16.msra.mxu0 %v4781_v39  ;;  %v4830_v31 = vcombine.high %v917_v47, %v921_v28  ;;  %v925_v33 = vld [vmem:[#allocation8 + $0xf90] sm:$0xff]  ;;  %v4829_v38 = vcombine.low %v917_v47, %v921_v28  ;;  %v4831_v39 = vcombine.low %v918_v16, %v922_v29  ;;  %v938_v53 = vld [vmem:[#allocation8 + $0xff8] sm:$0xff]  ;;  %v4849_v16 = vld [vmem:[#allocation2] ss:$0 sm:$0xff] }
 0x2f4   :  { %4171 = vmatpush1.bf16.msra.mxu1 %v4783_v58  ;;  %4008 = vmatprep.subr.bf16.mxu0 %v4790_v41  ;;  %v929_v34 = vld [vmem:[#allocation8 + $0xfb0] sm:$0xff]  ;;  %v4840_v41 = vcombine.high %v926_v36, %v930_v5  ;;  %v4839_v17 = vcombine.low %v926_v36, %v930_v5 }
 0x2f5   :  { %v5313_v62 = vadd.f32 %v4291_v56, %v4285_v55  ;;  %4172 = vmatprep.subr.bf16.mxu1 %v4792_v51  ;;  %v4838_v58 = vcombine.high %v925_v33, %v929_v34  ;;  %v933_v43 = vld [vmem:[#allocation8 + $0xfd0] sm:$0xff]  ;;  %v934_v51 = vld [vmem:[#allocation8 + $0xfd8] sm:$0xff]  ;;  %v4837_v6 = vcombine.low %v925_v33, %v929_v34 }
 0x2f6   :  { %v937_v44 = vld [vmem:[#allocation8 + $0xff0] sm:$0xff]  ;;  %v4848_v55 = vcombine.high %v934_v51, %v938_v53 }
 0x2f7   :  { %4009 = vmatpush1.bf16.msra.mxu0 %v4789_v52  ;;  %v4846_v54 = vcombine.high %v933_v43, %v937_v44  ;;  %v4845_v56 = vcombine.low %v933_v43, %v937_v44  ;;  %v4847_v52 = vcombine.low %v934_v51, %v938_v53 }
 0x2f8   :  { %4173 = vmatpush1.bf16.msra.mxu1 %v4791_v57  ;;  %4010 = vmatprep.subr.bf16.mxu0 %v4798_v59  ;;  %v4207_v57 = vunpack.c.h.bf16 %v5284_v30  ;;  %v960_v59 = vrot.slane %v5289_v40, %v5243_v50 }
 0x2f9   :  { %4174 = vmatprep.subr.bf16.mxu1 %v4800_v0 }
 0x2fa   :  { %v4229_v0 = vrot.slane %v4207_v57, %v5187_v46  ;;  %v4233_v61 = vrot.slane %v4207_v57, %v5224_v2 }
 0x2fb   :  { %4011 = vmatpush1.bf16.msra.mxu0 %v4797_v48 }
 0x2fc   :  { %4175 = vmatpush1.bf16.msra.mxu1 %v4799_v7  ;;  %4012 = vmatprep.subr.bf16.mxu0 %v4806_v9  ;;  %v4269_v48 = vrot.slane %v4229_v0, %v5187_v46  ;;  %v4237_v9 = vrot.slane %v4207_v57, %v5243_v50  ;;  %v4273_v49 = vrot.slane %v4233_v61, %v5187_v46 }
 0x2fd   :  { %4176 = vmatprep.subr.bf16.mxu1 %v4808_v10 }
 0x2fe   :  { %v4277_v23 = vrot.slane %v4237_v9, %v5187_v46 }
 0x2ff   :  { %4013 = vmatpush1.bf16.msra.mxu0 %v4805_v18 }
 0x300   :  { %4177 = vmatpush1.bf16.msra.mxu1 %v4807_v19  ;;  %4014 = vmatprep.subr.bf16.mxu0 %v4814_v20 }
 0x301   :  { %4178 = vmatprep.subr.bf16.mxu1 %v4816_v21 }
 0x303   :  { %4015 = vmatpush1.bf16.msra.mxu0 %v4813_v25 }
 0x304   :  { %4179 = vmatpush1.bf16.msra.mxu1 %v4815_v35  ;;  %4016 = vmatprep.subr.bf16.mxu0 %v4822_v8 }
 0x305   :  { %4180 = vmatprep.subr.bf16.mxu1 %v4824_v27 }
 0x307   :  { %4017 = vmatpush1.bf16.msra.mxu0 %v4821_v42 }
 0x308   :  { %4181 = vmatpush1.bf16.msra.mxu1 %v4823_v15  ;;  %4018 = vmatprep.subr.bf16.mxu0 %v4830_v31 }
 0x309   :  { %4182 = vmatprep.subr.bf16.mxu1 %v4832_v32 }
 0x30b   :  { %4019 = vmatpush1.bf16.msra.mxu0 %v4829_v38 }
 0x30c   :  { %4183 = vmatpush1.bf16.msra.mxu1 %v4831_v39  ;;  %4020 = vmatprep.subr.bf16.mxu0 %v4838_v58 }
 0x30d   :  { %4184 = vmatprep.subr.bf16.mxu1 %v4840_v41 }
 0x30f   :  { %4021 = vmatpush1.bf16.msra.mxu0 %v4837_v6 }
 0x310   :  { %4185 = vmatpush1.bf16.msra.mxu1 %v4839_v17  ;;  %4022 = vmatprep.subr.bf16.mxu0 %v4846_v54 }
 0x311   :  { %4186 = vmatprep.subr.bf16.mxu1 %v4848_v55 }
 0x313   :  { %4023 = vmatpush1.bf16.msra.mxu0 %v4845_v56 }
 0x314   :  { %4187 = vmatpush1.bf16.msra.mxu1 %v4847_v52 }
 0x316   :  { %4025 = vmatmul.mubr.bf16.vlgmr.msra.gmra.mrb[12].mxu0 %v5266_v26 }
 0x317   :  { %4189 = vmatmul.mubr.bf16.vlgmr.msra.gmra.mrb[12].mxu1 %v5266_v26  ;;  %v972_v26 = vrot.slane %v5289_v40, %v153_v60  ;;  %v4241_v60 = vrot.slane %v4207_v57, %v5262_v37 }
 0x319   :  { %v4281_v25 = vrot.slane %v4241_v60, %v5187_v46 }
 0x3e9   :  { %v4026_v4 = vpop.f32.mrb[12].mxu0 }
 0x3ea   :  { %v4854_v30 = vadd.f32 %v4026_v4, %v960_v59  ;;  %v4190_v7 = vpop.f32.mrb[12].mxu1  ;;  %v4028_v10 = vpop.f32.mrb[13].mxu0 }
 0x3eb   :  { %v4856_v11 = vadd.f32 %v4190_v7, %v968_v1  ;;  %v4855_v12 = vadd.f32 %v4028_v10, %v964_v3  ;;  %v4192_v13 = vpop.f32.mrb[13].mxu1  ;;  %v4030_v14 = vpop.f32.mrb[14].mxu0 }
 0x3ec   :  { %v4201_v18 = vmax.f32 %v4854_v30, 0.0  ;;  %v4857_v2 = vadd.f32 %v4192_v13, %v972_v26  ;;  %v4194_v19 = vpop.f32.mrb[14].mxu1  ;;  %v4031_v45 = vpop.f32.mrb[15].mxu0 }
 0x3ed   :  { %v4202_v40 = vmax.f32 %v4855_v12, 0.0  ;;  %v4195_v20 = vpop.f32.mrb[15].mxu1  ;;  %v4203_v22 = vmax.f32 %v4856_v11, 0.0 }
 0x3ee   :  { %v4286_v21 = vmul.f32 %v4269_v48, %v4201_v18  ;;  %v4204_v24 = vmax.f32 %v4857_v2, 0.0 }
 0x3ef   :  { %v4287_v50 = vmul.f32 %v4273_v49, %v4202_v40  ;;  %v4288_v35 = vmul.f32 %v4277_v23, %v4203_v22 }
 0x3f0   :  { %v4293_v63 = vadd.f32 %v5313_v62, %v4286_v21  ;;  %v4289_v27 = vmul.f32 %v4281_v25, %v4204_v24 }
 0x3f2   :  { %v4294_v8 = vadd.f32 %v4293_v63, %v4287_v50 }
 0x3f4   :  { %v4295_v47 = vadd.f32 %v4294_v8, %v4288_v35 }
 0x3f6   :  { %v4296_v28 = vadd.f32 %v4295_v47, %v4289_v27 }
 0x3f8   :  { %4297 = vadd.xlane.f32.xlu0 %v4296_v28 }
 0x485   :  { %v4298_v37 = vpop.xlane.xlu0 %4297 }
 0x486   :  { %v4306_v29 = vadd.f32 %v4849_v16, %v4298_v37 }
 0x488   :  { %4308 = vst.msk [vmem:[%s5347_s7] sm:$0xff] %vm4307_vm1, %v4306_v29 }
 0x489   :  { %4313 = vsyncpa [#allocation4], 1 }
 0x48a   :  { %4314 = vsyncpa [#allocation6], 1 }
 0x48b   :  { %4315 = vsyncpa [#allocation9], 1 }
 0x48c   :  { %4316 = vsyncpa [#allocation12], 1 }

// kernel: tpu_custom_call.1
= control target key start
LH: loop header
LB: loop body
LE: loop exit
PB: predicated region body
PF: predicated region fallthrough
CT: control target
= control target key end

     0   :  { %s5340_s0 = inlined_call_operand.hbm [shape: f32[8,32], index: 0, kind: input, shape index: {}]   ;;  %s5341_s1 = inlined_call_operand.hbm [shape: bf16[32,1024], index: 1, kind: input, shape index: {}]   ;;  %s5342_s2 = inlined_call_operand.hbm [shape: f32[1,1024], index: 2, kind: input, shape index: {}]   ;;  %s5343_s3 = inlined_call_operand.hbm [shape: bf16[1024,1024], index: 3, kind: input, shape index: {}]   ;;  %s5344_s4 = inlined_call_operand.hbm [shape: f32[1,1024], index: 4, kind: input, shape index: {}]   ;;  %s5345_s5 = inlined_call_operand.hbm [shape: bf16[1,1024], index: 5, kind: input, shape index: {}]   ;;  %s5346_s6 = inlined_call_operand.<no memory space> [shape: f32[1,1], index: 6, kind: input, shape index: {}]   ;;  %s5347_s7 = inlined_call_operand.vmem [shape: f32[8,1], index: 7, kind: output, shape index: {}]  }
   0x1   :  { %v12_v0 = vstv %s5346_s6 }
   0x2   :  { %13 = vst [vmem:[#allocation2] sm:$0x1] %v12_v0 }
   0x3   :  { %14 = vsyncpa [#allocation4], 0 }
   0x4   :  { %15 = vsyncpa [#allocation6], 0 }
   0x5   :  { %16 = vsyncpa [#allocation9], 0 }
   0x6   :  { %17 = vsyncpa [#allocation12], 0  ;;  %s5056_s26 = smov [#allocation5]   ;;  %s4916_s30 = scalar_lea.hbm %s5341_s1, 2048 }
   0x7   :  { %s33_s27 = sshll.u32 %s5056_s26, 4  ;;  %p4917_p0 = scmp.ne.s32.totalorder %s5341_s1, %s4916_s30  ;;  %s34_s27 = int_to_ptr.vmem [resolvable:$true] %s33_s27 }
   0x8   :  { %p4920_p1 = scmp.lt.u32.totalorder %s4916_s30, %s5341_s1 }
   0xa   :  { %p4922_p2 = pnand %p4920_p1, %p4917_p0 }
   0xc   :  { %4925 = shalt.err (!%p4922_p2)
}
   0xd   :  { %s4926_s6 = scalar_lea.vmem %s34_s27, 2048  ;;  %p4931_p4 = scmp.lt.s32.totalorder %s34_s27, %s34_s27 }
   0xe   :  { %p4927_p3 = scmp.ne.s32.totalorder %s34_s27, %s4926_s6  ;;  %p4932_p5 = scmp.lt.s32.totalorder %s4926_s6, %s4926_s6 }
  0x10   :  { %p4933_p6 = por %p4932_p5, %p4931_p4 }
  0x12   :  { %p4934_p7 = pnand %p4933_p6, %p4927_p3 }
  0x14   :  { %4937 = shalt.err (!%p4934_p7)
}
  0x15   :  { %s5057_s12 = smov 512   ;;  %s5058_s13 = smov 32  }
  0x16   :  { %39 = dma.hbm_to_vmem [thread:$0]  %s5341_s1, 2048, %s34_s27, [#allocation6], %s5057_s12, %s5057_s12, %s5058_s13  }
  0x17   :  { %s5059_s16 = smov [#allocation8]   ;;  %s5060_s18 = smov [#allocation3]  }
  0x18   :  { %s55_s17 = sshll.u32 %s5059_s16, 4  ;;  %s24_s19 = sshll.u32 %s5060_s18, 4  ;;  %s56_s17 = int_to_ptr.vmem [resolvable:$true] %s55_s17  ;;  %s25_s19 = int_to_ptr.vmem [resolvable:$true] %s24_s19 }
  0x19   :  { %s4938_s22 = scalar_lea.hbm %s5343_s3, 65536 }
  0x1a   :  { %p4939_p8 = scmp.ne.s32.totalorder %s5343_s3, %s4938_s22  ;;  %p4942_p9 = scmp.lt.u32.totalorder %s4938_s22, %s5343_s3 }
  0x1c   :  { %p4944_p10 = pnand %p4942_p9, %p4939_p8 }
  0x1e   :  { %4947 = shalt.err (!%p4944_p10)
}
  0x1f   :  { %s4948_s1 = scalar_lea.vmem %s56_s17, 65536  ;;  %p4953_p12 = scmp.lt.s32.totalorder %s56_s17, %s56_s17 }
  0x20   :  { %p4949_p11 = scmp.ne.s32.totalorder %s56_s17, %s4948_s1  ;;  %p4954_p13 = scmp.lt.s32.totalorder %s4948_s1, %s4948_s1 }
  0x22   :  { %p4955_p0 = por %p4954_p13, %p4953_p12 }
  0x24   :  { %p4956_p1 = pnand %p4955_p0, %p4949_p11 }
  0x26   :  { %4959 = shalt.err (!%p4956_p1)
}
  0x27   :  { %61 = dma.hbm_to_vmem [thread:$0]  %s5343_s3, 65536, %s56_s17, [#allocation9], %s5057_s12, %s5057_s12, %s5058_s13  }
  0x28   :  { %s4960_s8 = scalar_lea.hbm %s5340_s0, 128 }
  0x29   :  { %p4961_p2 = scmp.ne.s32.totalorder %s5340_s0, %s4960_s8  ;;  %p4964_p3 = scmp.lt.u32.totalorder %s4960_s8, %s5340_s0 }
  0x2b   :  { %p4966_p4 = pnand %p4964_p3, %p4961_p2 }
  0x2d   :  { %4969 = shalt.err (!%p4966_p4)
}
  0x2e   :  { %s4970_s14 = scalar_lea.vmem %s25_s19, 128  ;;  %p4975_p6 = scmp.lt.s32.totalorder %s25_s19, %s25_s19 }
  0x2f   :  { %p4971_p5 = scmp.ne.s32.totalorder %s25_s19, %s4970_s14  ;;  %p4976_p7 = scmp.lt.s32.totalorder %s4970_s14, %s4970_s14 }
  0x31   :  { %p4977_p8 = por %p4976_p7, %p4975_p6 }
  0x33   :  { %p4978_p9 = pnand %p4977_p8, %p4971_p5 }
  0x35   :  { %4981 = shalt.err (!%p4978_p9)
}
  0x36   :  { %27 = dma.hbm_to_vmem [thread:$0]  %s5340_s0, 128, %s25_s19, [#allocation4]  }
  0x37   :  { %s5061_s13 = smov [#allocation7]   ;;  %s5062_s16 = smov [#allocation10]  }
  0x38   :  { %s46_s15 = sshll.u32 %s5061_s13, 4  ;;  %s68_s17 = sshll.u32 %s5062_s16, 4  ;;  %s47_s15 = int_to_ptr.vmem [resolvable:$true] %s46_s15  ;;  %s69_s17 = int_to_ptr.vmem [resolvable:$true] %s68_s17 }
  0x39   :  { %s4982_s21 = scalar_lea.hbm %s5342_s2, 128 }
  0x3a   :  { %p4983_p10 = scmp.ne.s32.totalorder %s5342_s2, %s4982_s21  ;;  %p4986_p11 = scmp.lt.u32.totalorder %s4982_s21, %s5342_s2 }
  0x3c   :  { %p4988_p12 = pnand %p4986_p11, %p4983_p10 }
  0x3e   :  { %4991 = shalt.err (!%p4988_p12)
}
  0x3f   :  { %s4992_s0 = scalar_lea.vmem %s47_s15, 128  ;;  %p4997_p0 = scmp.lt.s32.totalorder %s47_s15, %s47_s15 }
  0x40   :  { %p4993_p13 = scmp.ne.s32.totalorder %s47_s15, %s4992_s0  ;;  %p4998_p1 = scmp.lt.s32.totalorder %s4992_s0, %s4992_s0 }
  0x42   :  { %p4999_p2 = por %p4998_p1, %p4997_p0 }
  0x44   :  { %p5000_p3 = pnand %p4999_p2, %p4993_p13 }
  0x46   :  { %5003 = shalt.err (!%p5000_p3)
}
  0x47   :  { %49 = dma.hbm_to_vmem [thread:$0]  %s5342_s2, 128, %s47_s15, [#allocation6]  }
  0x48   :  { %s5004_s28 = scalar_lea.hbm %s5344_s4, 128 }
  0x49   :  { %p5005_p4 = scmp.ne.s32.totalorder %s5344_s4, %s5004_s28  ;;  %p5008_p5 = scmp.lt.u32.totalorder %s5004_s28, %s5344_s4 }
  0x4b   :  { %p5010_p6 = pnand %p5008_p5, %p5005_p4 }
  0x4d   :  { %5013 = shalt.err (!%p5010_p6)
}
  0x4e   :  { %s5014_s10 = scalar_lea.vmem %s69_s17, 128  ;;  %p5019_p8 = scmp.lt.s32.totalorder %s69_s17, %s69_s17 }
  0x4f   :  { %p5015_p7 = scmp.ne.s32.totalorder %s69_s17, %s5014_s10  ;;  %p5020_p9 = scmp.lt.s32.totalorder %s5014_s10, %s5014_s10 }
  0x51   :  { %p5021_p10 = por %p5020_p9, %p5019_p8 }
  0x53   :  { %p5022_p11 = pnand %p5021_p10, %p5015_p7 }
  0x55   :  { %5025 = shalt.err (!%p5022_p11)
}
  0x56   :  { %71 = dma.hbm_to_vmem [thread:$0]  %s5344_s4, 128, %s69_s17, [#allocation9]  }
  0x57   :  { %s5063_s6 = smov [#allocation11]   ;;  %s5026_s13 = scalar_lea.hbm %s5345_s5, 128 }
  0x58   :  { %s78_s14 = sshll.u32 %s5063_s6, 4  ;;  %p5027_p12 = scmp.ne.s32.totalorder %s5345_s5, %s5026_s13  ;;  %s79_s14 = int_to_ptr.vmem [resolvable:$true] %s78_s14 }
  0x59   :  { %p5030_p13 = scmp.lt.u32.totalorder %s5026_s13, %s5345_s5 }
  0x5b   :  { %p5032_p0 = pnand %p5030_p13, %p5027_p12 }
  0x5d   :  { %5035 = shalt.err (!%p5032_p0)
}
  0x5e   :  { %s5036_s21 = scalar_lea.vmem %s79_s14, 128  ;;  %p5041_p2 = scmp.lt.s32.totalorder %s79_s14, %s79_s14 }
  0x5f   :  { %p5037_p1 = scmp.ne.s32.totalorder %s79_s14, %s5036_s21  ;;  %p5042_p3 = scmp.lt.s32.totalorder %s5036_s21, %s5036_s21 }
  0x61   :  { %p5043_p4 = por %p5042_p3, %p5041_p2 }
  0x63   :  { %p5044_p5 = pnand %p5043_p4, %p5037_p1 }
  0x65   :  { %5047 = shalt.err (!%p5044_p5)
}
  0x66   :  { %81 = dma.hbm_to_vmem [thread:$0]  %s5345_s5, 128, %s79_s14, [#allocation12]  }
  0x67   :  { %5048 = dma.done.wait [#allocation4], 128  }
  0x68   :  { %5049 = vsyncadd [#allocation4], 4294967168 }
  0x69   :  { %5050 = dma.done.wait [#allocation6], 2176  }
  0x6a   :  { %5051 = vsyncadd [#allocation6], 4294965120 }
  0x6b   :  { %5052 = dma.done.wait [#allocation9], 65664  }
  0x6c   :  { %5053 = vsyncadd [#allocation9], 4294901632 }
  0x6d   :  { %5054 = dma.done.wait [#allocation12], 128  }
  0x6e   :  { %5055 = vsyncadd [#allocation12], 4294967168  ;;  %v5064_v1 = vmov 0   ;;  %v105_v2 = vld [vmem:[#allocation5] sm:$0xff]  ;;  %v106_v8 = vld [vmem:[#allocation5 + $0x8] sm:$0xff]  ;;  %vm243_vm0 = vcmask 261120  }
  0x6f   :  { %279 = vmatprep.mubr.bf16.mxu0 %v5064_v1  ;;  %320 = vmatprep.mubr.bf16.mxu1 %v5064_v1  ;;  %v109_v3 = vld [vmem:[#allocation5 + $0x20] sm:$0xff]  ;;  %v110_v10 = vld [vmem:[#allocation5 + $0x28] sm:$0xff]  ;;  %v107_v16 = vld [vmem:[#allocation5 + $0x10] sm:$0xff]  ;;  %vm4307_vm1 = vcmask 7168  }
  0x70   :  { %v113_v4 = vld [vmem:[#allocation5 + $0x40] sm:$0xff]  ;;  %v4318_v5 = vcombine.high %v105_v2, %v109_v3  ;;  %v4317_v6 = vcombine.low %v105_v2, %v109_v3  ;;  %v114_v11 = vld [vmem:[#allocation5 + $0x48] sm:$0xff]  ;;  %v4320_v13 = vcombine.high %v106_v8, %v110_v10  ;;  %v4319_v14 = vcombine.low %v106_v8, %v110_v10  ;;  %v111_v17 = vld [vmem:[#allocation5 + $0x30] sm:$0xff] }
  0x71   :  { %v117_v7 = vld [vmem:[#allocation5 + $0x60] sm:$0xff]  ;;  %v118_v12 = vld [vmem:[#allocation5 + $0x68] sm:$0xff]  ;;  %v103_v19 = vld [vmem:[#allocation3] sm:$0xff]  ;;  %v4322_v22 = vcombine.high %v107_v16, %v111_v17  ;;  %v4321_v28 = vcombine.low %v107_v16, %v111_v17 }
  0x72   :  { %v4326_v9 = vcombine.high %v113_v4, %v117_v7  ;;  %247 = vmatprep.subr.bf16.mxu0 %v4318_v5  ;;  %v4328_v15 = vcombine.high %v114_v11, %v118_v12  ;;  %v4325_v18 = vcombine.low %v113_v4, %v117_v7  ;;  %v108_v20 = vld [vmem:[#allocation5 + $0x18] sm:$0xff]  ;;  %288 = vmatprep.subr.bf16.mxu1 %v4320_v13  ;;  %v115_v24 = vld [vmem:[#allocation5 + $0x50] sm:$0xff]  ;;  %v427_v33 = vld [vmem:[#allocation8] sm:$0xff] }
  0x73   :  { %248 = vmatpush1.bf16.msra.mxu0 %v4317_v6  ;;  %v112_v21 = vld [vmem:[#allocation5 + $0x38] sm:$0xff]  ;;  %289 = vmatpush1.bf16.msra.mxu1 %v4319_v14  ;;  %v4327_v23 = vcombine.low %v114_v11, %v118_v12  ;;  %v119_v25 = vld [vmem:[#allocation5 + $0x70] sm:$0xff]  ;;  %v104_v26 = vpack.c.bf16 %v103_v19, %v103_v19  ;;  %v431_v34 = vld [vmem:[#allocation8 + $0x20] sm:$0xff] }
  0x74   :  { %249 = vmatprep.subr.bf16.mxu0 %v4326_v9  ;;  %290 = vmatprep.subr.bf16.mxu1 %v4328_v15  ;;  %v4324_v27 = vcombine.high %v108_v20, %v112_v21  ;;  %v116_v29 = vld [vmem:[#allocation5 + $0x58] sm:$0xff]  ;;  %v4330_v31 = vcombine.high %v115_v24, %v119_v25  ;;  %v4323_v32 = vcombine.low %v108_v20, %v112_v21  ;;  %v428_v37 = vld [vmem:[#allocation8 + $0x8] sm:$0xff]  ;;  %v435_v41 = vld [vmem:[#allocation8 + $0x40] sm:$0xff] }
  0x75   :  { %v120_v30 = vld [vmem:[#allocation5 + $0x78] sm:$0xff]  ;;  %v4329_v36 = vcombine.low %v115_v24, %v119_v25  ;;  %v432_v38 = vld [vmem:[#allocation8 + $0x28] sm:$0xff]  ;;  %v4338_v39 = vcombine.high %v427_v33, %v431_v34  ;;  %v439_v42 = vld [vmem:[#allocation8 + $0x60] sm:$0xff]  ;;  %v4337_v44 = vcombine.low %v427_v33, %v431_v34 }
  0x76   :  { %v4332_v35 = vcombine.high %v116_v29, %v120_v30  ;;  %v4331_v40 = vcombine.low %v116_v29, %v120_v30  ;;  %v4340_v43 = vcombine.high %v428_v37, %v432_v38  ;;  %v436_v45 = vld [vmem:[#allocation8 + $0x48] sm:$0xff]  ;;  %v4346_v47 = vcombine.high %v435_v41, %v439_v42  ;;  %v443_v49 = vld [vmem:[#allocation8 + $0x80] sm:$0xff] }
  0x77   :  { %250 = vmatpush1.bf16.msra.mxu0 %v4325_v18  ;;  %291 = vmatpush1.bf16.msra.mxu1 %v4327_v23  ;;  %v440_v46 = vld [vmem:[#allocation8 + $0x68] sm:$0xff]  ;;  %v4339_v48 = vcombine.low %v428_v37, %v432_v38  ;;  %v447_v50 = vld [vmem:[#allocation8 + $0xa0] sm:$0xff]  ;;  %v4345_v52 = vcombine.low %v435_v41, %v439_v42 }
  0x78   :  { %329 = vmatprep.subr.bf16.mxu0 %v4322_v22  ;;  %370 = vmatprep.subr.bf16.mxu1 %v4324_v27  ;;  %v4348_v51 = vcombine.high %v436_v45, %v440_v46  ;;  %v444_v53 = vld [vmem:[#allocation8 + $0x88] sm:$0xff]  ;;  %v4354_v55 = vcombine.high %v443_v49, %v447_v50  ;;  %v4347_v56 = vcombine.low %v436_v45, %v440_v46  ;;  %v451_v57 = vld [vmem:[#allocation8 + $0xc0] sm:$0xff] }
  0x79   :  { %v448_v54 = vld [vmem:[#allocation8 + $0xa8] sm:$0xff]  ;;  %v455_v58 = vld [vmem:[#allocation8 + $0xe0] sm:$0xff]  ;;  %v4353_v60 = vcombine.low %v443_v49, %v447_v50 }
  0x7a   :  { %4333 = vmatmul.mubr.msk.bf16.vlgmr.msra.gmra.mrb[0].mxu0 %vm243_vm0, %v104_v26  ;;  %4334 = vmatmul.mubr.msk.bf16.vlgmr.msra.gmra.mrb[0].mxu1 %vm243_vm0, %v104_v26  ;;  %v4356_v59 = vcombine.high %v444_v53, %v448_v54  ;;  %v452_v61 = vld [vmem:[#allocation8 + $0xc8] sm:$0xff]  ;;  %v4362_v63 = vcombine.high %v451_v57, %v455_v58  ;;  %v4355_v0 = vcombine.low %v444_v53, %v448_v54  ;;  %v463_v2 = vld [vmem:[#allocation8 + $0x120] sm:$0xff] }
  0x7b   :  { %330 = vmatpush1.bf16.msra.mxu0 %v4321_v28  ;;  %361 = vmatprep.mubr.bf16.mxu0 %v5064_v1  ;;  %v456_v62 = vld [vmem:[#allocation8 + $0xe8] sm:$0xff]  ;;  %v4361_v4 = vcombine.low %v451_v57, %v455_v58  ;;  %v467_v9 = vld [vmem:[#allocation8 + $0x140] sm:$0xff] }
  0x7c   :  { %331 = vmatprep.subr.bf16.mxu0 %v4330_v31  ;;  %371 = vmatpush1.bf16.msra.mxu1 %v4323_v32  ;;  %v4364_v3 = vcombine.high %v452_v61, %v456_v62  ;;  %v460_v5 = vld [vmem:[#allocation8 + $0x108] sm:$0xff]  ;;  %v4363_v8 = vcombine.low %v452_v61, %v456_v62  ;;  %v471_v10 = vld [vmem:[#allocation8 + $0x160] sm:$0xff] }
  0x7d   :  { %402 = vmatprep.mubr.bf16.mxu1 %v5064_v1  ;;  %372 = vmatprep.subr.bf16.mxu1 %v4332_v35  ;;  %v459_v1 = vld [vmem:[#allocation8 + $0x100] sm:$0xff]  ;;  %v464_v6 = vld [vmem:[#allocation8 + $0x128] sm:$0xff]  ;;  %v4378_v15 = vcombine.high %v467_v9, %v471_v10  ;;  %v4377_v20 = vcombine.low %v467_v9, %v471_v10 }
  0x7e   :  { %v4370_v7 = vcombine.high %v459_v1, %v463_v2  ;;  %v4372_v11 = vcombine.high %v460_v5, %v464_v6  ;;  %v4369_v12 = vcombine.low %v459_v1, %v463_v2  ;;  %v468_v13 = vld [vmem:[#allocation8 + $0x148] sm:$0xff]  ;;  %v4371_v16 = vcombine.low %v460_v5, %v464_v6  ;;  %v475_v17 = vld [vmem:[#allocation8 + $0x180] sm:$0xff] }
  0x7f   :  { %332 = vmatpush1.bf16.msra.mxu0 %v4329_v36  ;;  %v472_v14 = vld [vmem:[#allocation8 + $0x168] sm:$0xff]  ;;  %v479_v18 = vld [vmem:[#allocation8 + $0x1a0] sm:$0xff] }
  0x80   :  { %3541 = vmatprep.subr.bf16.mxu0 %v4338_v39  ;;  %373 = vmatpush1.bf16.msra.mxu1 %v4331_v40  ;;  %v4380_v19 = vcombine.high %v468_v13, %v472_v14  ;;  %v476_v21 = vld [vmem:[#allocation8 + $0x188] sm:$0xff]  ;;  %v4386_v23 = vcombine.high %v475_v17, %v479_v18  ;;  %v4379_v24 = vcombine.low %v468_v13, %v472_v14  ;;  %v483_v25 = vld [vmem:[#allocation8 + $0x1c0] sm:$0xff] }
  0x81   :  { %3705 = vmatprep.subr.bf16.mxu1 %v4340_v43  ;;  %v480_v22 = vld [vmem:[#allocation8 + $0x1a8] sm:$0xff]  ;;  %v4385_v28 = vcombine.low %v475_v17, %v479_v18  ;;  %v491_v33 = vld [vmem:[#allocation8 + $0x200] sm:$0xff] }
  0x82   :  { %4335 = vmatmul.mubr.msk.bf16.vlgmr.msra.gmra.mrb[4].mxu0 %vm243_vm0, %v104_v26  ;;  %v4388_v27 = vcombine.high %v476_v21, %v480_v22  ;;  %v484_v29 = vld [vmem:[#allocation8 + $0x1c8] sm:$0xff]  ;;  %v4387_v32 = vcombine.low %v476_v21, %v480_v22  ;;  %v495_v34 = vld [vmem:[#allocation8 + $0x220] sm:$0xff] }
  0x83   :  { %3542 = vmatpush1.bf16.msra.mxu0 %v4337_v44  ;;  %4336 = vmatmul.mubr.msk.bf16.vlgmr.msra.gmra.mrb[4].mxu1 %vm243_vm0, %v104_v26  ;;  %v487_v26 = vld [vmem:[#allocation8 + $0x1e0] sm:$0xff]  ;;  %v488_v30 = vld [vmem:[#allocation8 + $0x1e8] sm:$0xff]  ;;  %v4402_v39 = vcombine.high %v491_v33, %v495_v34  ;;  %v4401_v44 = vcombine.low %v491_v33, %v495_v34 }
  0x84   :  { %3543 = vmatprep.subr.bf16.mxu0 %v4346_v47  ;;  %3706 = vmatpush1.bf16.msra.mxu1 %v4339_v48  ;;  %v4394_v31 = vcombine.high %v483_v25, %v487_v26  ;;  %v4396_v35 = vcombine.high %v484_v29, %v488_v30  ;;  %v4393_v36 = vcombine.low %v483_v25, %v487_v26  ;;  %v492_v37 = vld [vmem:[#allocation8 + $0x208] sm:$0xff]  ;;  %v499_v41 = vld [vmem:[#allocation8 + $0x240] sm:$0xff] }
  0x85   :  { %3707 = vmatprep.subr.bf16.mxu1 %v4348_v51  ;;  %v496_v38 = vld [vmem:[#allocation8 + $0x228] sm:$0xff]  ;;  %v4395_v40 = vcombine.low %v484_v29, %v488_v30  ;;  %v503_v42 = vld [vmem:[#allocation8 + $0x260] sm:$0xff] }
  0x86   :  { %v4404_v43 = vcombine.high %v492_v37, %v496_v38  ;;  %v500_v45 = vld [vmem:[#allocation8 + $0x248] sm:$0xff]  ;;  %v4410_v47 = vcombine.high %v499_v41, %v503_v42  ;;  %v4403_v48 = vcombine.low %v492_v37, %v496_v38  ;;  %v507_v49 = vld [vmem:[#allocation8 + $0x280] sm:$0xff] }
  0x87   :  { %3544 = vmatpush1.bf16.msra.mxu0 %v4345_v52  ;;  %v504_v46 = vld [vmem:[#allocation8 + $0x268] sm:$0xff]  ;;  %v511_v50 = vld [vmem:[#allocation8 + $0x2a0] sm:$0xff]  ;;  %v4409_v52 = vcombine.low %v499_v41, %v503_v42 }
  0x88   :  { %3545 = vmatprep.subr.bf16.mxu0 %v4354_v55  ;;  %3708 = vmatpush1.bf16.msra.mxu1 %v4347_v56  ;;  %v4412_v51 = vcombine.high %v500_v45, %v504_v46  ;;  %v508_v53 = vld [vmem:[#allocation8 + $0x288] sm:$0xff]  ;;  %v4418_v55 = vcombine.high %v507_v49, %v511_v50  ;;  %v4411_v56 = vcombine.low %v500_v45, %v504_v46  ;;  %v515_v57 = vld [vmem:[#allocation8 + $0x2c0] sm:$0xff] }
  0x89   :  { %3709 = vmatprep.subr.bf16.mxu1 %v4356_v59  ;;  %v512_v54 = vld [vmem:[#allocation8 + $0x2a8] sm:$0xff]  ;;  %v519_v58 = vld [vmem:[#allocation8 + $0x2e0] sm:$0xff] }
  0x8a   :  { %v4420_v59 = vcombine.high %v508_v53, %v512_v54  ;;  %v516_v61 = vld [vmem:[#allocation8 + $0x2c8] sm:$0xff]  ;;  %v523_v1 = vld [vmem:[#allocation8 + $0x300] sm:$0xff] }
  0x8b   :  { %3546 = vmatpush1.bf16.msra.mxu0 %v4353_v60  ;;  %v4417_v60 = vcombine.low %v507_v49, %v511_v50  ;;  %v520_v62 = vld [vmem:[#allocation8 + $0x2e8] sm:$0xff]  ;;  %v527_v2 = vld [vmem:[#allocation8 + $0x320] sm:$0xff] }
  0x8c   :  { %3547 = vmatprep.subr.bf16.mxu0 %v4362_v63  ;;  %3710 = vmatpush1.bf16.msra.mxu1 %v4355_v0  ;;  %v4426_v63 = vcombine.high %v515_v57, %v519_v58  ;;  %v4419_v0 = vcombine.low %v508_v53, %v512_v54  ;;  %v524_v5 = vld [vmem:[#allocation8 + $0x308] sm:$0xff]  ;;  %v531_v9 = vld [vmem:[#allocation8 + $0x340] sm:$0xff] }
  0x8d   :  { %3711 = vmatprep.subr.bf16.mxu1 %v4364_v3  ;;  %v4428_v3 = vcombine.high %v516_v61, %v520_v62  ;;  %v528_v6 = vld [vmem:[#allocation8 + $0x328] sm:$0xff]  ;;  %v535_v10 = vld [vmem:[#allocation8 + $0x360] sm:$0xff] }
  0x8e   :  { %v532_v13 = vld [vmem:[#allocation8 + $0x348] sm:$0xff]  ;;  %v4441_v18 = vcombine.low %v531_v9, %v535_v10  ;;  %v543_v21 = vld [vmem:[#allocation8 + $0x3a0] sm:$0xff] }
  0x8f   :  { %3548 = vmatpush1.bf16.msra.mxu0 %v4361_v4  ;;  %v4425_v4 = vcombine.low %v515_v57, %v519_v58  ;;  %v536_v14 = vld [vmem:[#allocation8 + $0x368] sm:$0xff]  ;;  %v551_v29 = vld [vmem:[#allocation8 + $0x3e0] sm:$0xff] }
  0x90   :  { %3549 = vmatprep.subr.bf16.mxu0 %v4370_v7  ;;  %3712 = vmatpush1.bf16.msra.mxu1 %v4363_v8  ;;  %v4434_v7 = vcombine.high %v523_v1, %v527_v2  ;;  %v4427_v8 = vcombine.low %v516_v61, %v520_v62  ;;  %v4444_v17 = vcombine.high %v532_v13, %v536_v14  ;;  %v540_v22 = vld [vmem:[#allocation8 + $0x388] sm:$0xff]  ;;  %v559_v37 = vld [vmem:[#allocation8 + $0x420] sm:$0xff] }
  0x91   :  { %3713 = vmatprep.subr.bf16.mxu1 %v4372_v11  ;;  %v4436_v11 = vcombine.high %v524_v5, %v528_v6  ;;  %v548_v30 = vld [vmem:[#allocation8 + $0x3c8] sm:$0xff]  ;;  %v563_v61 = vld [vmem:[#allocation8 + $0x440] sm:$0xff] }
  0x92   :  { %v556_v38 = vld [vmem:[#allocation8 + $0x408] sm:$0xff] }
  0x93   :  { %3550 = vmatpush1.bf16.msra.mxu0 %v4369_v12  ;;  %v4433_v12 = vcombine.low %v523_v1, %v527_v2  ;;  %v564_v1 = vld [vmem:[#allocation8 + $0x448] sm:$0xff] }
  0x94   :  { %3551 = vmatprep.subr.bf16.mxu0 %v4378_v15  ;;  %3714 = vmatpush1.bf16.msra.mxu1 %v4371_v16  ;;  %v4442_v15 = vcombine.high %v531_v9, %v535_v10  ;;  %v4435_v16 = vcombine.low %v524_v5, %v528_v6  ;;  %v568_v2 = vld [vmem:[#allocation8 + $0x468] sm:$0xff] }
  0x95   :  { %3715 = vmatprep.subr.bf16.mxu1 %v4380_v19  ;;  %v4443_v19 = vcombine.low %v532_v13, %v536_v14  ;;  %v4476_v10 = vcombine.high %v564_v1, %v568_v2  ;;  %v572_v13 = vld [vmem:[#allocation8 + $0x488] sm:$0xff] }
  0x96   :  { %v576_v14 = vld [vmem:[#allocation8 + $0x4a8] sm:$0xff] }
  0x97   :  { %3552 = vmatpush1.bf16.msra.mxu0 %v4377_v20  ;;  %v539_v20 = vld [vmem:[#allocation8 + $0x380] sm:$0xff] }
  0x98   :  { %3553 = vmatprep.subr.bf16.mxu0 %v4386_v23  ;;  %3716 = vmatpush1.bf16.msra.mxu1 %v4379_v24  ;;  %v4450_v23 = vcombine.high %v539_v20, %v543_v21  ;;  %v544_v24 = vld [vmem:[#allocation8 + $0x3a8] sm:$0xff]  ;;  %v4449_v25 = vcombine.low %v539_v20, %v543_v21 }
  0x99   :  { %3717 = vmatprep.subr.bf16.mxu1 %v4388_v27  ;;  %v4451_v26 = vcombine.low %v540_v22, %v544_v24  ;;  %v4452_v27 = vcombine.high %v540_v22, %v544_v24  ;;  %v4484_v22 = vcombine.high %v572_v13, %v576_v14 }
  0x9b   :  { %3554 = vmatpush1.bf16.msra.mxu0 %v4385_v28  ;;  %v547_v28 = vld [vmem:[#allocation8 + $0x3c0] sm:$0xff] }
  0x9c   :  { %3555 = vmatprep.subr.bf16.mxu0 %v4394_v31  ;;  %3718 = vmatpush1.bf16.msra.mxu1 %v4387_v32  ;;  %v4458_v31 = vcombine.high %v547_v28, %v551_v29  ;;  %v552_v32 = vld [vmem:[#allocation8 + $0x3e8] sm:$0xff]  ;;  %v4457_v33 = vcombine.low %v547_v28, %v551_v29  ;;  %v4483_v29 = vcombine.low %v572_v13, %v576_v14 }
  0x9d   :  { %3719 = vmatprep.subr.bf16.mxu1 %v4396_v35  ;;  %v4459_v34 = vcombine.low %v548_v30, %v552_v32  ;;  %v4460_v35 = vcombine.high %v548_v30, %v552_v32  ;;  %v587_v32 = vld [vmem:[#allocation8 + $0x500] sm:$0xff]  ;;  %v620_v13 = vld [vmem:[#allocation8 + $0x608] sm:$0xff] }
  0x9e   :  { %v624_v14 = vld [vmem:[#allocation8 + $0x628] sm:$0xff] }
  0x9f   :  { %3556 = vmatpush1.bf16.msra.mxu0 %v4393_v36  ;;  %v555_v36 = vld [vmem:[#allocation8 + $0x400] sm:$0xff] }
  0xa0   :  { %3557 = vmatprep.subr.bf16.mxu0 %v4402_v39  ;;  %3720 = vmatpush1.bf16.msra.mxu1 %v4395_v40  ;;  %v4466_v39 = vcombine.high %v555_v36, %v559_v37  ;;  %v560_v40 = vld [vmem:[#allocation8 + $0x428] sm:$0xff]  ;;  %v4465_v41 = vcombine.low %v555_v36, %v559_v37 }
  0xa1   :  { %3721 = vmatprep.subr.bf16.mxu1 %v4404_v43  ;;  %v4467_v42 = vcombine.low %v556_v38, %v560_v40  ;;  %v4468_v43 = vcombine.high %v556_v38, %v560_v40  ;;  %v595_v40 = vld [vmem:[#allocation8 + $0x540] sm:$0xff] }
  0xa3   :  { %3558 = vmatpush1.bf16.msra.mxu0 %v4401_v44  ;;  %v123_v44 = vlaneseq }
  0xa4   :  { %3559 = vmatprep.subr.bf16.mxu0 %v4410_v47  ;;  %3722 = vmatpush1.bf16.msra.mxu1 %v4403_v48  ;;  %v5189_v47 = vld [vmem:[#allocation7] sm:$0xff] }
  0xa5   :  { %3723 = vmatprep.subr.bf16.mxu1 %v4412_v51  ;;  %v5184_v45 = vshrl.u32 %v123_v44, 7 }
  0xa7   :  { %3560 = vmatpush1.bf16.msra.mxu0 %v4409_v52  ;;  %v5187_v46 = vsub.s32 0, %v5184_v45  ;;  %v129_v48 = vsub.s32 1, %v5184_v45  ;;  %v137_v49 = vsub.s32 3, %v5184_v45 }
  0xa8   :  { %3561 = vmatprep.subr.bf16.mxu0 %v4418_v55  ;;  %3724 = vmatpush1.bf16.msra.mxu1 %v4411_v56 }
  0xa9   :  { %3725 = vmatprep.subr.bf16.mxu1 %v4420_v59  ;;  %v126_v50 = vrot.slane %v5189_v47, %v5187_v46  ;;  %v130_v51 = vrot.slane %v5189_v47, %v129_v48  ;;  %v138_v53 = vrot.slane %v5189_v47, %v137_v49 }
  0xab   :  { %3562 = vmatpush1.bf16.msra.mxu0 %v4417_v60 }
  0xac   :  { %3563 = vmatprep.subr.bf16.mxu0 %v4426_v63  ;;  %3726 = vmatpush1.bf16.msra.mxu1 %v4419_v0  ;;  %v567_v0 = vld [vmem:[#allocation8 + $0x460] sm:$0xff] }
  0xad   :  { %3727 = vmatprep.subr.bf16.mxu1 %v4428_v3  ;;  %v4474_v9 = vcombine.high %v563_v61, %v567_v0 }
  0xaf   :  { %3564 = vmatpush1.bf16.msra.mxu0 %v4425_v4 }
  0xb0   :  { %3565 = vmatprep.subr.bf16.mxu0 %v4434_v7  ;;  %3728 = vmatpush1.bf16.msra.mxu1 %v4427_v8 }
  0xb1   :  { %3729 = vmatprep.subr.bf16.mxu1 %v4436_v11  ;;  %v571_v11 = vld [vmem:[#allocation8 + $0x480] sm:$0xff] }
  0xb3   :  { %3566 = vmatpush1.bf16.msra.mxu0 %v4433_v12  ;;  %v575_v12 = vld [vmem:[#allocation8 + $0x4a0] sm:$0xff] }
  0xb4   :  { %3567 = vmatprep.subr.bf16.mxu0 %v4442_v15  ;;  %3730 = vmatpush1.bf16.msra.mxu1 %v4435_v16  ;;  %v4482_v21 = vcombine.high %v571_v11, %v575_v12  ;;  %v4481_v28 = vcombine.low %v571_v11, %v575_v12  ;;  %v623_v12 = vld [vmem:[#allocation8 + $0x620] sm:$0xff] }
  0xb5   :  { %3731 = vmatprep.subr.bf16.mxu1 %v4444_v17 }
  0xb7   :  { %3568 = vmatpush1.bf16.msra.mxu0 %v4441_v18  ;;  %v4473_v18 = vcombine.low %v563_v61, %v567_v0  ;;  %v615_v0 = vld [vmem:[#allocation8 + $0x5e0] sm:$0xff] }
  0xb8   :  { %3732 = vmatpush1.bf16.msra.mxu1 %v4443_v19  ;;  %3569 = vmatprep.subr.bf16.mxu0 %v4450_v23  ;;  %v4475_v19 = vcombine.low %v564_v1, %v568_v2  ;;  %v579_v23 = vld [vmem:[#allocation8 + $0x4c0] sm:$0xff]  ;;  %v612_v1 = vld [vmem:[#allocation8 + $0x5c8] sm:$0xff] }
  0xb9   :  { %3733 = vmatprep.subr.bf16.mxu1 %v4452_v27  ;;  %v584_v27 = vld [vmem:[#allocation8 + $0x4e8] sm:$0xff] }
  0xba   :  { %v616_v2 = vld [vmem:[#allocation8 + $0x5e8] sm:$0xff] }
  0xbb   :  { %3570 = vmatpush1.bf16.msra.mxu0 %v4449_v25  ;;  %v583_v25 = vld [vmem:[#allocation8 + $0x4e0] sm:$0xff] }
  0xbc   :  { %3734 = vmatpush1.bf16.msra.mxu1 %v4451_v26  ;;  %3571 = vmatprep.subr.bf16.mxu0 %v4458_v31  ;;  %v580_v26 = vld [vmem:[#allocation8 + $0x4c8] sm:$0xff]  ;;  %v4490_v30 = vcombine.high %v579_v23, %v583_v25  ;;  %v4489_v36 = vcombine.low %v579_v23, %v583_v25  ;;  %v627_v23 = vld [vmem:[#allocation8 + $0x640] sm:$0xff] }
  0xbd   :  { %3735 = vmatprep.subr.bf16.mxu1 %v4460_v35  ;;  %v4492_v31 = vcombine.high %v580_v26, %v584_v27  ;;  %v592_v35 = vld [vmem:[#allocation8 + $0x528] sm:$0xff]  ;;  %v4491_v37 = vcombine.low %v580_v26, %v584_v27 }
  0xbe   :  { %v628_v25 = vld [vmem:[#allocation8 + $0x648] sm:$0xff] }
  0xbf   :  { %3572 = vmatpush1.bf16.msra.mxu0 %v4457_v33  ;;  %v591_v33 = vld [vmem:[#allocation8 + $0x520] sm:$0xff]  ;;  %v632_v26 = vld [vmem:[#allocation8 + $0x668] sm:$0xff] }
  0xc0   :  { %3736 = vmatpush1.bf16.msra.mxu1 %v4459_v34  ;;  %3582 = vmatprep.subr.bf16.mxu0 %v4466_v39  ;;  %v588_v34 = vld [vmem:[#allocation8 + $0x508] sm:$0xff]  ;;  %v4498_v38 = vcombine.high %v587_v32, %v591_v33  ;;  %v4497_v44 = vcombine.low %v587_v32, %v591_v33  ;;  %v639_v32 = vld [vmem:[#allocation8 + $0x6a0] sm:$0xff] }
  0xc1   :  { %3746 = vmatprep.subr.bf16.mxu1 %v4468_v43  ;;  %v4500_v39 = vcombine.high %v588_v34, %v592_v35  ;;  %v600_v43 = vld [vmem:[#allocation8 + $0x568] sm:$0xff] }
  0xc2   :  { %v636_v33 = vld [vmem:[#allocation8 + $0x688] sm:$0xff] }
 0x14d   :  { %v281_v52 = vpop.f32.mrb[0].mxu0  ;;  %v5201_v58 = vpop.f32.mrb[0].mxu1 }
 0x14e   :  { %v282_v54 = vadd.f32 %v281_v52, %v126_v50  ;;  %v283_v55 = vpop.f32.mrb[1].mxu0  ;;  %v324_v62 = vpop.f32.mrb[1].mxu1  ;;  %v4499_v50 = vcombine.low %v588_v34, %v592_v35  ;;  %v640_v34 = vld [vmem:[#allocation8 + $0x6a8] sm:$0xff] }
 0x14f   :  { %v284_v56 = vadd.f32 %v283_v55, %v130_v51  ;;  %v285_v57 = vpop.f32.mrb[2].mxu0  ;;  %v325_v3 = vadd.f32 %v324_v62, %v138_v53  ;;  %v326_v4 = vpop.f32.mrb[2].mxu1  ;;  %v603_v53 = vld [vmem:[#allocation8 + $0x580] sm:$0xff]  ;;  %v604_v55 = vld [vmem:[#allocation8 + $0x588] sm:$0xff] }
 0x150   :  { %v411_v59 = vmax.f32 %v282_v54, 0.0  ;;  %v286_v60 = vpop.f32.mrb[3].mxu0  ;;  %v327_v5 = vpop.f32.mrb[3].mxu1  ;;  %v607_v54 = vld [vmem:[#allocation8 + $0x5a0] sm:$0xff] }
 0x151   :  { %v412_v63 = vmax.f32 %v284_v56, 0.0  ;;  %v414_v7 = vmax.f32 %v325_v3, 0.0  ;;  %v608_v56 = vld [vmem:[#allocation8 + $0x5a8] sm:$0xff]  ;;  %v4514_v60 = vcombine.high %v603_v53, %v607_v54  ;;  %v611_v62 = vld [vmem:[#allocation8 + $0x5c0] sm:$0xff]  ;;  %v4513_v3 = vcombine.low %v603_v53, %v607_v54 }
 0x152   :  { %v5205_v8 = vpack.c.bf16 %v411_v59, %v411_v59  ;;  %v4516_v61 = vcombine.high %v604_v55, %v608_v56  ;;  %v4515_v4 = vcombine.low %v604_v55, %v608_v56  ;;  %v655_v53 = vld [vmem:[#allocation8 + $0x720] sm:$0xff]  ;;  %v652_v54 = vld [vmem:[#allocation8 + $0x708] sm:$0xff] }
 0x153   :  { %v5203_v6 = vpack.c.bf16 %v412_v63, %v412_v63  ;;  %v5209_v15 = vpack.c.bf16 %v414_v7, %v414_v7  ;;  %v4522_v7 = vcombine.high %v611_v62, %v615_v0  ;;  %v656_v55 = vld [vmem:[#allocation8 + $0x728] sm:$0xff] }
 0x155   :  { %3573 = vmatprep.mubr.bf16.mxu0 %v5203_v6  ;;  %3737 = vmatprep.mubr.bf16.mxu1 %v5203_v6  ;;  %v5211_v16 = vpop.f32.mrb[4].mxu0 }
 0x156   :  { %3574 = vmatmul.mubr.bf16.vlgmr.msra.gmra.mrb[8].mxu0 %v5205_v8  ;;  %3738 = vmatmul.mubr.bf16.vlgmr.msra.gmra.mrb[8].mxu1 %v5205_v8  ;;  %v5215_v17 = vpop.f32.mrb[5].mxu0  ;;  %v5219_v63 = vpop.f32.mrb[4].mxu1 }
 0x157   :  { %3583 = vmatpush1.bf16.msra.mxu0 %v4465_v41  ;;  %3747 = vmatpush1.bf16.msra.mxu1 %v4467_v42  ;;  %v367_v20 = vpop.f32.mrb[6].mxu0  ;;  %v599_v41 = vld [vmem:[#allocation8 + $0x560] sm:$0xff]  ;;  %v596_v42 = vld [vmem:[#allocation8 + $0x548] sm:$0xff]  ;;  %v5221_v5 = vpop.f32.mrb[5].mxu1 }
 0x158   :  { %3584 = vmatprep.subr.bf16.mxu0 %v4474_v9  ;;  %3748 = vmatprep.subr.bf16.mxu1 %v4476_v10  ;;  %v368_v24 = vpop.f32.mrb[7].mxu0  ;;  %v4506_v51 = vcombine.high %v595_v40, %v599_v41  ;;  %v4508_v52 = vcombine.high %v596_v42, %v600_v43  ;;  %v4505_v57 = vcombine.low %v595_v40, %v599_v41  ;;  %v619_v10 = vld [vmem:[#allocation8 + $0x600] sm:$0xff]  ;;  %v408_v11 = vpop.f32.mrb[6].mxu1  ;;  %v644_v41 = vld [vmem:[#allocation8 + $0x6c8] sm:$0xff] }
 0x159   :  { %3614 = vmatprep.mubr.bf16.mxu0 %v5209_v15  ;;  %3778 = vmatprep.mubr.bf16.mxu1 %v5209_v15  ;;  %v4507_v59 = vcombine.low %v596_v42, %v600_v43  ;;  %v4524_v9 = vcombine.high %v612_v1, %v616_v2  ;;  %v4523_v20 = vcombine.low %v612_v1, %v616_v2  ;;  %v631_v24 = vld [vmem:[#allocation8 + $0x660] sm:$0xff]  ;;  %v648_v42 = vld [vmem:[#allocation8 + $0x6e8] sm:$0xff]  ;;  %v5224_v2 = vsub.s32 2, %v5184_v45 }
 0x15a   :  { %v4529_v27 = vcombine.low %v619_v10, %v623_v12  ;;  %v4537_v35 = vcombine.low %v627_v23, %v631_v24  ;;  %v647_v40 = vld [vmem:[#allocation8 + $0x6e0] sm:$0xff]  ;;  %v664_v1 = vld [vmem:[#allocation8 + $0x768] sm:$0xff] }
 0x15b   :  { %3585 = vmatpush1.bf16.msra.mxu0 %v4473_v18  ;;  %3749 = vmatpush1.bf16.msra.mxu1 %v4475_v19  ;;  %v409_v18 = vpop.f32.mrb[7].mxu1  ;;  %v4521_v19 = vcombine.low %v611_v62, %v615_v0  ;;  %v663_v62 = vld [vmem:[#allocation8 + $0x760] sm:$0xff]  ;;  %v660_v0 = vld [vmem:[#allocation8 + $0x748] sm:$0xff] }
 0x15c   :  { %3586 = vmatprep.subr.bf16.mxu0 %v4482_v21  ;;  %3750 = vmatprep.subr.bf16.mxu1 %v4484_v22  ;;  %v4530_v21 = vcombine.high %v619_v10, %v623_v12  ;;  %v4532_v22 = vcombine.high %v620_v13, %v624_v14  ;;  %v667_v10 = vld [vmem:[#allocation8 + $0x780] sm:$0xff]  ;;  %v668_v12 = vld [vmem:[#allocation8 + $0x788] sm:$0xff]  ;;  %v134_v18 = vrot.slane %v5189_v47, %v5224_v2 }
 0x15d   :  { %v671_v11 = vld [vmem:[#allocation8 + $0x7a0] sm:$0xff] }
 0x15f   :  { %3587 = vmatpush1.bf16.msra.mxu0 %v4481_v28  ;;  %3751 = vmatpush1.bf16.msra.mxu1 %v4483_v29  ;;  %v4531_v28 = vcombine.low %v620_v13, %v624_v14  ;;  %v4538_v29 = vcombine.high %v627_v23, %v631_v24  ;;  %v672_v13 = vld [vmem:[#allocation8 + $0x7a8] sm:$0xff]  ;;  %v145_v14 = vsub.s32 5, %v5184_v45  ;;  %v675_v23 = vld [vmem:[#allocation8 + $0x7c0] sm:$0xff] }
 0x160   :  { %3588 = vmatprep.subr.bf16.mxu0 %v4490_v30  ;;  %3752 = vmatprep.subr.bf16.mxu1 %v4492_v31  ;;  %v4540_v30 = vcombine.high %v628_v25, %v632_v26  ;;  %v635_v31 = vld [vmem:[#allocation8 + $0x680] sm:$0xff] }
 0x161   :  { %v4545_v43 = vcombine.low %v635_v31, %v639_v32  ;;  %v679_v24 = vld [vmem:[#allocation8 + $0x7e0] sm:$0xff] }
 0x163   :  { %3589 = vmatpush1.bf16.msra.mxu0 %v4489_v36  ;;  %3753 = vmatpush1.bf16.msra.mxu1 %v4491_v37  ;;  %v4539_v36 = vcombine.low %v628_v25, %v632_v26  ;;  %v4546_v37 = vcombine.high %v635_v31, %v639_v32  ;;  %v676_v25 = vld [vmem:[#allocation8 + $0x7c8] sm:$0xff]  ;;  %v4586_v31 = vcombine.high %v675_v23, %v679_v24 }
 0x164   :  { %3590 = vmatprep.subr.bf16.mxu0 %v4498_v38  ;;  %3754 = vmatprep.subr.bf16.mxu1 %v4500_v39  ;;  %v4548_v38 = vcombine.high %v636_v33, %v640_v34  ;;  %v643_v39 = vld [vmem:[#allocation8 + $0x6c0] sm:$0xff]  ;;  %v680_v26 = vld [vmem:[#allocation8 + $0x7e8] sm:$0xff] }
 0x165   :  { %v4553_v56 = vcombine.low %v643_v39, %v647_v40  ;;  %v4588_v32 = vcombine.high %v676_v25, %v680_v26 }
 0x167   :  { %3591 = vmatpush1.bf16.msra.mxu0 %v4497_v44  ;;  %3755 = vmatpush1.bf16.msra.mxu1 %v4499_v50  ;;  %v4547_v44 = vcombine.low %v636_v33, %v640_v34  ;;  %v4554_v50 = vcombine.high %v643_v39, %v647_v40  ;;  %v683_v33 = vld [vmem:[#allocation8 + $0x800] sm:$0xff]  ;;  %v4585_v39 = vcombine.low %v675_v23, %v679_v24 }
 0x168   :  { %3592 = vmatprep.subr.bf16.mxu0 %v4506_v51  ;;  %3756 = vmatprep.subr.bf16.mxu1 %v4508_v52  ;;  %v4556_v51 = vcombine.high %v644_v41, %v648_v42  ;;  %v651_v52 = vld [vmem:[#allocation8 + $0x700] sm:$0xff]  ;;  %v4587_v40 = vcombine.low %v676_v25, %v680_v26 }
 0x169   :  { %v687_v34 = vld [vmem:[#allocation8 + $0x820] sm:$0xff] }
 0x16b   :  { %3593 = vmatpush1.bf16.msra.mxu0 %v4505_v57  ;;  %3757 = vmatpush1.bf16.msra.mxu1 %v4507_v59  ;;  %v4555_v57 = vcombine.low %v644_v41, %v648_v42  ;;  %v4562_v59 = vcombine.high %v651_v52, %v655_v53  ;;  %v691_v42 = vld [vmem:[#allocation8 + $0x840] sm:$0xff] }
 0x16c   :  { %3594 = vmatprep.subr.bf16.mxu0 %v4514_v60  ;;  %3758 = vmatprep.subr.bf16.mxu1 %v4516_v61  ;;  %v4564_v60 = vcombine.high %v652_v54, %v656_v55  ;;  %v659_v61 = vld [vmem:[#allocation8 + $0x740] sm:$0xff] }
 0x16f   :  { %3595 = vmatpush1.bf16.msra.mxu0 %v4513_v3  ;;  %3759 = vmatpush1.bf16.msra.mxu1 %v4515_v4  ;;  %v4561_v3 = vcombine.low %v651_v52, %v655_v53  ;;  %v4563_v4 = vcombine.low %v652_v54, %v656_v55  ;;  %v4593_v53 = vcombine.low %v683_v33, %v687_v34 }
 0x170   :  { %3596 = vmatprep.subr.bf16.mxu0 %v4522_v7  ;;  %3760 = vmatprep.subr.bf16.mxu1 %v4524_v9  ;;  %v4570_v7 = vcombine.high %v659_v61, %v663_v62  ;;  %v4572_v9 = vcombine.high %v660_v0, %v664_v1 }
 0x173   :  { %3597 = vmatpush1.bf16.msra.mxu0 %v4521_v19  ;;  %3761 = vmatpush1.bf16.msra.mxu1 %v4523_v20  ;;  %v4569_v19 = vcombine.low %v659_v61, %v663_v62  ;;  %v4571_v20 = vcombine.low %v660_v0, %v664_v1 }
 0x174   :  { %3598 = vmatprep.subr.bf16.mxu0 %v4530_v21  ;;  %3762 = vmatprep.subr.bf16.mxu1 %v4532_v22  ;;  %v4578_v21 = vcombine.high %v667_v10, %v671_v11  ;;  %v4580_v22 = vcombine.high %v668_v12, %v672_v13 }
 0x177   :  { %3599 = vmatpush1.bf16.msra.mxu0 %v4529_v27  ;;  %3763 = vmatpush1.bf16.msra.mxu1 %v4531_v28  ;;  %v146_v27 = vrot.slane %v5189_v47, %v145_v14  ;;  %v323_v28 = vadd.f32 %v5201_v58, %v134_v18  ;;  %v4594_v58 = vcombine.high %v683_v33, %v687_v34 }
 0x178   :  { %3600 = vmatprep.subr.bf16.mxu0 %v4538_v29  ;;  %3764 = vmatprep.subr.bf16.mxu1 %v4540_v30  ;;  %v4577_v29 = vcombine.low %v667_v10, %v671_v11  ;;  %v4579_v30 = vcombine.low %v668_v12, %v672_v13  ;;  %v712_v10 = vld [vmem:[#allocation8 + $0x8e8] sm:$0xff] }
 0x17b   :  { %3601 = vmatpush1.bf16.msra.mxu0 %v4537_v35  ;;  %3765 = vmatpush1.bf16.msra.mxu1 %v4539_v36  ;;  %v684_v35 = vld [vmem:[#allocation8 + $0x808] sm:$0xff] }
 0x17c   :  { %3602 = vmatprep.subr.bf16.mxu0 %v4546_v37  ;;  %3766 = vmatprep.subr.bf16.mxu1 %v4548_v38  ;;  %v688_v36 = vld [vmem:[#allocation8 + $0x828] sm:$0xff]  ;;  %v366_v37 = vadd.f32 %v5215_v17, %v146_v27  ;;  %v413_v38 = vmax.f32 %v323_v28, 0.0  ;;  %v723_v27 = vld [vmem:[#allocation8 + $0x940] sm:$0xff] }
 0x17d   :  { %v4596_v41 = vcombine.high %v684_v35, %v688_v36  ;;  %v4595_v17 = vcombine.low %v684_v35, %v688_v36  ;;  %v727_v28 = vld [vmem:[#allocation8 + $0x960] sm:$0xff] }
 0x17e   :  { %v5234_v52 = vpack.c.bf16 %v413_v38, %v413_v38  ;;  %v4634_v33 = vcombine.high %v723_v27, %v727_v28  ;;  %v731_v35 = vld [vmem:[#allocation8 + $0x980] sm:$0xff]  ;;  %v736_v38 = vld [vmem:[#allocation8 + $0x9a8] sm:$0xff] }
 0x17f   :  { %3603 = vmatpush1.bf16.msra.mxu0 %v4545_v43  ;;  %3767 = vmatpush1.bf16.msra.mxu1 %v4547_v44  ;;  %v695_v43 = vld [vmem:[#allocation8 + $0x860] sm:$0xff]  ;;  %v692_v44 = vld [vmem:[#allocation8 + $0x848] sm:$0xff] }
 0x180   :  { %3604 = vmatprep.subr.bf16.mxu0 %v4554_v50  ;;  %3768 = vmatprep.subr.bf16.mxu1 %v4556_v51  ;;  %v696_v50 = vld [vmem:[#allocation8 + $0x868] sm:$0xff]  ;;  %v416_v51 = vmax.f32 %v366_v37, 0.0  ;;  %v4602_v54 = vcombine.high %v691_v42, %v695_v43  ;;  %v4601_v62 = vcombine.low %v691_v42, %v695_v43  ;;  %v735_v36 = vld [vmem:[#allocation8 + $0x9a0] sm:$0xff] }
 0x181   :  { %v4604_v55 = vcombine.high %v692_v44, %v696_v50  ;;  %v4603_v0 = vcombine.low %v692_v44, %v696_v50  ;;  %v732_v37 = vld [vmem:[#allocation8 + $0x988] sm:$0xff]  ;;  %v739_v42 = vld [vmem:[#allocation8 + $0x9c0] sm:$0xff] }
 0x182   :  { %v5236_v61 = vpack.c.bf16 %v416_v51, %v416_v51  ;;  %v743_v43 = vld [vmem:[#allocation8 + $0x9e0] sm:$0xff]  ;;  %v740_v44 = vld [vmem:[#allocation8 + $0x9c8] sm:$0xff]  ;;  %v4641_v51 = vcombine.low %v731_v35, %v735_v36 }
 0x183   :  { %3605 = vmatpush1.bf16.msra.mxu0 %v4553_v56  ;;  %3769 = vmatpush1.bf16.msra.mxu1 %v4555_v57  ;;  %v699_v56 = vld [vmem:[#allocation8 + $0x880] sm:$0xff]  ;;  %v744_v50 = vld [vmem:[#allocation8 + $0x9e8] sm:$0xff] }
 0x184   :  { %3606 = vmatprep.subr.bf16.mxu0 %v4562_v59  ;;  %3770 = vmatprep.subr.bf16.mxu1 %v4564_v60  ;;  %v703_v57 = vld [vmem:[#allocation8 + $0x8a0] sm:$0xff]  ;;  %v700_v59 = vld [vmem:[#allocation8 + $0x888] sm:$0xff] }
 0x185   :  { %v704_v60 = vld [vmem:[#allocation8 + $0x8a8] sm:$0xff]  ;;  %v4610_v1 = vcombine.high %v699_v56, %v703_v57  ;;  %v4609_v11 = vcombine.low %v699_v56, %v703_v57  ;;  %v751_v56 = vld [vmem:[#allocation8 + $0xa20] sm:$0xff] }
 0x186   :  { %v4611_v12 = vcombine.low %v700_v59, %v704_v60  ;;  %v748_v57 = vld [vmem:[#allocation8 + $0xa08] sm:$0xff] }
 0x187   :  { %3607 = vmatpush1.bf16.msra.mxu0 %v4561_v3  ;;  %3771 = vmatpush1.bf16.msra.mxu1 %v4563_v4  ;;  %v4612_v3 = vcombine.high %v700_v59, %v704_v60  ;;  %v707_v4 = vld [vmem:[#allocation8 + $0x8c0] sm:$0xff]  ;;  %v752_v59 = vld [vmem:[#allocation8 + $0xa28] sm:$0xff]  ;;  %v4649_v60 = vcombine.low %v739_v42, %v743_v43 }
 0x188   :  { %3608 = vmatprep.subr.bf16.mxu0 %v4570_v7  ;;  %3772 = vmatprep.subr.bf16.mxu1 %v4572_v9  ;;  %v711_v7 = vld [vmem:[#allocation8 + $0x8e0] sm:$0xff]  ;;  %v708_v9 = vld [vmem:[#allocation8 + $0x8c8] sm:$0xff] }
 0x189   :  { %v4618_v13 = vcombine.high %v707_v4, %v711_v7  ;;  %v4620_v18 = vcombine.high %v708_v9, %v712_v10  ;;  %v4617_v23 = vcombine.low %v707_v4, %v711_v7  ;;  %v4619_v24 = vcombine.low %v708_v9, %v712_v10  ;;  %v759_v4 = vld [vmem:[#allocation8 + $0xa60] sm:$0xff]  ;;  %v756_v7 = vld [vmem:[#allocation8 + $0xa48] sm:$0xff] }
 0x18a   :  { %v760_v9 = vld [vmem:[#allocation8 + $0xa68] sm:$0xff] }
 0x18b   :  { %3609 = vmatpush1.bf16.msra.mxu0 %v4569_v19  ;;  %3773 = vmatpush1.bf16.msra.mxu1 %v4571_v20  ;;  %v715_v19 = vld [vmem:[#allocation8 + $0x900] sm:$0xff] }
 0x18c   :  { %3610 = vmatprep.subr.bf16.mxu0 %v4578_v21  ;;  %3774 = vmatprep.subr.bf16.mxu1 %v4580_v22  ;;  %v719_v20 = vld [vmem:[#allocation8 + $0x920] sm:$0xff]  ;;  %v716_v21 = vld [vmem:[#allocation8 + $0x908] sm:$0xff] }
 0x18d   :  { %v720_v22 = vld [vmem:[#allocation8 + $0x928] sm:$0xff]  ;;  %v4626_v25 = vcombine.high %v715_v19, %v719_v20 }
 0x18e   :  { %v4628_v26 = vcombine.high %v716_v21, %v720_v22 }
 0x18f   :  { %3611 = vmatpush1.bf16.msra.mxu0 %v4577_v29  ;;  %3775 = vmatpush1.bf16.msra.mxu1 %v4579_v30  ;;  %v724_v29 = vld [vmem:[#allocation8 + $0x948] sm:$0xff] }
 0x190   :  { %3612 = vmatprep.subr.bf16.mxu0 %v4586_v31  ;;  %3776 = vmatprep.subr.bf16.mxu1 %v4588_v32  ;;  %v728_v30 = vld [vmem:[#allocation8 + $0x968] sm:$0xff]  ;;  %v4625_v31 = vcombine.low %v715_v19, %v719_v20  ;;  %v4627_v32 = vcombine.low %v716_v21, %v720_v22  ;;  %v767_v19 = vld [vmem:[#allocation8 + $0xaa0] sm:$0xff] }
 0x191   :  { %v4636_v34 = vcombine.high %v724_v29, %v728_v30  ;;  %v764_v20 = vld [vmem:[#allocation8 + $0xa88] sm:$0xff] }
 0x192   :  { %v768_v21 = vld [vmem:[#allocation8 + $0xaa8] sm:$0xff] }
 0x193   :  { %3613 = vmatpush1.bf16.msra.mxu0 %v4585_v39  ;;  %3777 = vmatpush1.bf16.msra.mxu1 %v4587_v40  ;;  %v4633_v39 = vcombine.low %v723_v27, %v727_v28  ;;  %v4635_v40 = vcombine.low %v724_v29, %v728_v30  ;;  %v775_v27 = vld [vmem:[#allocation8 + $0xae0] sm:$0xff]  ;;  %v772_v28 = vld [vmem:[#allocation8 + $0xac8] sm:$0xff] }
 0x194   :  { %3623 = vmatprep.subr.bf16.mxu0 %v4594_v58  ;;  %3787 = vmatprep.subr.bf16.mxu1 %v4596_v41  ;;  %v4642_v58 = vcombine.high %v731_v35, %v735_v36  ;;  %v4644_v41 = vcombine.high %v732_v37, %v736_v38  ;;  %v776_v29 = vld [vmem:[#allocation8 + $0xae8] sm:$0xff]  ;;  %v783_v35 = vld [vmem:[#allocation8 + $0xb20] sm:$0xff] }
 0x195   :  { %v780_v36 = vld [vmem:[#allocation8 + $0xb08] sm:$0xff] }
 0x196   :  { %3615 = vmatmul.mubr.bf16.vlgmr.msra.gmra.mrb[8].mxu0 %v5234_v52  ;;  %3779 = vmatmul.mubr.bf16.vlgmr.msra.gmra.mrb[8].mxu1 %v5234_v52 }
 0x197   :  { %3624 = vmatpush1.bf16.msra.mxu0 %v4593_v53  ;;  %3788 = vmatpush1.bf16.msra.mxu1 %v4595_v17  ;;  %v4643_v53 = vcombine.low %v732_v37, %v736_v38  ;;  %v4650_v17 = vcombine.high %v739_v42, %v743_v43  ;;  %v784_v37 = vld [vmem:[#allocation8 + $0xb28] sm:$0xff]  ;;  %v791_v42 = vld [vmem:[#allocation8 + $0xb60] sm:$0xff] }
 0x198   :  { %3625 = vmatprep.subr.bf16.mxu0 %v4602_v54  ;;  %3789 = vmatprep.subr.bf16.mxu1 %v4604_v55  ;;  %v4652_v54 = vcombine.high %v740_v44, %v744_v50  ;;  %v747_v55 = vld [vmem:[#allocation8 + $0xa00] sm:$0xff]  ;;  %v788_v43 = vld [vmem:[#allocation8 + $0xb48] sm:$0xff] }
 0x199   :  { %3655 = vmatprep.mubr.bf16.mxu0 %v5236_v61  ;;  %3819 = vmatprep.mubr.bf16.mxu1 %v5236_v61  ;;  %v4657_v10 = vcombine.low %v747_v55, %v751_v56 }
 0x19b   :  { %3626 = vmatpush1.bf16.msra.mxu0 %v4601_v62  ;;  %3790 = vmatpush1.bf16.msra.mxu1 %v4603_v0  ;;  %v4651_v62 = vcombine.low %v740_v44, %v744_v50  ;;  %v4658_v0 = vcombine.high %v747_v55, %v751_v56  ;;  %v792_v44 = vld [vmem:[#allocation8 + $0xb68] sm:$0xff]  ;;  %v5243_v50 = vsub.s32 4, %v5184_v45  ;;  %v795_v55 = vld [vmem:[#allocation8 + $0xb80] sm:$0xff] }
 0x19c   :  { %3627 = vmatprep.subr.bf16.mxu0 %v4610_v1  ;;  %3791 = vmatprep.subr.bf16.mxu1 %v4612_v3  ;;  %v4660_v1 = vcombine.high %v748_v57, %v752_v59  ;;  %v755_v3 = vld [vmem:[#allocation8 + $0xa40] sm:$0xff] }
 0x19d   :  { %v4665_v22 = vcombine.low %v755_v3, %v759_v4  ;;  %v799_v56 = vld [vmem:[#allocation8 + $0xba0] sm:$0xff] }
 0x19f   :  { %3628 = vmatpush1.bf16.msra.mxu0 %v4609_v11  ;;  %3792 = vmatpush1.bf16.msra.mxu1 %v4611_v12  ;;  %v4659_v11 = vcombine.low %v748_v57, %v752_v59  ;;  %v4666_v12 = vcombine.high %v755_v3, %v759_v4  ;;  %v796_v57 = vld [vmem:[#allocation8 + $0xb88] sm:$0xff]  ;;  %v4706_v3 = vcombine.high %v795_v55, %v799_v56 }
 0x1a0   :  { %3629 = vmatprep.subr.bf16.mxu0 %v4618_v13  ;;  %3793 = vmatprep.subr.bf16.mxu1 %v4620_v18  ;;  %v4668_v13 = vcombine.high %v756_v7, %v760_v9  ;;  %v763_v18 = vld [vmem:[#allocation8 + $0xa80] sm:$0xff]  ;;  %v800_v59 = vld [vmem:[#allocation8 + $0xba8] sm:$0xff] }
 0x1a1   :  { %v4673_v30 = vcombine.low %v763_v18, %v767_v19  ;;  %v4708_v4 = vcombine.high %v796_v57, %v800_v59 }
 0x1a3   :  { %3630 = vmatpush1.bf16.msra.mxu0 %v4617_v23  ;;  %3794 = vmatpush1.bf16.msra.mxu1 %v4619_v24  ;;  %v4667_v23 = vcombine.low %v756_v7, %v760_v9  ;;  %v4674_v24 = vcombine.high %v763_v18, %v767_v19  ;;  %v803_v7 = vld [vmem:[#allocation8 + $0xbc0] sm:$0xff]  ;;  %v4705_v18 = vcombine.low %v795_v55, %v799_v56  ;;  %v836_v55 = vld [vmem:[#allocation8 + $0xcc8] sm:$0xff] }
 0x1a4   :  { %3631 = vmatprep.subr.bf16.mxu0 %v4626_v25  ;;  %3795 = vmatprep.subr.bf16.mxu1 %v4628_v26  ;;  %v4676_v25 = vcombine.high %v764_v20, %v768_v21  ;;  %v771_v26 = vld [vmem:[#allocation8 + $0xac0] sm:$0xff]  ;;  %v4707_v19 = vcombine.low %v796_v57, %v800_v59  ;;  %v840_v56 = vld [vmem:[#allocation8 + $0xce8] sm:$0xff] }
 0x1a5   :  { %v4681_v38 = vcombine.low %v771_v26, %v775_v27  ;;  %v807_v9 = vld [vmem:[#allocation8 + $0xbe0] sm:$0xff] }
 0x1a7   :  { %3632 = vmatpush1.bf16.msra.mxu0 %v4625_v31  ;;  %3796 = vmatpush1.bf16.msra.mxu1 %v4627_v32  ;;  %v4675_v31 = vcombine.low %v764_v20, %v768_v21  ;;  %v4682_v32 = vcombine.high %v771_v26, %v775_v27  ;;  %v4714_v20 = vcombine.high %v803_v7, %v807_v9 }
 0x1a8   :  { %3633 = vmatprep.subr.bf16.mxu0 %v4634_v33  ;;  %3797 = vmatprep.subr.bf16.mxu1 %v4636_v34  ;;  %v4684_v33 = vcombine.high %v772_v28, %v776_v29  ;;  %v779_v34 = vld [vmem:[#allocation8 + $0xb00] sm:$0xff] }
 0x1ab   :  { %3634 = vmatpush1.bf16.msra.mxu0 %v4633_v39  ;;  %3798 = vmatpush1.bf16.msra.mxu1 %v4635_v40  ;;  %v4683_v39 = vcombine.low %v772_v28, %v776_v29  ;;  %v4690_v40 = vcombine.high %v779_v34, %v783_v35 }
 0x1ac   :  { %3635 = vmatprep.subr.bf16.mxu0 %v4642_v58  ;;  %3799 = vmatprep.subr.bf16.mxu1 %v4644_v41  ;;  %v4692_v58 = vcombine.high %v780_v36, %v784_v37  ;;  %v787_v41 = vld [vmem:[#allocation8 + $0xb40] sm:$0xff] }
 0x1af   :  { %3636 = vmatpush1.bf16.msra.mxu0 %v4641_v51  ;;  %3800 = vmatpush1.bf16.msra.mxu1 %v4643_v53  ;;  %v4689_v51 = vcombine.low %v779_v34, %v783_v35  ;;  %v4691_v53 = vcombine.low %v780_v36, %v784_v37 }
 0x1b0   :  { %3637 = vmatprep.subr.bf16.mxu0 %v4650_v17  ;;  %3801 = vmatprep.subr.bf16.mxu1 %v4652_v54  ;;  %v4698_v17 = vcombine.high %v787_v41, %v791_v42  ;;  %v4700_v54 = vcombine.high %v788_v43, %v792_v44 }
 0x1b3   :  { %3638 = vmatpush1.bf16.msra.mxu0 %v4649_v60  ;;  %3802 = vmatpush1.bf16.msra.mxu1 %v4651_v62  ;;  %v153_v60 = vsub.s32 7, %v5184_v45  ;;  %v142_v62 = vrot.slane %v5189_v47, %v5243_v50 }
 0x1b4   :  { %3639 = vmatprep.subr.bf16.mxu0 %v4658_v0  ;;  %3803 = vmatprep.subr.bf16.mxu1 %v4660_v1  ;;  %v4697_v0 = vcombine.low %v787_v41, %v791_v42  ;;  %v4699_v1 = vcombine.low %v788_v43, %v792_v44  ;;  %v832_v41 = vld [vmem:[#allocation8 + $0xca8] sm:$0xff] }
 0x1b7   :  { %3640 = vmatpush1.bf16.msra.mxu0 %v4657_v10  ;;  %3804 = vmatpush1.bf16.msra.mxu1 %v4659_v11  ;;  %v804_v10 = vld [vmem:[#allocation8 + $0xbc8] sm:$0xff] }
 0x1b8   :  { %3641 = vmatprep.subr.bf16.mxu0 %v4666_v12  ;;  %3805 = vmatprep.subr.bf16.mxu1 %v4668_v13  ;;  %v808_v11 = vld [vmem:[#allocation8 + $0xbe8] sm:$0xff]  ;;  %v154_v12 = vrot.slane %v5189_v47, %v153_v60  ;;  %v364_v13 = vadd.f32 %v5211_v16, %v142_v62  ;;  %v4713_v47 = vcombine.low %v803_v7, %v807_v9 }
 0x1b9   :  { %v4716_v21 = vcombine.high %v804_v10, %v808_v11  ;;  %v4715_v28 = vcombine.low %v804_v10, %v808_v11  ;;  %v848_v7 = vld [vmem:[#allocation8 + $0xd28] sm:$0xff]  ;;  %v4747_v10 = vcombine.low %v836_v55, %v840_v56 }
 0x1ba   :  { %v407_v26 = vadd.f32 %v5221_v5, %v154_v12  ;;  %v415_v27 = vmax.f32 %v364_v13, 0.0  ;;  %v851_v13 = vld [vmem:[#allocation8 + $0xd40] sm:$0xff] }
 0x1bb   :  { %3642 = vmatpush1.bf16.msra.mxu0 %v4665_v22  ;;  %3806 = vmatpush1.bf16.msra.mxu1 %v4667_v23  ;;  %v811_v22 = vld [vmem:[#allocation8 + $0xc00] sm:$0xff] }
 0x1bc   :  { %3643 = vmatprep.subr.bf16.mxu0 %v4674_v24  ;;  %3807 = vmatprep.subr.bf16.mxu1 %v4676_v25  ;;  %v815_v23 = vld [vmem:[#allocation8 + $0xc20] sm:$0xff]  ;;  %v812_v24 = vld [vmem:[#allocation8 + $0xc08] sm:$0xff]  ;;  %v418_v34 = vmax.f32 %v407_v26, 0.0  ;;  %v5253_v35 = vpack.c.bf16 %v415_v27, %v415_v27 }
 0x1bd   :  { %v816_v25 = vld [vmem:[#allocation8 + $0xc28] sm:$0xff]  ;;  %v4722_v16 = vcombine.high %v811_v22, %v815_v23  ;;  %v4721_v36 = vcombine.low %v811_v22, %v815_v23  ;;  %v863_v26 = vld [vmem:[#allocation8 + $0xda0] sm:$0xff] }
 0x1be   :  { %v4724_v29 = vcombine.high %v812_v24, %v816_v25  ;;  %v4723_v5 = vcombine.low %v812_v24, %v816_v25  ;;  %v5255_v42 = vpack.c.bf16 %v418_v34, %v418_v34  ;;  %v859_v25 = vld [vmem:[#allocation8 + $0xd80] sm:$0xff]  ;;  %v860_v27 = vld [vmem:[#allocation8 + $0xd88] sm:$0xff] }
 0x1bf   :  { %3644 = vmatpush1.bf16.msra.mxu0 %v4673_v30  ;;  %3808 = vmatpush1.bf16.msra.mxu1 %v4675_v31  ;;  %v819_v30 = vld [vmem:[#allocation8 + $0xc40] sm:$0xff]  ;;  %v872_v34 = vld [vmem:[#allocation8 + $0xde8] sm:$0xff] }
 0x1c0   :  { %3645 = vmatprep.subr.bf16.mxu0 %v4682_v32  ;;  %3809 = vmatprep.subr.bf16.mxu1 %v4684_v33  ;;  %v823_v31 = vld [vmem:[#allocation8 + $0xc60] sm:$0xff]  ;;  %v820_v32 = vld [vmem:[#allocation8 + $0xc48] sm:$0xff] }
 0x1c1   :  { %v824_v33 = vld [vmem:[#allocation8 + $0xc68] sm:$0xff]  ;;  %v4730_v37 = vcombine.high %v819_v30, %v823_v31  ;;  %v4729_v43 = vcombine.low %v819_v30, %v823_v31  ;;  %v867_v31 = vld [vmem:[#allocation8 + $0xdc0] sm:$0xff] }
 0x1c2   :  { %v4731_v44 = vcombine.low %v820_v32, %v824_v33 }
 0x1c3   :  { %3646 = vmatpush1.bf16.msra.mxu0 %v4681_v38  ;;  %3810 = vmatpush1.bf16.msra.mxu1 %v4683_v39  ;;  %v4732_v38 = vcombine.high %v820_v32, %v824_v33  ;;  %v827_v39 = vld [vmem:[#allocation8 + $0xc80] sm:$0xff]  ;;  %v868_v33 = vld [vmem:[#allocation8 + $0xdc8] sm:$0xff] }
 0x1c4   :  { %3647 = vmatprep.subr.bf16.mxu0 %v4690_v40  ;;  %3811 = vmatprep.subr.bf16.mxu1 %v4692_v58  ;;  %v831_v40 = vld [vmem:[#allocation8 + $0xca0] sm:$0xff]  ;;  %v828_v58 = vld [vmem:[#allocation8 + $0xc88] sm:$0xff] }
 0x1c5   :  { %v4737_v57 = vcombine.low %v827_v39, %v831_v40  ;;  %v4739_v59 = vcombine.low %v828_v58, %v832_v41  ;;  %v871_v32 = vld [vmem:[#allocation8 + $0xde0] sm:$0xff] }
 0x1c7   :  { %3648 = vmatpush1.bf16.msra.mxu0 %v4689_v51  ;;  %3812 = vmatpush1.bf16.msra.mxu1 %v4691_v53  ;;  %v4738_v51 = vcombine.high %v827_v39, %v831_v40  ;;  %v4740_v53 = vcombine.high %v828_v58, %v832_v41  ;;  %v875_v39 = vld [vmem:[#allocation8 + $0xe00] sm:$0xff]  ;;  %v876_v58 = vld [vmem:[#allocation8 + $0xe08] sm:$0xff] }
 0x1c8   :  { %3649 = vmatprep.subr.bf16.mxu0 %v4698_v17  ;;  %3813 = vmatprep.subr.bf16.mxu1 %v4700_v54  ;;  %v835_v17 = vld [vmem:[#allocation8 + $0xcc0] sm:$0xff]  ;;  %v880_v41 = vld [vmem:[#allocation8 + $0xe28] sm:$0xff] }
 0x1c9   :  { %v839_v54 = vld [vmem:[#allocation8 + $0xce0] sm:$0xff] }
 0x1ca   :  { %v4746_v62 = vcombine.high %v835_v17, %v839_v54  ;;  %v4745_v9 = vcombine.low %v835_v17, %v839_v54  ;;  %v879_v40 = vld [vmem:[#allocation8 + $0xe20] sm:$0xff] }
 0x1cb   :  { %3650 = vmatpush1.bf16.msra.mxu0 %v4697_v0  ;;  %3814 = vmatpush1.bf16.msra.mxu1 %v4699_v1  ;;  %v4748_v0 = vcombine.high %v836_v55, %v840_v56  ;;  %v843_v1 = vld [vmem:[#allocation8 + $0xd00] sm:$0xff]  ;;  %v884_v55 = vld [vmem:[#allocation8 + $0xe48] sm:$0xff] }
 0x1cc   :  { %3651 = vmatprep.subr.bf16.mxu0 %v4706_v3  ;;  %3815 = vmatprep.subr.bf16.mxu1 %v4708_v4  ;;  %v847_v3 = vld [vmem:[#allocation8 + $0xd20] sm:$0xff]  ;;  %v844_v4 = vld [vmem:[#allocation8 + $0xd08] sm:$0xff] }
 0x1cd   :  { %v4754_v11 = vcombine.high %v843_v1, %v847_v3  ;;  %v4756_v12 = vcombine.high %v844_v4, %v848_v7  ;;  %v4755_v22 = vcombine.low %v844_v4, %v848_v7  ;;  %v883_v17 = vld [vmem:[#allocation8 + $0xe40] sm:$0xff]  ;;  %v888_v56 = vld [vmem:[#allocation8 + $0xe68] sm:$0xff] }
 0x1ce   :  { %v887_v54 = vld [vmem:[#allocation8 + $0xe60] sm:$0xff]  ;;  %v892_v4 = vld [vmem:[#allocation8 + $0xe88] sm:$0xff] }
 0x1cf   :  { %3652 = vmatpush1.bf16.msra.mxu0 %v4705_v18  ;;  %3816 = vmatpush1.bf16.msra.mxu1 %v4707_v19  ;;  %v855_v18 = vld [vmem:[#allocation8 + $0xd60] sm:$0xff]  ;;  %v852_v19 = vld [vmem:[#allocation8 + $0xd48] sm:$0xff] }
 0x1d0   :  { %3653 = vmatprep.subr.bf16.mxu0 %v4714_v20  ;;  %3817 = vmatprep.subr.bf16.mxu1 %v4716_v21  ;;  %v856_v20 = vld [vmem:[#allocation8 + $0xd68] sm:$0xff]  ;;  %v4753_v21 = vcombine.low %v843_v1, %v847_v3  ;;  %v4762_v23 = vcombine.high %v851_v13, %v855_v18  ;;  %v891_v1 = vld [vmem:[#allocation8 + $0xe80] sm:$0xff] }
 0x1d1   :  { %v4764_v24 = vcombine.high %v852_v19, %v856_v20  ;;  %v895_v3 = vld [vmem:[#allocation8 + $0xea0] sm:$0xff]  ;;  %v896_v7 = vld [vmem:[#allocation8 + $0xea8] sm:$0xff] }
 0x1d3   :  { %3654 = vmatpush1.bf16.msra.mxu0 %v4713_v47  ;;  %3818 = vmatpush1.bf16.msra.mxu1 %v4715_v28  ;;  %v864_v47 = vld [vmem:[#allocation8 + $0xda8] sm:$0xff]  ;;  %v4761_v28 = vcombine.low %v851_v13, %v855_v18  ;;  %v899_v13 = vld [vmem:[#allocation8 + $0xec0] sm:$0xff] }
 0x1d4   :  { %3664 = vmatprep.subr.bf16.mxu0 %v4722_v16  ;;  %3828 = vmatprep.subr.bf16.mxu1 %v4724_v29  ;;  %v4763_v16 = vcombine.low %v852_v19, %v856_v20  ;;  %v4770_v29 = vcombine.high %v859_v25, %v863_v26  ;;  %v4772_v30 = vcombine.high %v860_v27, %v864_v47  ;;  %v903_v18 = vld [vmem:[#allocation8 + $0xee0] sm:$0xff]  ;;  %v900_v19 = vld [vmem:[#allocation8 + $0xec8] sm:$0xff] }
 0x1d5   :  { %v904_v20 = vld [vmem:[#allocation8 + $0xee8] sm:$0xff] }
 0x1d6   :  { %3656 = vmatmul.mubr.bf16.vlgmr.msra.gmra.mrb[8].mxu0 %v5253_v35  ;;  %3820 = vmatmul.mubr.bf16.vlgmr.msra.gmra.mrb[8].mxu1 %v5253_v35 }
 0x1d7   :  { %3665 = vmatpush1.bf16.msra.mxu0 %v4721_v36  ;;  %3829 = vmatpush1.bf16.msra.mxu1 %v4723_v5  ;;  %v4769_v36 = vcombine.low %v859_v25, %v863_v26  ;;  %v4771_v5 = vcombine.low %v860_v27, %v864_v47  ;;  %v907_v25 = vld [vmem:[#allocation8 + $0xf00] sm:$0xff]  ;;  %v908_v27 = vld [vmem:[#allocation8 + $0xf08] sm:$0xff] }
 0x1d8   :  { %3666 = vmatprep.subr.bf16.mxu0 %v4730_v37  ;;  %3830 = vmatprep.subr.bf16.mxu1 %v4732_v38  ;;  %v4778_v37 = vcombine.high %v867_v31, %v871_v32  ;;  %v4780_v38 = vcombine.high %v868_v33, %v872_v34  ;;  %v911_v26 = vld [vmem:[#allocation8 + $0xf20] sm:$0xff]  ;;  %v912_v47 = vld [vmem:[#allocation8 + $0xf28] sm:$0xff] }
 0x1d9   :  { %3696 = vmatprep.mubr.bf16.mxu0 %v5255_v42  ;;  %3860 = vmatprep.mubr.bf16.mxu1 %v5255_v42 }
 0x1db   :  { %3667 = vmatpush1.bf16.msra.mxu0 %v4729_v43  ;;  %3831 = vmatpush1.bf16.msra.mxu1 %v4731_v44  ;;  %v4777_v43 = vcombine.low %v867_v31, %v871_v32  ;;  %v4779_v44 = vcombine.low %v868_v33, %v872_v34  ;;  %v915_v31 = vld [vmem:[#allocation8 + $0xf40] sm:$0xff]  ;;  %v916_v33 = vld [vmem:[#allocation8 + $0xf48] sm:$0xff] }
 0x1dc   :  { %3668 = vmatprep.subr.bf16.mxu0 %v4738_v51  ;;  %3832 = vmatprep.subr.bf16.mxu1 %v4740_v53  ;;  %v4786_v51 = vcombine.high %v875_v39, %v879_v40  ;;  %v4788_v53 = vcombine.high %v876_v58, %v880_v41  ;;  %v919_v32 = vld [vmem:[#allocation8 + $0xf60] sm:$0xff]  ;;  %v920_v34 = vld [vmem:[#allocation8 + $0xf68] sm:$0xff] }
 0x1df   :  { %3669 = vmatpush1.bf16.msra.mxu0 %v4737_v57  ;;  %3833 = vmatpush1.bf16.msra.mxu1 %v4739_v59  ;;  %v4785_v57 = vcombine.low %v875_v39, %v879_v40  ;;  %v4787_v59 = vcombine.low %v876_v58, %v880_v41  ;;  %v4828_v39 = vcombine.high %v916_v33, %v920_v34  ;;  %v923_v40 = vld [vmem:[#allocation8 + $0xf80] sm:$0xff]  ;;  %v924_v41 = vld [vmem:[#allocation8 + $0xf88] sm:$0xff] }
 0x1e0   :  { %3670 = vmatprep.subr.bf16.mxu0 %v4746_v62  ;;  %3834 = vmatprep.subr.bf16.mxu1 %v4748_v0  ;;  %v4794_v62 = vcombine.high %v883_v17, %v887_v54  ;;  %v4796_v0 = vcombine.high %v884_v55, %v888_v56  ;;  %v927_v58 = vld [vmem:[#allocation8 + $0xfa0] sm:$0xff] }
 0x1e3   :  { %3671 = vmatpush1.bf16.msra.mxu0 %v4745_v9  ;;  %3835 = vmatpush1.bf16.msra.mxu1 %v4747_v10  ;;  %v4793_v9 = vcombine.low %v883_v17, %v887_v54  ;;  %v4795_v10 = vcombine.low %v884_v55, %v888_v56  ;;  %v4834_v54 = vcombine.high %v923_v40, %v927_v58  ;;  %v931_v56 = vld [vmem:[#allocation8 + $0xfc0] sm:$0xff] }
 0x1e4   :  { %3672 = vmatprep.subr.bf16.mxu0 %v4754_v11  ;;  %3836 = vmatprep.subr.bf16.mxu1 %v4756_v12  ;;  %v4802_v11 = vcombine.high %v891_v1, %v895_v3  ;;  %v4804_v12 = vcombine.high %v892_v4, %v896_v7 }
 0x1e7   :  { %3673 = vmatpush1.bf16.msra.mxu0 %v4753_v21  ;;  %3837 = vmatpush1.bf16.msra.mxu1 %v4755_v22  ;;  %v4801_v21 = vcombine.low %v891_v1, %v895_v3  ;;  %v4803_v22 = vcombine.low %v892_v4, %v896_v7 }
 0x1e8   :  { %3674 = vmatprep.subr.bf16.mxu0 %v4762_v23  ;;  %3838 = vmatprep.subr.bf16.mxu1 %v4764_v24  ;;  %v4810_v23 = vcombine.high %v899_v13, %v903_v18  ;;  %v4812_v24 = vcombine.high %v900_v19, %v904_v20 }
 0x1eb   :  { %3675 = vmatpush1.bf16.msra.mxu0 %v4761_v28  ;;  %3839 = vmatpush1.bf16.msra.mxu1 %v4763_v16  ;;  %v4809_v28 = vcombine.low %v899_v13, %v903_v18  ;;  %v4811_v16 = vcombine.low %v900_v19, %v904_v20 }
 0x1ec   :  { %3676 = vmatprep.subr.bf16.mxu0 %v4770_v29  ;;  %3840 = vmatprep.subr.bf16.mxu1 %v4772_v30  ;;  %v4818_v29 = vcombine.high %v907_v25, %v911_v26  ;;  %v4820_v30 = vcombine.high %v908_v27, %v912_v47 }
 0x1ef   :  { %3677 = vmatpush1.bf16.msra.mxu0 %v4769_v36  ;;  %3841 = vmatpush1.bf16.msra.mxu1 %v4771_v5  ;;  %v4817_v36 = vcombine.low %v907_v25, %v911_v26  ;;  %v4819_v5 = vcombine.low %v908_v27, %v912_v47 }
 0x1f0   :  { %3678 = vmatprep.subr.bf16.mxu0 %v4778_v37  ;;  %3842 = vmatprep.subr.bf16.mxu1 %v4780_v38  ;;  %v5262_v37 = vsub.s32 6, %v5184_v45  ;;  %v4826_v38 = vcombine.high %v915_v31, %v919_v32 }
 0x1f3   :  { %3679 = vmatpush1.bf16.msra.mxu0 %v4777_v43  ;;  %3843 = vmatpush1.bf16.msra.mxu1 %v4779_v44  ;;  %v928_v43 = vld [vmem:[#allocation8 + $0xfa8] sm:$0xff]  ;;  %v4825_v44 = vcombine.low %v915_v31, %v919_v32  ;;  %v450_v31 = vld [vmem:[#allocation8 + $0xb8] sm:$0xff] }
 0x1f4   :  { %3680 = vmatprep.subr.bf16.mxu0 %v4786_v51  ;;  %3844 = vmatprep.subr.bf16.mxu1 %v4788_v53  ;;  %v4827_v51 = vcombine.low %v916_v33, %v920_v34  ;;  %v4915_v53 = vld [vmem:[#allocation7] sm:$0xff]  ;;  %v4836_v55 = vcombine.high %v924_v41, %v928_v43  ;;  %v4835_v1 = vcombine.low %v924_v41, %v928_v43 }
 0x1f5   :  { %v150_v17 = vrot.slane %v4915_v53, %v5262_v37  ;;  %v465_v53 = vld [vmem:[#allocation8 + $0x130] sm:$0xff] }
 0x1f7   :  { %3681 = vmatpush1.bf16.msra.mxu0 %v4785_v57  ;;  %3845 = vmatpush1.bf16.msra.mxu1 %v4787_v59  ;;  %v935_v57 = vld [vmem:[#allocation8 + $0xfe0] sm:$0xff]  ;;  %v932_v59 = vld [vmem:[#allocation8 + $0xfc8] sm:$0xff]  ;;  %v405_v3 = vadd.f32 %v5219_v63, %v150_v17  ;;  %v438_v63 = vld [vmem:[#allocation8 + $0x58] sm:$0xff] }
 0x1f8   :  { %3682 = vmatprep.subr.bf16.mxu0 %v4794_v62  ;;  %3846 = vmatprep.subr.bf16.mxu1 %v4796_v0  ;;  %v936_v62 = vld [vmem:[#allocation8 + $0xfe8] sm:$0xff]  ;;  %v4833_v0 = vcombine.low %v923_v40, %v927_v58  ;;  %v4842_v4 = vcombine.high %v931_v56, %v935_v57  ;;  %v4841_v13 = vcombine.low %v931_v56, %v935_v57  ;;  %v458_v40 = vld [vmem:[#allocation8 + $0xf8] sm:$0xff] }
 0x1f9   :  { %v4844_v7 = vcombine.high %v932_v59, %v936_v62  ;;  %v4843_v18 = vcombine.low %v932_v59, %v936_v62  ;;  %v417_v19 = vmax.f32 %v405_v3, 0.0  ;;  %v466_v17 = vld [vmem:[#allocation8 + $0x138] sm:$0xff]  ;;  %v469_v59 = vld [vmem:[#allocation8 + $0x150] sm:$0xff] }
 0x1fa   :  { %v473_v62 = vld [vmem:[#allocation8 + $0x170] sm:$0xff] }
 0x1fb   :  { %3683 = vmatpush1.bf16.msra.mxu0 %v4793_v9  ;;  %3847 = vmatpush1.bf16.msra.mxu1 %v4795_v10  ;;  %v429_v9 = vld [vmem:[#allocation8 + $0x10] sm:$0xff]  ;;  %v5266_v26 = vpack.c.bf16 %v417_v19, %v417_v19 }
 0x1fc   :  { %3684 = vmatprep.subr.bf16.mxu0 %v4802_v11  ;;  %3848 = vmatprep.subr.bf16.mxu1 %v4804_v12  ;;  %v433_v10 = vld [vmem:[#allocation8 + $0x30] sm:$0xff]  ;;  %v430_v11 = vld [vmem:[#allocation8 + $0x18] sm:$0xff] }
 0x1fd   :  { %v434_v12 = vld [vmem:[#allocation8 + $0x38] sm:$0xff]  ;;  %v4342_v20 = vcombine.high %v429_v9, %v433_v10  ;;  %v4341_v25 = vcombine.low %v429_v9, %v433_v10  ;;  %v477_v10 = vld [vmem:[#allocation8 + $0x190] sm:$0xff] }
 0x1fe   :  { %v4343_v27 = vcombine.low %v430_v11, %v434_v12 }
 0x1ff   :  { %3685 = vmatpush1.bf16.msra.mxu0 %v4801_v21  ;;  %3849 = vmatpush1.bf16.msra.mxu1 %v4803_v22  ;;  %v4344_v21 = vcombine.high %v430_v11, %v434_v12  ;;  %v437_v22 = vld [vmem:[#allocation8 + $0x50] sm:$0xff]  ;;  %v478_v12 = vld [vmem:[#allocation8 + $0x198] sm:$0xff] }
 0x200   :  { %3686 = vmatprep.subr.bf16.mxu0 %v4810_v23  ;;  %3850 = vmatprep.subr.bf16.mxu1 %v4812_v24  ;;  %v441_v23 = vld [vmem:[#allocation8 + $0x70] sm:$0xff]  ;;  %v442_v24 = vld [vmem:[#allocation8 + $0x78] sm:$0xff] }
 0x201   :  { %v4350_v47 = vcombine.high %v437_v22, %v441_v23  ;;  %v4349_v32 = vcombine.low %v437_v22, %v441_v23  ;;  %v4351_v33 = vcombine.low %v438_v63, %v442_v24  ;;  %v481_v11 = vld [vmem:[#allocation8 + $0x1b0] sm:$0xff] }
 0x202   :  { %v485_v22 = vld [vmem:[#allocation8 + $0x1d0] sm:$0xff] }
 0x203   :  { %3687 = vmatpush1.bf16.msra.mxu0 %v4809_v28  ;;  %3851 = vmatpush1.bf16.msra.mxu1 %v4811_v16  ;;  %v4352_v28 = vcombine.high %v438_v63, %v442_v24  ;;  %v445_v16 = vld [vmem:[#allocation8 + $0x90] sm:$0xff]  ;;  %v486_v63 = vld [vmem:[#allocation8 + $0x1d8] sm:$0xff] }
 0x204   :  { %3688 = vmatprep.subr.bf16.mxu0 %v4818_v29  ;;  %3852 = vmatprep.subr.bf16.mxu1 %v4820_v30  ;;  %v449_v29 = vld [vmem:[#allocation8 + $0xb0] sm:$0xff]  ;;  %v446_v30 = vld [vmem:[#allocation8 + $0x98] sm:$0xff] }
 0x205   :  { %v4358_v34 = vcombine.high %v445_v16, %v449_v29  ;;  %v4357_v58 = vcombine.low %v445_v16, %v449_v29  ;;  %v4359_v41 = vcombine.low %v446_v30, %v450_v31  ;;  %v489_v23 = vld [vmem:[#allocation8 + $0x1f0] sm:$0xff]  ;;  %v490_v24 = vld [vmem:[#allocation8 + $0x1f8] sm:$0xff] }
 0x206   :  { %v493_v16 = vld [vmem:[#allocation8 + $0x210] sm:$0xff] }
 0x207   :  { %3689 = vmatpush1.bf16.msra.mxu0 %v4817_v36  ;;  %3853 = vmatpush1.bf16.msra.mxu1 %v4819_v5  ;;  %v4360_v36 = vcombine.high %v446_v30, %v450_v31  ;;  %v453_v5 = vld [vmem:[#allocation8 + $0xd0] sm:$0xff]  ;;  %v494_v30 = vld [vmem:[#allocation8 + $0x218] sm:$0xff] }
 0x208   :  { %3690 = vmatprep.subr.bf16.mxu0 %v4826_v38  ;;  %3854 = vmatprep.subr.bf16.mxu1 %v4828_v39  ;;  %v457_v38 = vld [vmem:[#allocation8 + $0xf0] sm:$0xff]  ;;  %v454_v39 = vld [vmem:[#allocation8 + $0xd8] sm:$0xff] }
 0x209   :  { %v4366_v43 = vcombine.high %v453_v5, %v457_v38  ;;  %v497_v29 = vld [vmem:[#allocation8 + $0x230] sm:$0xff]  ;;  %v498_v31 = vld [vmem:[#allocation8 + $0x238] sm:$0xff] }
 0x20b   :  { %3691 = vmatpush1.bf16.msra.mxu0 %v4825_v44  ;;  %3855 = vmatpush1.bf16.msra.mxu1 %v4827_v51  ;;  %v4368_v44 = vcombine.high %v454_v39, %v458_v40  ;;  %v461_v51 = vld [vmem:[#allocation8 + $0x110] sm:$0xff] }
 0x20c   :  { %3692 = vmatprep.subr.bf16.mxu0 %v4834_v54  ;;  %3856 = vmatprep.subr.bf16.mxu1 %v4836_v55  ;;  %v4365_v54 = vcombine.low %v453_v5, %v457_v38  ;;  %v4367_v55 = vcombine.low %v454_v39, %v458_v40  ;;  %v4374_v56 = vcombine.high %v461_v51, %v465_v53  ;;  %v501_v5 = vld [vmem:[#allocation8 + $0x250] sm:$0xff]  ;;  %v502_v39 = vld [vmem:[#allocation8 + $0x258] sm:$0xff] }
 0x20d   :  { %v4373_v3 = vcombine.low %v461_v51, %v465_v53  ;;  %v505_v38 = vld [vmem:[#allocation8 + $0x270] sm:$0xff]  ;;  %v506_v40 = vld [vmem:[#allocation8 + $0x278] sm:$0xff] }
 0x20e   :  { %v509_v51 = vld [vmem:[#allocation8 + $0x290] sm:$0xff] }
 0x20f   :  { %3693 = vmatpush1.bf16.msra.mxu0 %v4833_v0  ;;  %3857 = vmatpush1.bf16.msra.mxu1 %v4835_v1  ;;  %v470_v0 = vld [vmem:[#allocation8 + $0x158] sm:$0xff]  ;;  %v513_v53 = vld [vmem:[#allocation8 + $0x2b0] sm:$0xff] }
 0x210   :  { %3694 = vmatprep.subr.bf16.mxu0 %v4842_v4  ;;  %3858 = vmatprep.subr.bf16.mxu1 %v4844_v7  ;;  %v474_v1 = vld [vmem:[#allocation8 + $0x178] sm:$0xff]  ;;  %v4382_v7 = vcombine.high %v469_v59, %v473_v62 }
 0x211   :  { %v4384_v9 = vcombine.high %v470_v0, %v474_v1  ;;  %v4383_v19 = vcombine.low %v470_v0, %v474_v1  ;;  %v518_v0 = vld [vmem:[#allocation8 + $0x2d8] sm:$0xff] }
 0x212   :  { %v522_v1 = vld [vmem:[#allocation8 + $0x2f8] sm:$0xff] }
 0x213   :  { %3695 = vmatpush1.bf16.msra.mxu0 %v4841_v13  ;;  %3859 = vmatpush1.bf16.msra.mxu1 %v4843_v18  ;;  %v482_v13 = vld [vmem:[#allocation8 + $0x1b8] sm:$0xff]  ;;  %v4381_v18 = vcombine.low %v469_v59, %v473_v62  ;;  %v517_v59 = vld [vmem:[#allocation8 + $0x2d0] sm:$0xff] }
 0x214   :  { %3869 = vmatprep.subr.bf16.mxu0 %v4342_v20  ;;  %4033 = vmatprep.subr.bf16.mxu1 %v4344_v21  ;;  %v4390_v20 = vcombine.high %v477_v10, %v481_v11  ;;  %v4392_v21 = vcombine.high %v478_v12, %v482_v13  ;;  %v521_v62 = vld [vmem:[#allocation8 + $0x2f0] sm:$0xff] }
 0x216   :  { %3697 = vmatmul.mubr.bf16.vlgmr.msra.gmra.mrb[8].mxu0 %v5266_v26  ;;  %3861 = vmatmul.mubr.bf16.vlgmr.msra.gmra.mrb[8].mxu1 %v5266_v26 }
 0x217   :  { %3870 = vmatpush1.bf16.msra.mxu0 %v4341_v25  ;;  %3901 = vmatprep.mubr.bf16.mxu0 %v5203_v6  ;;  %v4389_v25 = vcombine.low %v477_v10, %v481_v11  ;;  %v525_v10 = vld [vmem:[#allocation8 + $0x310] sm:$0xff] }
 0x218   :  { %4034 = vmatpush1.bf16.msra.mxu1 %v4343_v27  ;;  %4065 = vmatprep.mubr.bf16.mxu1 %v5203_v6  ;;  %v462_v6 = vld [vmem:[#allocation8 + $0x118] sm:$0xff]  ;;  %v4391_v27 = vcombine.low %v478_v12, %v482_v13  ;;  %v529_v11 = vld [vmem:[#allocation8 + $0x330] sm:$0xff] }
 0x219   :  { %3871 = vmatprep.subr.bf16.mxu0 %v4350_v47  ;;  %4035 = vmatprep.subr.bf16.mxu1 %v4352_v28  ;;  %v4376_v57 = vcombine.high %v462_v6, %v466_v17  ;;  %v4375_v4 = vcombine.low %v462_v6, %v466_v17  ;;  %v4398_v47 = vcombine.high %v485_v22, %v489_v23  ;;  %v510_v6 = vld [vmem:[#allocation8 + $0x298] sm:$0xff] }
 0x21a   :  { %v4400_v28 = vcombine.high %v486_v63, %v490_v24  ;;  %v514_v17 = vld [vmem:[#allocation8 + $0x2b8] sm:$0xff] }
 0x21b   :  { %3872 = vmatpush1.bf16.msra.mxu0 %v4349_v32  ;;  %v4397_v32 = vcombine.low %v485_v22, %v489_v23  ;;  %v526_v12 = vld [vmem:[#allocation8 + $0x318] sm:$0xff]  ;;  %v533_v22 = vld [vmem:[#allocation8 + $0x350] sm:$0xff] }
 0x21c   :  { %4036 = vmatpush1.bf16.msra.mxu1 %v4351_v33  ;;  %3873 = vmatprep.subr.bf16.mxu0 %v4358_v34  ;;  %v4399_v33 = vcombine.low %v486_v63, %v490_v24  ;;  %v4406_v34 = vcombine.high %v493_v16, %v497_v29  ;;  %v530_v13 = vld [vmem:[#allocation8 + $0x338] sm:$0xff]  ;;  %v537_v23 = vld [vmem:[#allocation8 + $0x370] sm:$0xff] }
 0x21d   :  { %4037 = vmatprep.subr.bf16.mxu1 %v4360_v36  ;;  %v4408_v36 = vcombine.high %v494_v30, %v498_v31  ;;  %v534_v63 = vld [vmem:[#allocation8 + $0x358] sm:$0xff] }
 0x21e   :  { %v538_v24 = vld [vmem:[#allocation8 + $0x378] sm:$0xff] }
 0x21f   :  { %3874 = vmatpush1.bf16.msra.mxu0 %v4357_v58  ;;  %v4405_v58 = vcombine.low %v493_v16, %v497_v29  ;;  %v541_v16 = vld [vmem:[#allocation8 + $0x390] sm:$0xff] }
 0x220   :  { %4038 = vmatpush1.bf16.msra.mxu1 %v4359_v41  ;;  %3875 = vmatprep.subr.bf16.mxu0 %v4366_v43  ;;  %v4407_v41 = vcombine.low %v494_v30, %v498_v31  ;;  %v4414_v43 = vcombine.high %v501_v5, %v505_v38  ;;  %v545_v29 = vld [vmem:[#allocation8 + $0x3b0] sm:$0xff]  ;;  %v542_v30 = vld [vmem:[#allocation8 + $0x398] sm:$0xff] }
 0x221   :  { %4039 = vmatprep.subr.bf16.mxu1 %v4368_v44  ;;  %v4416_v44 = vcombine.high %v502_v39, %v506_v40  ;;  %v546_v31 = vld [vmem:[#allocation8 + $0x3b8] sm:$0xff] }
 0x223   :  { %3876 = vmatpush1.bf16.msra.mxu0 %v4365_v54  ;;  %v4413_v54 = vcombine.low %v501_v5, %v505_v38  ;;  %v549_v5 = vld [vmem:[#allocation8 + $0x3d0] sm:$0xff] }
 0x224   :  { %4040 = vmatpush1.bf16.msra.mxu1 %v4367_v55  ;;  %3877 = vmatprep.subr.bf16.mxu0 %v4374_v56  ;;  %v4415_v55 = vcombine.low %v502_v39, %v506_v40  ;;  %v4422_v56 = vcombine.high %v509_v51, %v513_v53  ;;  %v553_v38 = vld [vmem:[#allocation8 + $0x3f0] sm:$0xff]  ;;  %v550_v39 = vld [vmem:[#allocation8 + $0x3d8] sm:$0xff] }
 0x225   :  { %4041 = vmatprep.subr.bf16.mxu1 %v4376_v57  ;;  %v4424_v57 = vcombine.high %v510_v6, %v514_v17  ;;  %v554_v40 = vld [vmem:[#allocation8 + $0x3f8] sm:$0xff] }
 0x227   :  { %3878 = vmatpush1.bf16.msra.mxu0 %v4373_v3  ;;  %v4421_v3 = vcombine.low %v509_v51, %v513_v53  ;;  %v557_v51 = vld [vmem:[#allocation8 + $0x410] sm:$0xff] }
 0x228   :  { %4042 = vmatpush1.bf16.msra.mxu1 %v4375_v4  ;;  %3879 = vmatprep.subr.bf16.mxu0 %v4382_v7  ;;  %v4423_v4 = vcombine.low %v510_v6, %v514_v17  ;;  %v4430_v7 = vcombine.high %v517_v59, %v521_v62  ;;  %v561_v53 = vld [vmem:[#allocation8 + $0x430] sm:$0xff]  ;;  %v558_v6 = vld [vmem:[#allocation8 + $0x418] sm:$0xff] }
 0x229   :  { %4043 = vmatprep.subr.bf16.mxu1 %v4384_v9  ;;  %v4432_v9 = vcombine.high %v518_v0, %v522_v1  ;;  %v562_v17 = vld [vmem:[#allocation8 + $0x438] sm:$0xff] }
 0x22b   :  { %3880 = vmatpush1.bf16.msra.mxu0 %v4381_v18  ;;  %v4429_v18 = vcombine.low %v517_v59, %v521_v62  ;;  %v565_v59 = vld [vmem:[#allocation8 + $0x450] sm:$0xff] }
 0x22c   :  { %4044 = vmatpush1.bf16.msra.mxu1 %v4383_v19  ;;  %3881 = vmatprep.subr.bf16.mxu0 %v4390_v20  ;;  %v4431_v19 = vcombine.low %v518_v0, %v522_v1  ;;  %v4438_v20 = vcombine.high %v525_v10, %v529_v11  ;;  %v569_v62 = vld [vmem:[#allocation8 + $0x470] sm:$0xff]  ;;  %v4469_v0 = vcombine.low %v557_v51, %v561_v53  ;;  %v566_v1 = vld [vmem:[#allocation8 + $0x458] sm:$0xff] }
 0x22d   :  { %4045 = vmatprep.subr.bf16.mxu1 %v4392_v21  ;;  %v4440_v21 = vcombine.high %v526_v12, %v530_v13 }
 0x22f   :  { %3882 = vmatpush1.bf16.msra.mxu0 %v4389_v25  ;;  %v4437_v25 = vcombine.low %v525_v10, %v529_v11  ;;  %v577_v10 = vld [vmem:[#allocation8 + $0x4b0] sm:$0xff] }
 0x230   :  { %4046 = vmatpush1.bf16.msra.mxu1 %v4391_v27  ;;  %3883 = vmatprep.subr.bf16.mxu0 %v4398_v47  ;;  %v4439_v27 = vcombine.low %v526_v12, %v530_v13  ;;  %v4446_v47 = vcombine.high %v533_v22, %v537_v23  ;;  %v574_v12 = vld [vmem:[#allocation8 + $0x498] sm:$0xff] }
 0x231   :  { %4047 = vmatprep.subr.bf16.mxu1 %v4400_v28  ;;  %v4448_v28 = vcombine.high %v534_v63, %v538_v24  ;;  %v578_v13 = vld [vmem:[#allocation8 + $0x4b8] sm:$0xff] }
 0x233   :  { %3884 = vmatpush1.bf16.msra.mxu0 %v4397_v32  ;;  %v4445_v32 = vcombine.low %v533_v22, %v537_v23  ;;  %v581_v22 = vld [vmem:[#allocation8 + $0x4d0] sm:$0xff] }
 0x234   :  { %4048 = vmatpush1.bf16.msra.mxu1 %v4399_v33  ;;  %3885 = vmatprep.subr.bf16.mxu0 %v4406_v34  ;;  %v4447_v33 = vcombine.low %v534_v63, %v538_v24  ;;  %v4454_v34 = vcombine.high %v541_v16, %v545_v29  ;;  %v585_v23 = vld [vmem:[#allocation8 + $0x4f0] sm:$0xff]  ;;  %v582_v63 = vld [vmem:[#allocation8 + $0x4d8] sm:$0xff] }
 0x235   :  { %4049 = vmatprep.subr.bf16.mxu1 %v4408_v36  ;;  %v4456_v36 = vcombine.high %v542_v30, %v546_v31  ;;  %v586_v24 = vld [vmem:[#allocation8 + $0x4f8] sm:$0xff] }
 0x237   :  { %3886 = vmatpush1.bf16.msra.mxu0 %v4405_v58  ;;  %v4453_v58 = vcombine.low %v541_v16, %v545_v29  ;;  %v593_v16 = vld [vmem:[#allocation8 + $0x530] sm:$0xff]  ;;  %v590_v29 = vld [vmem:[#allocation8 + $0x518] sm:$0xff] }
 0x238   :  { %4050 = vmatpush1.bf16.msra.mxu1 %v4407_v41  ;;  %3887 = vmatprep.subr.bf16.mxu0 %v4414_v43  ;;  %v4455_v41 = vcombine.low %v542_v30, %v546_v31  ;;  %v4462_v43 = vcombine.high %v549_v5, %v553_v38  ;;  %v594_v30 = vld [vmem:[#allocation8 + $0x538] sm:$0xff]  ;;  %v4495_v31 = vcombine.low %v582_v63, %v586_v24 }
 0x239   :  { %4051 = vmatprep.subr.bf16.mxu1 %v4416_v44  ;;  %v4464_v44 = vcombine.high %v550_v39, %v554_v40 }
 0x23b   :  { %3888 = vmatpush1.bf16.msra.mxu0 %v4413_v54  ;;  %v4461_v54 = vcombine.low %v549_v5, %v553_v38  ;;  %v598_v5 = vld [vmem:[#allocation8 + $0x558] sm:$0xff] }
 0x23c   :  { %4052 = vmatpush1.bf16.msra.mxu1 %v4415_v55  ;;  %3889 = vmatprep.subr.bf16.mxu0 %v4422_v56  ;;  %v4463_v55 = vcombine.low %v550_v39, %v554_v40  ;;  %v4470_v56 = vcombine.high %v557_v51, %v561_v53  ;;  %v602_v38 = vld [vmem:[#allocation8 + $0x578] sm:$0xff]  ;;  %v4503_v40 = vcombine.low %v590_v29, %v594_v30 }
 0x23d   :  { %4053 = vmatprep.subr.bf16.mxu1 %v4424_v57  ;;  %v4472_v57 = vcombine.high %v558_v6, %v562_v17  ;;  %v606_v51 = vld [vmem:[#allocation8 + $0x598] sm:$0xff] }
 0x23e   :  { %v610_v53 = vld [vmem:[#allocation8 + $0x5b8] sm:$0xff] }
 0x23f   :  { %3890 = vmatpush1.bf16.msra.mxu0 %v4421_v3  ;;  %v570_v3 = vld [vmem:[#allocation8 + $0x478] sm:$0xff] }
 0x240   :  { %4054 = vmatpush1.bf16.msra.mxu1 %v4423_v4  ;;  %3891 = vmatprep.subr.bf16.mxu0 %v4430_v7  ;;  %v4471_v4 = vcombine.low %v558_v6, %v562_v17  ;;  %v4478_v7 = vcombine.high %v565_v59, %v569_v62  ;;  %v4480_v11 = vcombine.high %v566_v1, %v570_v3 }
 0x241   :  { %4055 = vmatprep.subr.bf16.mxu1 %v4432_v9  ;;  %v573_v9 = vld [vmem:[#allocation8 + $0x490] sm:$0xff]  ;;  %v4511_v17 = vcombine.low %v598_v5, %v602_v38 }
 0x243   :  { %3892 = vmatpush1.bf16.msra.mxu0 %v4429_v18  ;;  %v4477_v18 = vcombine.low %v565_v59, %v569_v62  ;;  %v614_v59 = vld [vmem:[#allocation8 + $0x5d8] sm:$0xff] }
 0x244   :  { %4056 = vmatpush1.bf16.msra.mxu1 %v4431_v19  ;;  %3893 = vmatprep.subr.bf16.mxu0 %v4438_v20  ;;  %v4479_v19 = vcombine.low %v566_v1, %v570_v3  ;;  %v4486_v20 = vcombine.high %v573_v9, %v577_v10  ;;  %v618_v62 = vld [vmem:[#allocation8 + $0x5f8] sm:$0xff]  ;;  %v4519_v1 = vcombine.low %v606_v51, %v610_v53 }
 0x245   :  { %4057 = vmatprep.subr.bf16.mxu1 %v4440_v21  ;;  %v4488_v21 = vcombine.high %v574_v12, %v578_v13 }
 0x247   :  { %3894 = vmatpush1.bf16.msra.mxu0 %v4437_v25  ;;  %v4485_v25 = vcombine.low %v573_v9, %v577_v10  ;;  %v625_v9 = vld [vmem:[#allocation8 + $0x630] sm:$0xff]  ;;  %v622_v10 = vld [vmem:[#allocation8 + $0x618] sm:$0xff] }
 0x248   :  { %4058 = vmatpush1.bf16.msra.mxu1 %v4439_v27  ;;  %3895 = vmatprep.subr.bf16.mxu0 %v4446_v47  ;;  %v4494_v27 = vcombine.high %v581_v22, %v585_v23  ;;  %v4496_v47 = vcombine.high %v582_v63, %v586_v24 }
 0x249   :  { %4059 = vmatprep.subr.bf16.mxu1 %v4448_v28  ;;  %v589_v28 = vld [vmem:[#allocation8 + $0x510] sm:$0xff] }
 0x24a   :  { %v4501_v39 = vcombine.low %v589_v28, %v593_v16 }
 0x24b   :  { %3896 = vmatpush1.bf16.msra.mxu0 %v4445_v32  ;;  %v4502_v32 = vcombine.high %v589_v28, %v593_v16  ;;  %v638_v28 = vld [vmem:[#allocation8 + $0x698] sm:$0xff] }
 0x24c   :  { %4060 = vmatpush1.bf16.msra.mxu1 %v4447_v33  ;;  %3897 = vmatprep.subr.bf16.mxu0 %v4454_v34  ;;  %v4504_v33 = vcombine.high %v590_v29, %v594_v30  ;;  %v597_v34 = vld [vmem:[#allocation8 + $0x550] sm:$0xff]  ;;  %v642_v16 = vld [vmem:[#allocation8 + $0x6b8] sm:$0xff] }
 0x24d   :  { %4061 = vmatprep.subr.bf16.mxu1 %v4456_v36  ;;  %v601_v36 = vld [vmem:[#allocation8 + $0x570] sm:$0xff] }
 0x24e   :  { %v4509_v6 = vcombine.low %v597_v34, %v601_v36 }
 0x24f   :  { %3898 = vmatpush1.bf16.msra.mxu0 %v4453_v58  ;;  %v4510_v58 = vcombine.high %v597_v34, %v601_v36  ;;  %v646_v34 = vld [vmem:[#allocation8 + $0x6d8] sm:$0xff] }
 0x250   :  { %4062 = vmatpush1.bf16.msra.mxu1 %v4455_v41  ;;  %3899 = vmatprep.subr.bf16.mxu0 %v4462_v43  ;;  %v4512_v41 = vcombine.high %v598_v5, %v602_v38  ;;  %v605_v43 = vld [vmem:[#allocation8 + $0x590] sm:$0xff]  ;;  %v650_v36 = vld [vmem:[#allocation8 + $0x6f8] sm:$0xff]  ;;  %v4551_v38 = vcombine.low %v638_v28, %v642_v16 }
 0x251   :  { %4063 = vmatprep.subr.bf16.mxu1 %v4464_v44  ;;  %v609_v44 = vld [vmem:[#allocation8 + $0x5b0] sm:$0xff] }
 0x253   :  { %3900 = vmatpush1.bf16.msra.mxu0 %v4461_v54  ;;  %v4518_v54 = vcombine.high %v605_v43, %v609_v44 }
 0x254   :  { %4064 = vmatpush1.bf16.msra.mxu1 %v4463_v55  ;;  %3910 = vmatprep.subr.bf16.mxu0 %v4470_v56  ;;  %v4520_v55 = vcombine.high %v606_v51, %v610_v53  ;;  %v613_v56 = vld [vmem:[#allocation8 + $0x5d0] sm:$0xff]  ;;  %v4559_v53 = vcombine.low %v646_v34, %v650_v36 }
 0x255   :  { %4074 = vmatprep.subr.bf16.mxu1 %v4472_v57  ;;  %v617_v57 = vld [vmem:[#allocation8 + $0x5f0] sm:$0xff] }
 0x256   :  { %3902 = vmatmul.mubr.bf16.vlgmr.msra.gmra.mrb[12].mxu0 %v5205_v8  ;;  %v4526_v3 = vcombine.high %v613_v56, %v617_v57 }
 0x257   :  { %4066 = vmatmul.mubr.bf16.vlgmr.msra.gmra.mrb[12].mxu1 %v5205_v8  ;;  %3911 = vmatpush1.bf16.msra.mxu0 %v4469_v0  ;;  %v4487_v8 = vcombine.low %v574_v12, %v578_v13  ;;  %v4517_v0 = vcombine.low %v605_v43, %v609_v44  ;;  %v4525_v12 = vcombine.low %v613_v56, %v617_v57  ;;  %v654_v43 = vld [vmem:[#allocation8 + $0x718] sm:$0xff] }
 0x258   :  { %3942 = vmatprep.mubr.bf16.mxu0 %v5209_v15  ;;  %4075 = vmatpush1.bf16.msra.mxu1 %v4471_v4  ;;  %v4528_v4 = vcombine.high %v614_v59, %v618_v62  ;;  %v4527_v13 = vcombine.low %v614_v59, %v618_v62  ;;  %v658_v44 = vld [vmem:[#allocation8 + $0x738] sm:$0xff] }
 0x259   :  { %4106 = vmatprep.mubr.bf16.mxu1 %v5209_v15  ;;  %3912 = vmatprep.subr.bf16.mxu0 %v4478_v7  ;;  %v4493_v15 = vcombine.low %v581_v22, %v585_v23  ;;  %v621_v7 = vld [vmem:[#allocation8 + $0x610] sm:$0xff]  ;;  %v630_v22 = vld [vmem:[#allocation8 + $0x658] sm:$0xff]  ;;  %v4567_v62 = vcombine.low %v654_v43, %v658_v44 }
 0x25a   :  { %4076 = vmatprep.subr.bf16.mxu1 %v4480_v11  ;;  %v626_v11 = vld [vmem:[#allocation8 + $0x638] sm:$0xff]  ;;  %v4533_v63 = vcombine.low %v621_v7, %v625_v9 }
 0x25b   :  { %3913 = vmatpush1.bf16.msra.mxu0 %v4477_v18  ;;  %v4534_v18 = vcombine.high %v621_v7, %v625_v9  ;;  %v634_v23 = vld [vmem:[#allocation8 + $0x678] sm:$0xff]  ;;  %v4535_v24 = vcombine.low %v622_v10, %v626_v11 }
 0x25c   :  { %4077 = vmatpush1.bf16.msra.mxu1 %v4479_v19  ;;  %3914 = vmatprep.subr.bf16.mxu0 %v4486_v20  ;;  %v4536_v19 = vcombine.high %v622_v10, %v626_v11  ;;  %v629_v20 = vld [vmem:[#allocation8 + $0x650] sm:$0xff]  ;;  %v4543_v30 = vcombine.low %v630_v22, %v634_v23  ;;  %v662_v56 = vld [vmem:[#allocation8 + $0x758] sm:$0xff] }
 0x25d   :  { %4078 = vmatprep.subr.bf16.mxu1 %v4488_v21  ;;  %v633_v21 = vld [vmem:[#allocation8 + $0x670] sm:$0xff]  ;;  %v666_v57 = vld [vmem:[#allocation8 + $0x778] sm:$0xff] }
 0x25e   :  { %v4541_v29 = vcombine.low %v629_v20, %v633_v21  ;;  %v670_v7 = vld [vmem:[#allocation8 + $0x798] sm:$0xff]  ;;  %v4575_v11 = vcombine.low %v662_v56, %v666_v57 }
 0x25f   :  { %3915 = vmatpush1.bf16.msra.mxu0 %v4485_v25  ;;  %v4542_v25 = vcombine.high %v629_v20, %v633_v21  ;;  %v674_v9 = vld [vmem:[#allocation8 + $0x7b8] sm:$0xff] }
 0x260   :  { %4079 = vmatpush1.bf16.msra.mxu1 %v4487_v8  ;;  %3916 = vmatprep.subr.bf16.mxu0 %v4494_v27  ;;  %v4544_v8 = vcombine.high %v630_v22, %v634_v23  ;;  %v637_v27 = vld [vmem:[#allocation8 + $0x690] sm:$0xff]  ;;  %v678_v20 = vld [vmem:[#allocation8 + $0x7d8] sm:$0xff]  ;;  %v4583_v23 = vcombine.low %v670_v7, %v674_v9 }
 0x261   :  { %4080 = vmatprep.subr.bf16.mxu1 %v4496_v47  ;;  %v641_v47 = vld [vmem:[#allocation8 + $0x6b0] sm:$0xff]  ;;  %v682_v21 = vld [vmem:[#allocation8 + $0x7f8] sm:$0xff] }
 0x262   :  { %v4549_v5 = vcombine.low %v637_v27, %v641_v47 }
 0x263   :  { %3917 = vmatpush1.bf16.msra.mxu0 %v4493_v15  ;;  %v4550_v15 = vcombine.high %v637_v27, %v641_v47  ;;  %v686_v27 = vld [vmem:[#allocation8 + $0x818] sm:$0xff] }
 0x264   :  { %4081 = vmatpush1.bf16.msra.mxu1 %v4495_v31  ;;  %3918 = vmatprep.subr.bf16.mxu0 %v4502_v32  ;;  %v4552_v31 = vcombine.high %v638_v28, %v642_v16  ;;  %v645_v32 = vld [vmem:[#allocation8 + $0x6d0] sm:$0xff]  ;;  %v690_v47 = vld [vmem:[#allocation8 + $0x838] sm:$0xff]  ;;  %v4591_v16 = vcombine.low %v678_v20, %v682_v21 }
 0x265   :  { %4082 = vmatprep.subr.bf16.mxu1 %v4504_v33  ;;  %v649_v33 = vld [vmem:[#allocation8 + $0x6f0] sm:$0xff] }
 0x266   :  { %v4557_v51 = vcombine.low %v645_v32, %v649_v33 }
 0x267   :  { %3919 = vmatpush1.bf16.msra.mxu0 %v4501_v39  ;;  %v4558_v39 = vcombine.high %v645_v32, %v649_v33  ;;  %v694_v33 = vld [vmem:[#allocation8 + $0x858] sm:$0xff] }
 0x268   :  { %4083 = vmatpush1.bf16.msra.mxu1 %v4503_v40  ;;  %3920 = vmatprep.subr.bf16.mxu0 %v4510_v58  ;;  %v4560_v40 = vcombine.high %v646_v34, %v650_v36  ;;  %v653_v58 = vld [vmem:[#allocation8 + $0x710] sm:$0xff]  ;;  %v698_v34 = vld [vmem:[#allocation8 + $0x878] sm:$0xff]  ;;  %v4599_v36 = vcombine.low %v686_v27, %v690_v47 }
 0x269   :  { %4084 = vmatprep.subr.bf16.mxu1 %v4512_v41  ;;  %v657_v41 = vld [vmem:[#allocation8 + $0x730] sm:$0xff] }
 0x26a   :  { %v4565_v59 = vcombine.low %v653_v58, %v657_v41 }
 0x26b   :  { %3921 = vmatpush1.bf16.msra.mxu0 %v4509_v6  ;;  %v4566_v6 = vcombine.high %v653_v58, %v657_v41  ;;  %v702_v58 = vld [vmem:[#allocation8 + $0x898] sm:$0xff] }
 0x26c   :  { %4085 = vmatpush1.bf16.msra.mxu1 %v4511_v17  ;;  %3922 = vmatprep.subr.bf16.mxu0 %v4518_v54  ;;  %v4568_v17 = vcombine.high %v654_v43, %v658_v44  ;;  %v661_v54 = vld [vmem:[#allocation8 + $0x750] sm:$0xff]  ;;  %v706_v41 = vld [vmem:[#allocation8 + $0x8b8] sm:$0xff]  ;;  %v4607_v44 = vcombine.low %v694_v33, %v698_v34 }
 0x26d   :  { %4086 = vmatprep.subr.bf16.mxu1 %v4520_v55  ;;  %v665_v55 = vld [vmem:[#allocation8 + $0x770] sm:$0xff] }
 0x26e   :  { %v4573_v10 = vcombine.low %v661_v54, %v665_v55 }
 0x26f   :  { %3923 = vmatpush1.bf16.msra.mxu0 %v4517_v0  ;;  %v4574_v0 = vcombine.high %v661_v54, %v665_v55  ;;  %v710_v54 = vld [vmem:[#allocation8 + $0x8d8] sm:$0xff] }
 0x270   :  { %4087 = vmatpush1.bf16.msra.mxu1 %v4519_v1  ;;  %3924 = vmatprep.subr.bf16.mxu0 %v4526_v3  ;;  %v4576_v1 = vcombine.high %v662_v56, %v666_v57  ;;  %v669_v3 = vld [vmem:[#allocation8 + $0x790] sm:$0xff]  ;;  %v714_v55 = vld [vmem:[#allocation8 + $0x8f8] sm:$0xff] }
 0x271   :  { %4088 = vmatprep.subr.bf16.mxu1 %v4528_v4  ;;  %v673_v4 = vld [vmem:[#allocation8 + $0x7b0] sm:$0xff] }
 0x272   :  { %v4581_v22 = vcombine.low %v669_v3, %v673_v4 }
 0x273   :  { %3925 = vmatpush1.bf16.msra.mxu0 %v4525_v12  ;;  %v4582_v12 = vcombine.high %v669_v3, %v673_v4  ;;  %v722_v3 = vld [vmem:[#allocation8 + $0x938] sm:$0xff]  ;;  %v4623_v4 = vcombine.low %v710_v54, %v714_v55 }
 0x274   :  { %4089 = vmatpush1.bf16.msra.mxu1 %v4527_v13  ;;  %3926 = vmatprep.subr.bf16.mxu0 %v4534_v18  ;;  %v4584_v13 = vcombine.high %v670_v7, %v674_v9  ;;  %v677_v18 = vld [vmem:[#allocation8 + $0x7d0] sm:$0xff] }
 0x275   :  { %4090 = vmatprep.subr.bf16.mxu1 %v4536_v19  ;;  %v681_v19 = vld [vmem:[#allocation8 + $0x7f0] sm:$0xff] }
 0x276   :  { %v4589_v28 = vcombine.low %v677_v18, %v681_v19 }
 0x277   :  { %3927 = vmatpush1.bf16.msra.mxu0 %v4533_v63  ;;  %v4590_v63 = vcombine.high %v677_v18, %v681_v19 }
 0x278   :  { %4091 = vmatpush1.bf16.msra.mxu1 %v4535_v24  ;;  %3928 = vmatprep.subr.bf16.mxu0 %v4542_v25  ;;  %v4592_v24 = vcombine.high %v678_v20, %v682_v21  ;;  %v685_v25 = vld [vmem:[#allocation8 + $0x810] sm:$0xff] }
 0x279   :  { %4092 = vmatprep.subr.bf16.mxu1 %v4544_v8  ;;  %v689_v8 = vld [vmem:[#allocation8 + $0x830] sm:$0xff] }
 0x27a   :  { %v4597_v32 = vcombine.low %v685_v25, %v689_v8 }
 0x27b   :  { %3929 = vmatpush1.bf16.msra.mxu0 %v4541_v29  ;;  %v4598_v29 = vcombine.high %v685_v25, %v689_v8 }
 0x27c   :  { %4093 = vmatpush1.bf16.msra.mxu1 %v4543_v30  ;;  %3930 = vmatprep.subr.bf16.mxu0 %v4550_v15  ;;  %v4600_v30 = vcombine.high %v686_v27, %v690_v47  ;;  %v693_v15 = vld [vmem:[#allocation8 + $0x850] sm:$0xff] }
 0x27d   :  { %4094 = vmatprep.subr.bf16.mxu1 %v4552_v31  ;;  %v697_v31 = vld [vmem:[#allocation8 + $0x870] sm:$0xff] }
 0x27e   :  { %v4605_v43 = vcombine.low %v693_v15, %v697_v31 }
 0x27f   :  { %3931 = vmatpush1.bf16.msra.mxu0 %v4549_v5  ;;  %v4606_v5 = vcombine.high %v693_v15, %v697_v31 }
 0x280   :  { %4095 = vmatpush1.bf16.msra.mxu1 %v4551_v38  ;;  %3932 = vmatprep.subr.bf16.mxu0 %v4558_v39  ;;  %v701_v38 = vld [vmem:[#allocation8 + $0x890] sm:$0xff] }
 0x281   :  { %4096 = vmatprep.subr.bf16.mxu1 %v4560_v40  ;;  %v705_v39 = vld [vmem:[#allocation8 + $0x8b0] sm:$0xff]  ;;  %v4608_v40 = vcombine.high %v694_v33, %v698_v34 }
 0x282   :  { %v4613_v56 = vcombine.low %v701_v38, %v705_v39  ;;  %v749_v34 = vld [vmem:[#allocation8 + $0xa10] sm:$0xff] }
 0x283   :  { %3933 = vmatpush1.bf16.msra.mxu0 %v4557_v51  ;;  %v4614_v51 = vcombine.high %v701_v38, %v705_v39  ;;  %v754_v38 = vld [vmem:[#allocation8 + $0xa38] sm:$0xff] }
 0x284   :  { %4097 = vmatpush1.bf16.msra.mxu1 %v4559_v53  ;;  %3934 = vmatprep.subr.bf16.mxu0 %v4566_v6  ;;  %v4616_v53 = vcombine.high %v702_v58, %v706_v41  ;;  %v709_v6 = vld [vmem:[#allocation8 + $0x8d0] sm:$0xff] }
 0x285   :  { %4098 = vmatprep.subr.bf16.mxu1 %v4568_v17  ;;  %v713_v17 = vld [vmem:[#allocation8 + $0x8f0] sm:$0xff] }
 0x286   :  { %v4622_v57 = vcombine.high %v709_v6, %v713_v17 }
 0x287   :  { %3935 = vmatpush1.bf16.msra.mxu0 %v4565_v59  ;;  %v4624_v59 = vcombine.high %v710_v54, %v714_v55 }
 0x288   :  { %4099 = vmatpush1.bf16.msra.mxu1 %v4567_v62  ;;  %3936 = vmatprep.subr.bf16.mxu0 %v4574_v0  ;;  %v717_v62 = vld [vmem:[#allocation8 + $0x910] sm:$0xff] }
 0x289   :  { %4100 = vmatprep.subr.bf16.mxu1 %v4576_v1  ;;  %v721_v0 = vld [vmem:[#allocation8 + $0x930] sm:$0xff]  ;;  %v718_v1 = vld [vmem:[#allocation8 + $0x918] sm:$0xff] }
 0x28a   :  { %v4630_v7 = vcombine.high %v717_v62, %v721_v0  ;;  %v4632_v9 = vcombine.high %v718_v1, %v722_v3  ;;  %v4629_v18 = vcombine.low %v717_v62, %v721_v0  ;;  %v4631_v19 = vcombine.low %v718_v1, %v722_v3 }
 0x28b   :  { %3937 = vmatpush1.bf16.msra.mxu0 %v4573_v10  ;;  %v725_v10 = vld [vmem:[#allocation8 + $0x950] sm:$0xff] }
 0x28c   :  { %4101 = vmatpush1.bf16.msra.mxu1 %v4575_v11  ;;  %3938 = vmatprep.subr.bf16.mxu0 %v4582_v12  ;;  %v729_v11 = vld [vmem:[#allocation8 + $0x970] sm:$0xff]  ;;  %v726_v12 = vld [vmem:[#allocation8 + $0x958] sm:$0xff] }
 0x28d   :  { %4102 = vmatprep.subr.bf16.mxu1 %v4584_v13  ;;  %v730_v13 = vld [vmem:[#allocation8 + $0x978] sm:$0xff]  ;;  %v4638_v20 = vcombine.high %v725_v10, %v729_v11  ;;  %v4637_v25 = vcombine.low %v725_v10, %v729_v11 }
 0x28e   :  { %v4640_v21 = vcombine.high %v726_v12, %v730_v13  ;;  %v4639_v8 = vcombine.low %v726_v12, %v730_v13 }
 0x28f   :  { %3939 = vmatpush1.bf16.msra.mxu0 %v4581_v22  ;;  %v733_v22 = vld [vmem:[#allocation8 + $0x990] sm:$0xff] }
 0x290   :  { %4103 = vmatpush1.bf16.msra.mxu1 %v4583_v23  ;;  %3940 = vmatprep.subr.bf16.mxu0 %v4590_v63  ;;  %v737_v23 = vld [vmem:[#allocation8 + $0x9b0] sm:$0xff]  ;;  %v734_v63 = vld [vmem:[#allocation8 + $0x998] sm:$0xff] }
 0x291   :  { %4104 = vmatprep.subr.bf16.mxu1 %v4592_v24  ;;  %v738_v24 = vld [vmem:[#allocation8 + $0x9b8] sm:$0xff]  ;;  %v4646_v27 = vcombine.high %v733_v22, %v737_v23  ;;  %v4645_v15 = vcombine.low %v733_v22, %v737_v23 }
 0x292   :  { %v4648_v47 = vcombine.high %v734_v63, %v738_v24  ;;  %v4647_v31 = vcombine.low %v734_v63, %v738_v24 }
 0x293   :  { %3941 = vmatpush1.bf16.msra.mxu0 %v4589_v28  ;;  %v741_v28 = vld [vmem:[#allocation8 + $0x9d0] sm:$0xff] }
 0x294   :  { %4105 = vmatpush1.bf16.msra.mxu1 %v4591_v16  ;;  %3951 = vmatprep.subr.bf16.mxu0 %v4598_v29  ;;  %v745_v16 = vld [vmem:[#allocation8 + $0x9f0] sm:$0xff]  ;;  %v742_v29 = vld [vmem:[#allocation8 + $0x9d8] sm:$0xff] }
 0x295   :  { %4115 = vmatprep.subr.bf16.mxu1 %v4600_v30  ;;  %v746_v30 = vld [vmem:[#allocation8 + $0x9f8] sm:$0xff]  ;;  %v4653_v39 = vcombine.low %v741_v28, %v745_v16 }
 0x296   :  { %3943 = vmatmul.mubr.bf16.vlgmr.msra.gmra.mrb[12].mxu0 %v5234_v52  ;;  %v4656_v33 = vcombine.high %v742_v29, %v746_v30 }
 0x297   :  { %4107 = vmatmul.mubr.bf16.vlgmr.msra.gmra.mrb[12].mxu1 %v5234_v52  ;;  %3952 = vmatpush1.bf16.msra.mxu0 %v4597_v32  ;;  %v4615_v52 = vcombine.low %v702_v58, %v706_v41  ;;  %v4654_v32 = vcombine.high %v741_v28, %v745_v16 }
 0x298   :  { %3983 = vmatprep.mubr.bf16.mxu0 %v5236_v61  ;;  %4116 = vmatpush1.bf16.msra.mxu1 %v4599_v36  ;;  %v753_v36 = vld [vmem:[#allocation8 + $0xa30] sm:$0xff] }
 0x299   :  { %4147 = vmatprep.mubr.bf16.mxu1 %v5236_v61  ;;  %3953 = vmatprep.subr.bf16.mxu0 %v4606_v5  ;;  %v4621_v61 = vcombine.low %v709_v6, %v713_v17  ;;  %v750_v5 = vld [vmem:[#allocation8 + $0xa18] sm:$0xff]  ;;  %v4662_v58 = vcombine.high %v749_v34, %v753_v36  ;;  %v4661_v6 = vcombine.low %v749_v34, %v753_v36 }
 0x29a   :  { %4117 = vmatprep.subr.bf16.mxu1 %v4608_v40  ;;  %v4655_v40 = vcombine.low %v742_v29, %v746_v30  ;;  %v4664_v41 = vcombine.high %v750_v5, %v754_v38  ;;  %v4663_v17 = vcombine.low %v750_v5, %v754_v38 }
 0x29b   :  { %3954 = vmatpush1.bf16.msra.mxu0 %v4605_v43  ;;  %v757_v43 = vld [vmem:[#allocation8 + $0xa50] sm:$0xff] }
 0x29c   :  { %4118 = vmatpush1.bf16.msra.mxu1 %v4607_v44  ;;  %3955 = vmatprep.subr.bf16.mxu0 %v4614_v51  ;;  %v761_v44 = vld [vmem:[#allocation8 + $0xa70] sm:$0xff]  ;;  %v758_v51 = vld [vmem:[#allocation8 + $0xa58] sm:$0xff] }
 0x29d   :  { %4119 = vmatprep.subr.bf16.mxu1 %v4616_v53  ;;  %v762_v53 = vld [vmem:[#allocation8 + $0xa78] sm:$0xff]  ;;  %v4670_v54 = vcombine.high %v757_v43, %v761_v44  ;;  %v4669_v62 = vcombine.low %v757_v43, %v761_v44 }
 0x29e   :  { %v4672_v55 = vcombine.high %v758_v51, %v762_v53  ;;  %v4671_v0 = vcombine.low %v758_v51, %v762_v53 }
 0x29f   :  { %3956 = vmatpush1.bf16.msra.mxu0 %v4613_v56  ;;  %v765_v56 = vld [vmem:[#allocation8 + $0xa90] sm:$0xff] }
 0x2a0   :  { %4120 = vmatpush1.bf16.msra.mxu1 %v4615_v52  ;;  %3957 = vmatprep.subr.bf16.mxu0 %v4622_v57  ;;  %v769_v52 = vld [vmem:[#allocation8 + $0xab0] sm:$0xff]  ;;  %v766_v57 = vld [vmem:[#allocation8 + $0xa98] sm:$0xff] }
 0x2a1   :  { %4121 = vmatprep.subr.bf16.mxu1 %v4624_v59  ;;  %v770_v59 = vld [vmem:[#allocation8 + $0xab8] sm:$0xff]  ;;  %v4678_v1 = vcombine.high %v765_v56, %v769_v52  ;;  %v4677_v10 = vcombine.low %v765_v56, %v769_v52 }
 0x2a2   :  { %v4680_v3 = vcombine.high %v766_v57, %v770_v59  ;;  %v4679_v11 = vcombine.low %v766_v57, %v770_v59 }
 0x2a3   :  { %3958 = vmatpush1.bf16.msra.mxu0 %v4621_v61  ;;  %v773_v61 = vld [vmem:[#allocation8 + $0xad0] sm:$0xff] }
 0x2a4   :  { %4122 = vmatpush1.bf16.msra.mxu1 %v4623_v4  ;;  %3959 = vmatprep.subr.bf16.mxu0 %v4630_v7  ;;  %v777_v4 = vld [vmem:[#allocation8 + $0xaf0] sm:$0xff]  ;;  %v774_v7 = vld [vmem:[#allocation8 + $0xad8] sm:$0xff] }
 0x2a5   :  { %4123 = vmatprep.subr.bf16.mxu1 %v4632_v9  ;;  %v778_v9 = vld [vmem:[#allocation8 + $0xaf8] sm:$0xff]  ;;  %v4686_v12 = vcombine.high %v773_v61, %v777_v4  ;;  %v4685_v22 = vcombine.low %v773_v61, %v777_v4 }
 0x2a6   :  { %v4688_v13 = vcombine.high %v774_v7, %v778_v9  ;;  %v4687_v23 = vcombine.low %v774_v7, %v778_v9  ;;  %v826_v61 = vld [vmem:[#allocation8 + $0xc78] sm:$0xff]  ;;  %v829_v9 = vld [vmem:[#allocation8 + $0xc90] sm:$0xff] }
 0x2a7   :  { %3960 = vmatpush1.bf16.msra.mxu0 %v4629_v18  ;;  %v781_v18 = vld [vmem:[#allocation8 + $0xb10] sm:$0xff] }
 0x2a8   :  { %4124 = vmatpush1.bf16.msra.mxu1 %v4631_v19  ;;  %3961 = vmatprep.subr.bf16.mxu0 %v4638_v20  ;;  %v785_v19 = vld [vmem:[#allocation8 + $0xb30] sm:$0xff]  ;;  %v782_v20 = vld [vmem:[#allocation8 + $0xb18] sm:$0xff] }
 0x2a9   :  { %4125 = vmatprep.subr.bf16.mxu1 %v4640_v21  ;;  %v786_v21 = vld [vmem:[#allocation8 + $0xb38] sm:$0xff]  ;;  %v4694_v63 = vcombine.high %v781_v18, %v785_v19  ;;  %v4693_v28 = vcombine.low %v781_v18, %v785_v19 }
 0x2aa   :  { %v4696_v24 = vcombine.high %v782_v20, %v786_v21  ;;  %v4695_v16 = vcombine.low %v782_v20, %v786_v21 }
 0x2ab   :  { %3962 = vmatpush1.bf16.msra.mxu0 %v4637_v25  ;;  %v789_v25 = vld [vmem:[#allocation8 + $0xb50] sm:$0xff] }
 0x2ac   :  { %4126 = vmatpush1.bf16.msra.mxu1 %v4639_v8  ;;  %3963 = vmatprep.subr.bf16.mxu0 %v4646_v27  ;;  %v793_v8 = vld [vmem:[#allocation8 + $0xb70] sm:$0xff]  ;;  %v790_v27 = vld [vmem:[#allocation8 + $0xb58] sm:$0xff] }
 0x2ad   :  { %4127 = vmatprep.subr.bf16.mxu1 %v4648_v47  ;;  %v794_v47 = vld [vmem:[#allocation8 + $0xb78] sm:$0xff]  ;;  %v4702_v29 = vcombine.high %v789_v25, %v793_v8  ;;  %v4701_v34 = vcombine.low %v789_v25, %v793_v8 }
 0x2ae   :  { %v4704_v30 = vcombine.high %v790_v27, %v794_v47  ;;  %v4703_v36 = vcombine.low %v790_v27, %v794_v47  ;;  %v845_v47 = vld [vmem:[#allocation8 + $0xd10] sm:$0xff] }
 0x2af   :  { %3964 = vmatpush1.bf16.msra.mxu0 %v4645_v15  ;;  %v797_v15 = vld [vmem:[#allocation8 + $0xb90] sm:$0xff] }
 0x2b0   :  { %4128 = vmatpush1.bf16.msra.mxu1 %v4647_v31  ;;  %3965 = vmatprep.subr.bf16.mxu0 %v4654_v32  ;;  %v801_v31 = vld [vmem:[#allocation8 + $0xbb0] sm:$0xff]  ;;  %v798_v32 = vld [vmem:[#allocation8 + $0xb98] sm:$0xff] }
 0x2b1   :  { %4129 = vmatprep.subr.bf16.mxu1 %v4656_v33  ;;  %v802_v33 = vld [vmem:[#allocation8 + $0xbb8] sm:$0xff]  ;;  %v4710_v5 = vcombine.high %v797_v15, %v801_v31  ;;  %v4709_v43 = vcombine.low %v797_v15, %v801_v31 }
 0x2b2   :  { %v4712_v38 = vcombine.high %v798_v32, %v802_v33  ;;  %v4711_v44 = vcombine.low %v798_v32, %v802_v33  ;;  %v853_v33 = vld [vmem:[#allocation8 + $0xd50] sm:$0xff] }
 0x2b3   :  { %3966 = vmatpush1.bf16.msra.mxu0 %v4653_v39  ;;  %v805_v39 = vld [vmem:[#allocation8 + $0xbd0] sm:$0xff] }
 0x2b4   :  { %4130 = vmatpush1.bf16.msra.mxu1 %v4655_v40  ;;  %3967 = vmatprep.subr.bf16.mxu0 %v4662_v58  ;;  %v809_v40 = vld [vmem:[#allocation8 + $0xbf0] sm:$0xff]  ;;  %v806_v58 = vld [vmem:[#allocation8 + $0xbd8] sm:$0xff] }
 0x2b5   :  { %4131 = vmatprep.subr.bf16.mxu1 %v4664_v41  ;;  %v810_v41 = vld [vmem:[#allocation8 + $0xbf8] sm:$0xff]  ;;  %v4718_v51 = vcombine.high %v805_v39, %v809_v40  ;;  %v4717_v56 = vcombine.low %v805_v39, %v809_v40  ;;  %v5289_v40 = vld [vmem:[#allocation10] sm:$0xff] }
 0x2b6   :  { %v4720_v53 = vcombine.high %v806_v58, %v810_v41  ;;  %v4719_v52 = vcombine.low %v806_v58, %v810_v41 }
 0x2b7   :  { %3968 = vmatpush1.bf16.msra.mxu0 %v4661_v6  ;;  %v813_v6 = vld [vmem:[#allocation8 + $0xc10] sm:$0xff] }
 0x2b8   :  { %4132 = vmatpush1.bf16.msra.mxu1 %v4663_v17  ;;  %3969 = vmatprep.subr.bf16.mxu0 %v4670_v54  ;;  %v817_v17 = vld [vmem:[#allocation8 + $0xc30] sm:$0xff]  ;;  %v814_v54 = vld [vmem:[#allocation8 + $0xc18] sm:$0xff] }
 0x2b9   :  { %4133 = vmatprep.subr.bf16.mxu1 %v4672_v55  ;;  %v818_v55 = vld [vmem:[#allocation8 + $0xc38] sm:$0xff]  ;;  %v4726_v57 = vcombine.high %v813_v6, %v817_v17 }
 0x2ba   :  { %v4728_v59 = vcombine.high %v814_v54, %v818_v55  ;;  %v4727_v4 = vcombine.low %v814_v54, %v818_v55  ;;  %v862_v54 = vld [vmem:[#allocation8 + $0xd98] sm:$0xff] }
 0x2bb   :  { %3970 = vmatpush1.bf16.msra.mxu0 %v4669_v62  ;;  %v821_v62 = vld [vmem:[#allocation8 + $0xc50] sm:$0xff]  ;;  %v866_v55 = vld [vmem:[#allocation8 + $0xdb8] sm:$0xff] }
 0x2bc   :  { %4134 = vmatpush1.bf16.msra.mxu1 %v4671_v0  ;;  %3971 = vmatprep.subr.bf16.mxu0 %v4678_v1  ;;  %v825_v0 = vld [vmem:[#allocation8 + $0xc70] sm:$0xff]  ;;  %v4725_v1 = vcombine.low %v813_v6, %v817_v17  ;;  %v952_v17 = vrot.slane %v5289_v40, %v5224_v2 }
 0x2bd   :  { %4135 = vmatprep.subr.bf16.mxu1 %v4680_v3  ;;  %v822_v3 = vld [vmem:[#allocation8 + $0xc58] sm:$0xff]  ;;  %v4734_v7 = vcombine.high %v821_v62, %v825_v0  ;;  %v4733_v18 = vcombine.low %v821_v62, %v825_v0 }
 0x2be   :  { %v4735_v19 = vcombine.low %v822_v3, %v826_v61 }
 0x2bf   :  { %3972 = vmatpush1.bf16.msra.mxu0 %v4677_v10  ;;  %v833_v10 = vld [vmem:[#allocation8 + $0xcb0] sm:$0xff] }
 0x2c0   :  { %4136 = vmatpush1.bf16.msra.mxu1 %v4679_v11  ;;  %3973 = vmatprep.subr.bf16.mxu0 %v4686_v12  ;;  %v4736_v11 = vcombine.high %v822_v3, %v826_v61  ;;  %v830_v12 = vld [vmem:[#allocation8 + $0xc98] sm:$0xff]  ;;  %v4742_v20 = vcombine.high %v829_v9, %v833_v10  ;;  %v4741_v25 = vcombine.low %v829_v9, %v833_v10 }
 0x2c1   :  { %4137 = vmatprep.subr.bf16.mxu1 %v4688_v13  ;;  %v834_v13 = vld [vmem:[#allocation8 + $0xcb8] sm:$0xff] }
 0x2c2   :  { %v4744_v21 = vcombine.high %v830_v12, %v834_v13 }
 0x2c3   :  { %3974 = vmatpush1.bf16.msra.mxu0 %v4685_v22  ;;  %v837_v22 = vld [vmem:[#allocation8 + $0xcd0] sm:$0xff] }
 0x2c4   :  { %4138 = vmatpush1.bf16.msra.mxu1 %v4687_v23  ;;  %3975 = vmatprep.subr.bf16.mxu0 %v4694_v63  ;;  %v841_v23 = vld [vmem:[#allocation8 + $0xcf0] sm:$0xff]  ;;  %v838_v63 = vld [vmem:[#allocation8 + $0xcd8] sm:$0xff] }
 0x2c5   :  { %4139 = vmatprep.subr.bf16.mxu1 %v4696_v24  ;;  %v842_v24 = vld [vmem:[#allocation8 + $0xcf8] sm:$0xff]  ;;  %v4750_v8 = vcombine.high %v837_v22, %v841_v23 }
 0x2c6   :  { %v4752_v27 = vcombine.high %v838_v63, %v842_v24  ;;  %v4751_v15 = vcombine.low %v838_v63, %v842_v24 }
 0x2c7   :  { %3976 = vmatpush1.bf16.msra.mxu0 %v4693_v28  ;;  %v849_v28 = vld [vmem:[#allocation8 + $0xd30] sm:$0xff] }
 0x2c8   :  { %4140 = vmatpush1.bf16.msra.mxu1 %v4695_v16  ;;  %3977 = vmatprep.subr.bf16.mxu0 %v4702_v29  ;;  %v846_v16 = vld [vmem:[#allocation8 + $0xd18] sm:$0xff]  ;;  %v4758_v31 = vcombine.high %v845_v47, %v849_v28  ;;  %v4757_v39 = vcombine.low %v845_v47, %v849_v28 }
 0x2c9   :  { %4141 = vmatprep.subr.bf16.mxu1 %v4704_v30  ;;  %v850_v29 = vld [vmem:[#allocation8 + $0xd38] sm:$0xff]  ;;  %v5284_v30 = vld [vmem:[#allocation11] sm:$0xff] }
 0x2ca   :  { %v4760_v32 = vcombine.high %v846_v16, %v850_v29  ;;  %v4759_v58 = vcombine.low %v846_v16, %v850_v29 }
 0x2cb   :  { %3978 = vmatpush1.bf16.msra.mxu0 %v4701_v34  ;;  %v857_v34 = vld [vmem:[#allocation8 + $0xd70] sm:$0xff] }
 0x2cc   :  { %4142 = vmatpush1.bf16.msra.mxu1 %v4703_v36  ;;  %3979 = vmatprep.subr.bf16.mxu0 %v4710_v5  ;;  %v5287_v36 = vunpack.c.l.bf16 %v5284_v30  ;;  %v854_v5 = vld [vmem:[#allocation8 + $0xd58] sm:$0xff]  ;;  %v4766_v41 = vcombine.high %v853_v33, %v857_v34 }
 0x2cd   :  { %4143 = vmatprep.subr.bf16.mxu1 %v4712_v38  ;;  %v858_v38 = vld [vmem:[#allocation8 + $0xd78] sm:$0xff] }
 0x2ce   :  { %v4213_v6 = vrot.slane %v5287_v36, %v5187_v46  ;;  %v4767_v62 = vcombine.low %v854_v5, %v858_v38  ;;  %v4221_v61 = vrot.slane %v5287_v36, %v5243_v50 }
 0x2cf   :  { %3980 = vmatpush1.bf16.msra.mxu0 %v4709_v43  ;;  %v4768_v43 = vcombine.high %v854_v5, %v858_v38 }
 0x2d0   :  { %4144 = vmatpush1.bf16.msra.mxu1 %v4711_v44  ;;  %3981 = vmatprep.subr.bf16.mxu0 %v4718_v51  ;;  %v861_v44 = vld [vmem:[#allocation8 + $0xd90] sm:$0xff]  ;;  %v4253_v10 = vrot.slane %v4213_v6, %v5187_v46  ;;  %v4261_v16 = vrot.slane %v4221_v61, %v5187_v46  ;;  %v894_v61 = vld [vmem:[#allocation8 + $0xe98] sm:$0xff] }
 0x2d1   :  { %4145 = vmatprep.subr.bf16.mxu1 %v4720_v53  ;;  %v865_v51 = vld [vmem:[#allocation8 + $0xdb0] sm:$0xff]  ;;  %v944_v53 = vrot.slane %v5289_v40, %v5187_v46 }
 0x2d2   :  { %v4774_v0 = vcombine.high %v861_v44, %v865_v51  ;;  %v4773_v24 = vcombine.low %v861_v44, %v865_v51  ;;  %v889_v6 = vld [vmem:[#allocation8 + $0xe70] sm:$0xff] }
 0x2d3   :  { %3982 = vmatpush1.bf16.msra.mxu0 %v4717_v56  ;;  %v948_v56 = vrot.slane %v5289_v40, %v129_v48  ;;  %v869_v48 = vld [vmem:[#allocation8 + $0xdd0] sm:$0xff] }
 0x2d4   :  { %4146 = vmatpush1.bf16.msra.mxu1 %v4719_v52  ;;  %3992 = vmatprep.subr.bf16.mxu0 %v4726_v57  ;;  %v4217_v52 = vrot.slane %v5287_v36, %v5224_v2  ;;  %v956_v57 = vrot.slane %v5289_v40, %v137_v49 }
 0x2d5   :  { %4156 = vmatprep.subr.bf16.mxu1 %v4728_v59  ;;  %v4765_v59 = vcombine.low %v853_v33, %v857_v34  ;;  %v878_v33 = vld [vmem:[#allocation8 + $0xe18] sm:$0xff] }
 0x2d6   :  { %3984 = vmatmul.mubr.bf16.vlgmr.msra.gmra.mrb[12].mxu0 %v5253_v35  ;;  %v882_v34 = vld [vmem:[#allocation8 + $0xe38] sm:$0xff] }
 0x2d7   :  { %4148 = vmatmul.mubr.bf16.vlgmr.msra.gmra.mrb[12].mxu1 %v5253_v35  ;;  %3993 = vmatpush1.bf16.msra.mxu0 %v4725_v1  ;;  %v4743_v35 = vcombine.low %v830_v12, %v834_v13  ;;  %v4225_v13 = vrot.slane %v5287_v36, %v5262_v37  ;;  %v4792_v51 = vcombine.high %v878_v33, %v882_v34 }
 0x2d8   :  { %4024 = vmatprep.mubr.bf16.mxu0 %v5255_v42  ;;  %4157 = vmatpush1.bf16.msra.mxu1 %v4727_v4  ;;  %v4776_v4 = vcombine.high %v862_v54, %v866_v55 }
 0x2d9   :  { %4188 = vmatprep.mubr.bf16.mxu1 %v5255_v42  ;;  %3994 = vmatprep.subr.bf16.mxu0 %v4734_v7  ;;  %v4749_v42 = vcombine.low %v837_v22, %v841_v23  ;;  %v873_v7 = vld [vmem:[#allocation8 + $0xdf0] sm:$0xff]  ;;  %v4265_v38 = vrot.slane %v4225_v13, %v5187_v46  ;;  %v906_v13 = vld [vmem:[#allocation8 + $0xef8] sm:$0xff] }
 0x2da   :  { %4158 = vmatprep.subr.bf16.mxu1 %v4736_v11  ;;  %v4782_v47 = vcombine.high %v869_v48, %v873_v7 }
 0x2db   :  { %3995 = vmatpush1.bf16.msra.mxu0 %v4733_v18  ;;  %v870_v18 = vld [vmem:[#allocation8 + $0xdd8] sm:$0xff] }
 0x2dc   :  { %4159 = vmatpush1.bf16.msra.mxu1 %v4735_v19  ;;  %3996 = vmatprep.subr.bf16.mxu0 %v4742_v20  ;;  %v874_v19 = vld [vmem:[#allocation8 + $0xdf8] sm:$0xff] }
 0x2dd   :  { %4160 = vmatprep.subr.bf16.mxu1 %v4744_v21  ;;  %v4257_v21 = vrot.slane %v4217_v52, %v5187_v46 }
 0x2df   :  { %3997 = vmatpush1.bf16.msra.mxu0 %v4741_v25 }
 0x2e0   :  { %4161 = vmatpush1.bf16.msra.mxu1 %v4743_v35  ;;  %3998 = vmatprep.subr.bf16.mxu0 %v4750_v8 }
 0x2e1   :  { %4162 = vmatprep.subr.bf16.mxu1 %v4752_v27  ;;  %v4775_v27 = vcombine.low %v862_v54, %v866_v55  ;;  %v890_v54 = vld [vmem:[#allocation8 + $0xe78] sm:$0xff] }
 0x2e3   :  { %3999 = vmatpush1.bf16.msra.mxu0 %v4749_v42  ;;  %v4784_v42 = vcombine.high %v870_v18, %v874_v19 }
 0x2e4   :  { %4163 = vmatpush1.bf16.msra.mxu1 %v4751_v15  ;;  %4000 = vmatprep.subr.bf16.mxu0 %v4758_v31  ;;  %v877_v15 = vld [vmem:[#allocation8 + $0xe10] sm:$0xff] }
 0x2e5   :  { %4164 = vmatprep.subr.bf16.mxu1 %v4760_v32  ;;  %v881_v31 = vld [vmem:[#allocation8 + $0xe30] sm:$0xff] }
 0x2e6   :  { %v4789_v52 = vcombine.low %v877_v15, %v881_v31 }
 0x2e7   :  { %4001 = vmatpush1.bf16.msra.mxu0 %v4757_v39  ;;  %v4781_v39 = vcombine.low %v869_v48, %v873_v7 }
 0x2e8   :  { %4165 = vmatpush1.bf16.msra.mxu1 %v4759_v58  ;;  %4002 = vmatprep.subr.bf16.mxu0 %v4766_v41  ;;  %v4783_v58 = vcombine.low %v870_v18, %v874_v19  ;;  %v4790_v41 = vcombine.high %v877_v15, %v881_v31 }
 0x2e9   :  { %v3698_v1 = vpop.f32.mrb[8].mxu0  ;;  %v3862_v3 = vpop.f32.mrb[8].mxu1  ;;  %4166 = vmatprep.subr.bf16.mxu1 %v4768_v43 }
 0x2ea   :  { %v4850_v9 = vadd.f32 %v3698_v1, %v944_v53  ;;  %v4852_v11 = vadd.f32 %v3862_v3, %v952_v17  ;;  %v3700_v12 = vpop.f32.mrb[9].mxu0  ;;  %v3864_v49 = vpop.f32.mrb[9].mxu1  ;;  %v885_v53 = vld [vmem:[#allocation8 + $0xe50] sm:$0xff]  ;;  %v886_v17 = vld [vmem:[#allocation8 + $0xe58] sm:$0xff] }
 0x2eb   :  { %v4851_v20 = vadd.f32 %v3700_v12, %v948_v56  ;;  %v4853_v22 = vadd.f32 %v3864_v49, %v956_v57  ;;  %v3702_v23 = vpop.f32.mrb[10].mxu0  ;;  %v3866_v63 = vpop.f32.mrb[10].mxu1  ;;  %4003 = vmatpush1.bf16.msra.mxu0 %v4765_v59  ;;  %v4791_v57 = vcombine.low %v878_v33, %v882_v34  ;;  %v4798_v59 = vcombine.high %v885_v53, %v889_v6  ;;  %v893_v1 = vld [vmem:[#allocation8 + $0xe90] sm:$0xff]  ;;  %v902_v49 = vld [vmem:[#allocation8 + $0xed8] sm:$0xff] }
 0x2ec   :  { %v4197_v25 = vmax.f32 %v4850_v9, 0.0  ;;  %4167 = vmatpush1.bf16.msra.mxu1 %v4767_v62  ;;  %v3703_v35 = vpop.f32.mrb[11].mxu0  ;;  %v3867_v8 = vpop.f32.mrb[11].mxu1  ;;  %4004 = vmatprep.subr.bf16.mxu0 %v4774_v0  ;;  %v4199_v28 = vmax.f32 %v4852_v11, 0.0  ;;  %v4800_v0 = vcombine.high %v886_v17, %v890_v54  ;;  %v897_v3 = vld [vmem:[#allocation8 + $0xeb0] sm:$0xff]  ;;  %v4797_v48 = vcombine.low %v885_v53, %v889_v6  ;;  %v910_v63 = vld [vmem:[#allocation8 + $0xf18] sm:$0xff] }
 0x2ed   :  { %v4198_v29 = vmax.f32 %v4851_v20, 0.0  ;;  %4168 = vmatprep.subr.bf16.mxu1 %v4776_v4  ;;  %v4200_v5 = vmax.f32 %v4853_v22, 0.0  ;;  %v898_v4 = vld [vmem:[#allocation8 + $0xeb8] sm:$0xff]  ;;  %v4799_v7 = vcombine.low %v886_v17, %v890_v54  ;;  %v4806_v9 = vcombine.high %v893_v1, %v897_v3  ;;  %v901_v11 = vld [vmem:[#allocation8 + $0xed0] sm:$0xff] }
 0x2ee   :  { %v4282_v32 = vmul.f32 %v4253_v10, %v4197_v25  ;;  %v4284_v43 = vmul.f32 %v4261_v16, %v4199_v28  ;;  %v4808_v10 = vcombine.high %v894_v61, %v898_v4  ;;  %v905_v12 = vld [vmem:[#allocation8 + $0xef0] sm:$0xff]  ;;  %v4805_v18 = vcombine.low %v893_v1, %v897_v3  ;;  %v918_v16 = vld [vmem:[#allocation8 + $0xf58] sm:$0xff] }
 0x2ef   :  { %v4283_v36 = vmul.f32 %v4257_v21, %v4198_v29  ;;  %4005 = vmatpush1.bf16.msra.mxu0 %v4773_v24  ;;  %v4285_v55 = vmul.f32 %v4265_v38, %v4200_v5  ;;  %v4807_v19 = vcombine.low %v894_v61, %v898_v4  ;;  %v4814_v20 = vcombine.high %v901_v11, %v905_v12  ;;  %v909_v22 = vld [vmem:[#allocation8 + $0xf10] sm:$0xff]  ;;  %v914_v24 = vld [vmem:[#allocation8 + $0xf38] sm:$0xff] }
 0x2f0   :  { %4169 = vmatpush1.bf16.msra.mxu1 %v4775_v27  ;;  %4006 = vmatprep.subr.bf16.mxu0 %v4782_v47  ;;  %v4816_v21 = vcombine.high %v902_v49, %v906_v13  ;;  %v913_v23 = vld [vmem:[#allocation8 + $0xf30] sm:$0xff]  ;;  %v4813_v25 = vcombine.low %v901_v11, %v905_v12  ;;  %v4815_v35 = vcombine.low %v902_v49, %v906_v13  ;;  %v922_v29 = vld [vmem:[#allocation8 + $0xf78] sm:$0xff] }
 0x2f1   :  { %v4290_v44 = vadd.f32 %v4283_v36, %v4282_v32  ;;  %4170 = vmatprep.subr.bf16.mxu1 %v4784_v42  ;;  %v4822_v8 = vcombine.high %v909_v22, %v913_v23  ;;  %v4824_v27 = vcombine.high %v910_v63, %v914_v24  ;;  %v917_v47 = vld [vmem:[#allocation8 + $0xf50] sm:$0xff]  ;;  %v4821_v42 = vcombine.low %v909_v22, %v913_v23  ;;  %v926_v36 = vld [vmem:[#allocation8 + $0xf98] sm:$0xff] }
 0x2f2   :  { %v921_v28 = vld [vmem:[#allocation8 + $0xf70] sm:$0xff]  ;;  %v4823_v15 = vcombine.low %v910_v63, %v914_v24  ;;  %v4832_v32 = vcombine.high %v918_v16, %v922_v29  ;;  %v930_v5 = vld [vmem:[#allocation8 + $0xfb8] sm:$0xff]  ;;  %v968_v1 = vrot.slane %v5289_v40, %v5262_v37  ;;  %v964_v3 = vrot.slane %v5289_v40, %v145_v14 }
 0x2f3   :  { %v4291_v56 = vadd.f32 %v4290_v44, %v4284_v43  ;;  %4007 = vmatpush1.bf16.msra.mxu0 %v4781_v39  ;;  %v4830_v31 = vcombine.high %v917_v47, %v921_v28  ;;  %v925_v33 = vld [vmem:[#allocation8 + $0xf90] sm:$0xff]  ;;  %v4829_v38 = vcombine.low %v917_v47, %v921_v28  ;;  %v4831_v39 = vcombine.low %v918_v16, %v922_v29  ;;  %v938_v53 = vld [vmem:[#allocation8 + $0xff8] sm:$0xff]  ;;  %v4849_v16 = vld [vmem:[#allocation2] ss:$0 sm:$0xff] }
 0x2f4   :  { %4171 = vmatpush1.bf16.msra.mxu1 %v4783_v58  ;;  %4008 = vmatprep.subr.bf16.mxu0 %v4790_v41  ;;  %v929_v34 = vld [vmem:[#allocation8 + $0xfb0] sm:$0xff]  ;;  %v4840_v41 = vcombine.high %v926_v36, %v930_v5  ;;  %v4839_v17 = vcombine.low %v926_v36, %v930_v5 }
 0x2f5   :  { %v5313_v62 = vadd.f32 %v4291_v56, %v4285_v55  ;;  %4172 = vmatprep.subr.bf16.mxu1 %v4792_v51  ;;  %v4838_v58 = vcombine.high %v925_v33, %v929_v34  ;;  %v933_v43 = vld [vmem:[#allocation8 + $0xfd0] sm:$0xff]  ;;  %v934_v51 = vld [vmem:[#allocation8 + $0xfd8] sm:$0xff]  ;;  %v4837_v6 = vcombine.low %v925_v33, %v929_v34 }
 0x2f6   :  { %v937_v44 = vld [vmem:[#allocation8 + $0xff0] sm:$0xff]  ;;  %v4848_v55 = vcombine.high %v934_v51, %v938_v53 }
 0x2f7   :  { %4009 = vmatpush1.bf16.msra.mxu0 %v4789_v52  ;;  %v4846_v54 = vcombine.high %v933_v43, %v937_v44  ;;  %v4845_v56 = vcombine.low %v933_v43, %v937_v44  ;;  %v4847_v52 = vcombine.low %v934_v51, %v938_v53 }
 0x2f8   :  { %4173 = vmatpush1.bf16.msra.mxu1 %v4791_v57  ;;  %4010 = vmatprep.subr.bf16.mxu0 %v4798_v59  ;;  %v4207_v57 = vunpack.c.h.bf16 %v5284_v30  ;;  %v960_v59 = vrot.slane %v5289_v40, %v5243_v50 }
 0x2f9   :  { %4174 = vmatprep.subr.bf16.mxu1 %v4800_v0 }
 0x2fa   :  { %v4229_v0 = vrot.slane %v4207_v57, %v5187_v46  ;;  %v4233_v61 = vrot.slane %v4207_v57, %v5224_v2 }
 0x2fb   :  { %4011 = vmatpush1.bf16.msra.mxu0 %v4797_v48 }
 0x2fc   :  { %4175 = vmatpush1.bf16.msra.mxu1 %v4799_v7  ;;  %4012 = vmatprep.subr.bf16.mxu0 %v4806_v9  ;;  %v4269_v48 = vrot.slane %v4229_v0, %v5187_v46  ;;  %v4237_v9 = vrot.slane %v4207_v57, %v5243_v50  ;;  %v4273_v49 = vrot.slane %v4233_v61, %v5187_v46 }
 0x2fd   :  { %4176 = vmatprep.subr.bf16.mxu1 %v4808_v10 }
 0x2fe   :  { %v4277_v23 = vrot.slane %v4237_v9, %v5187_v46 }
 0x2ff   :  { %4013 = vmatpush1.bf16.msra.mxu0 %v4805_v18 }
 0x300   :  { %4177 = vmatpush1.bf16.msra.mxu1 %v4807_v19  ;;  %4014 = vmatprep.subr.bf16.mxu0 %v4814_v20 }
 0x301   :  { %4178 = vmatprep.subr.bf16.mxu1 %v4816_v21 }
 0x303   :  { %4015 = vmatpush1.bf16.msra.mxu0 %v4813_v25 }
 0x304   :  { %4179 = vmatpush1.bf16.msra.mxu1 %v4815_v35  ;;  %4016 = vmatprep.subr.bf16.mxu0 %v4822_v8 }
 0x305   :  { %4180 = vmatprep.subr.bf16.mxu1 %v4824_v27 }
 0x307   :  { %4017 = vmatpush1.bf16.msra.mxu0 %v4821_v42 }
 0x308   :  { %4181 = vmatpush1.bf16.msra.mxu1 %v4823_v15  ;;  %4018 = vmatprep.subr.bf16.mxu0 %v4830_v31 }
 0x309   :  { %4182 = vmatprep.subr.bf16.mxu1 %v4832_v32 }
 0x30b   :  { %4019 = vmatpush1.bf16.msra.mxu0 %v4829_v38 }
 0x30c   :  { %4183 = vmatpush1.bf16.msra.mxu1 %v4831_v39  ;;  %4020 = vmatprep.subr.bf16.mxu0 %v4838_v58 }
 0x30d   :  { %4184 = vmatprep.subr.bf16.mxu1 %v4840_v41 }
 0x30f   :  { %4021 = vmatpush1.bf16.msra.mxu0 %v4837_v6 }
 0x310   :  { %4185 = vmatpush1.bf16.msra.mxu1 %v4839_v17  ;;  %4022 = vmatprep.subr.bf16.mxu0 %v4846_v54 }
 0x311   :  { %4186 = vmatprep.subr.bf16.mxu1 %v4848_v55 }
 0x313   :  { %4023 = vmatpush1.bf16.msra.mxu0 %v4845_v56 }
 0x314   :  { %4187 = vmatpush1.bf16.msra.mxu1 %v4847_v52 }
 0x316   :  { %4025 = vmatmul.mubr.bf16.vlgmr.msra.gmra.mrb[12].mxu0 %v5266_v26 }
 0x317   :  { %4189 = vmatmul.mubr.bf16.vlgmr.msra.gmra.mrb[12].mxu1 %v5266_v26  ;;  %v972_v26 = vrot.slane %v5289_v40, %v153_v60  ;;  %v4241_v60 = vrot.slane %v4207_v57, %v5262_v37 }
 0x319   :  { %v4281_v25 = vrot.slane %v4241_v60, %v5187_v46 }
 0x3e9   :  { %v4026_v4 = vpop.f32.mrb[12].mxu0 }
 0x3ea   :  { %v4854_v30 = vadd.f32 %v4026_v4, %v960_v59  ;;  %v4190_v7 = vpop.f32.mrb[12].mxu1  ;;  %v4028_v10 = vpop.f32.mrb[13].mxu0 }
 0x3eb   :  { %v4856_v11 = vadd.f32 %v4190_v7, %v968_v1  ;;  %v4855_v12 = vadd.f32 %v4028_v10, %v964_v3  ;;  %v4192_v13 = vpop.f32.mrb[13].mxu1  ;;  %v4030_v14 = vpop.f32.mrb[14].mxu0 }
 0x3ec   :  { %v4201_v18 = vmax.f32 %v4854_v30, 0.0  ;;  %v4857_v2 = vadd.f32 %v4192_v13, %v972_v26  ;;  %v4194_v19 = vpop.f32.mrb[14].mxu1  ;;  %v4031_v45 = vpop.f32.mrb[15].mxu0 }
 0x3ed   :  { %v4202_v40 = vmax.f32 %v4855_v12, 0.0  ;;  %v4195_v20 = vpop.f32.mrb[15].mxu1  ;;  %v4203_v22 = vmax.f32 %v4856_v11, 0.0 }
 0x3ee   :  { %v4286_v21 = vmul.f32 %v4269_v48, %v4201_v18  ;;  %v4204_v24 = vmax.f32 %v4857_v2, 0.0 }
 0x3ef   :  { %v4287_v50 = vmul.f32 %v4273_v49, %v4202_v40  ;;  %v4288_v35 = vmul.f32 %v4277_v23, %v4203_v22 }
 0x3f0   :  { %v4293_v63 = vadd.f32 %v5313_v62, %v4286_v21  ;;  %v4289_v27 = vmul.f32 %v4281_v25, %v4204_v24 }
 0x3f2   :  { %v4294_v8 = vadd.f32 %v4293_v63, %v4287_v50 }
 0x3f4   :  { %v4295_v47 = vadd.f32 %v4294_v8, %v4288_v35 }
 0x3f6   :  { %v4296_v28 = vadd.f32 %v4295_v47, %v4289_v27 }
 0x3f8   :  { %4297 = vadd.xlane.f32.xlu0 %v4296_v28 }
 0x485   :  { %v4298_v37 = vpop.xlane.xlu0 %4297 }
 0x486   :  { %v4306_v29 = vadd.f32 %v4849_v16, %v4298_v37 }
 0x488   :  { %4308 = vst.msk [vmem:[%s5347_s7] sm:$0xff] %vm4307_vm1, %v4306_v29 }
 0x489   :  { %4313 = vsyncpa [#allocation4], 1 }
 0x48a   :  { %4314 = vsyncpa [#allocation6], 1 }
 0x48b   :  { %4315 = vsyncpa [#allocation9], 1 }
 0x48c   :  { %4316 = vsyncpa [#allocation12], 1 }

</bundles_post_ra>
